<compile_context>
chip_gen: v7x
topology: tpu7x:2x2x1
jax: 0.10.0
libtpu: 0.0.40
codegen_flags: <defaults>
</compile_context>

<pallas_src>
import jax
import jax.numpy as jnp
from jax import lax
from jax.experimental import pallas as pl
from jax.experimental.pallas import tpu as pltpu


def _bayesian_lstm_kernel(x_ref, wih0_ref, whh0_ref, b0_ref,
                          wih1_ref, whh1_ref, b1_ref,
                          wmu_ref, bmu_ref, wvar_ref, bvar_ref,
                          eps_ref, out_ref):
    # x_ref: (T, B, F) time-major; weights pre-transposed (in, 4H); biases (1, 4H).
    T, B, _ = x_ref.shape
    H = whh0_ref.shape[0]
    f32 = jnp.float32

    # Hoist weight/bias loads out of the time loop.
    wih0 = wih0_ref[...]
    whh0 = whh0_ref[...]
    b0 = b0_ref[...]
    wih1 = wih1_ref[...]
    whh1 = whh1_ref[...]
    b1 = b1_ref[...]

    def cell(x_t, h, c, w_ih, w_hh, b):
        # PyTorch gate order: i, f, g, o.
        gates = (jnp.dot(x_t, w_ih, preferred_element_type=f32)
                 + jnp.dot(h, w_hh, preferred_element_type=f32)
                 + b)                                      # (B, 4H), lane-dense
        i = jax.nn.sigmoid(gates[:, 0 * H:1 * H])
        f = jax.nn.sigmoid(gates[:, 1 * H:2 * H])
        g = jnp.tanh(gates[:, 2 * H:3 * H])
        o = jax.nn.sigmoid(gates[:, 3 * H:4 * H])
        c_new = f * c + i * g
        h_new = o * jnp.tanh(c_new)
        return h_new, c_new

    def step(t, carry):
        h0, c0, h1, c1 = carry
        x_t = x_ref[t]                                     # (B, F), dynamic leading-axis index
        h0, c0 = cell(x_t, h0, c0, wih0, whh0, b0)
        # TODO(synk): nn.LSTM inter-layer dropout (p=0.1) is train-time only; this
        # eval-mode forward omits it.
        h1, c1 = cell(h0, h1, c1, wih1, whh1, b1)
        return (h0, c0, h1, c1)

    zeros = jnp.zeros((B, H), f32)
    _, _, h1, _ = lax.fori_loop(0, T, step, (zeros, zeros, zeros, zeros),
                                unroll=True)

    # Head: mu / log_var -> one reparameterized sample -> softmax.
    mu = jnp.dot(h1, wmu_ref[...], preferred_element_type=f32) + bmu_ref[...]
    log_var = jnp.dot(h1, wvar_ref[...], preferred_element_type=f32) + bvar_ref[...]
    std = jnp.exp(0.5 * log_var)
    sample = mu + eps_ref[...] * std
    probs = jax.nn.softmax(sample, axis=-1)                # (B, n_classes)
    # eps is drawn once => all n_samples rows identical; broadcast into output.
    out_ref[...] = jnp.broadcast_to(probs[None], out_ref.shape).astype(out_ref.dtype)


def bayesian_lstm(x, params, eps, n_samples=1):
    """x: (B, T, F) batch-first (PyTorch layout). Returns (n_samples, B, n_classes)."""
    B, T, F = x.shape
    H = params["whh0"].shape[0]
    C = params["wmu"].shape[1]

    x_tm = jnp.transpose(x, (1, 0, 2)).astype(jnp.float32)   # time-major (T, B, F)

    args = (x_tm,
            params["wih0"], params["whh0"], params["b0"],
            params["wih1"], params["whh1"], params["b1"],
            params["wmu"], params["bmu"], params["wvar"], params["bvar"],
            eps.astype(jnp.float32))

    def full_spec(shape):
        return pl.BlockSpec(shape, lambda i, _n=len(shape): (0,) * _n)

    in_specs = [full_spec(a.shape) for a in args]

    # Advisory cost estimate: two matmuls per cell per layer per step + head.
    flops = 2 * T * B * 4 * H * (F + H) + 2 * T * B * 4 * H * (2 * H) + 4 * B * H * C
    bytes_accessed = sum(int(a.size) * a.dtype.itemsize for a in args) \
        + n_samples * B * C * 4
    cost = pl.CostEstimate(flops=flops,
                           transcendentals=T * B * 10 * H,
                           bytes_accessed=bytes_accessed)

    return pl.pallas_call(
        _bayesian_lstm_kernel,
        out_shape=jax.ShapeDtypeStruct((n_samples, B, C), jnp.float32),
        grid_spec=pltpu.PrefetchScalarGridSpec(
            num_scalar_prefetch=0,
            grid=(1,),
            in_specs=in_specs,
            out_specs=full_spec((n_samples, B, C)),
        ),
        compiler_params=pltpu.CompilerParams(
            dimension_semantics=("arbitrary",)),
        cost_estimate=cost,
    )(*args)


def bayesian_lstm_ref(x, params, eps, n_samples=1):
    """Pure-JAX reference mirroring the PyTorch forward (eval mode)."""
    B, T, F = x.shape
    H = params["whh0"].shape[0]
    x = x.astype(jnp.float32)

    def cell(x_t, h, c, w_ih, w_hh, b):
        gates = x_t @ w_ih + h @ w_hh + b
        i = jax.nn.sigmoid(gates[:, 0 * H:1 * H])
        f = jax.nn.sigmoid(gates[:, 1 * H:2 * H])
        g = jnp.tanh(gates[:, 2 * H:3 * H])
        o = jax.nn.sigmoid(gates[:, 3 * H:4 * H])
        c = f * c + i * g
        h = o * jnp.tanh(c)
        return h, c

    h0 = c0 = h1 = c1 = jnp.zeros((B, H), jnp.float32)
    for t in range(T):
        h0, c0 = cell(x[:, t, :], h0, c0,
                      params["wih0"], params["whh0"], params["b0"])
        h1, c1 = cell(h0, h1, c1,
                      params["wih1"], params["whh1"], params["b1"])

    mu = h1 @ params["wmu"] + params["bmu"]
    log_var = h1 @ params["wvar"] + params["bvar"]
    std = jnp.exp(0.5 * log_var)
    probs = jax.nn.softmax(mu + eps * std, axis=-1)
    return jnp.broadcast_to(probs[None], (n_samples,) + probs.shape)


if __name__ == "__main__":
    # Small shapes consistent with the module: batch=8, seq=16, n_features=8,
    # hidden_size=64, n_layers=2, n_classes=4, n_samples=2.
    B, T, F = 8, 16, 8
    H, C = 64, 4
    n_samples = 2

    key = jax.random.PRNGKey(0)
    keys = jax.random.split(key, 12)

    def init(k, shape, fan_in):
        return jax.random.normal(k, shape, jnp.float32) / jnp.sqrt(float(fan_in))

    params = {
        # PyTorch stores LSTM weights as (4H, in); we keep them pre-transposed
        # (in, 4H) with gate order i, f, g, o; ih+hh biases are pre-summed.
        "wih0": init(keys[0], (F, 4 * H), F),
        "whh0": init(keys[1], (H, 4 * H), H),
        "b0":   init(keys[2], (1, 4 * H), H),
        "wih1": init(keys[3], (H, 4 * H), H),
        "whh1": init(keys[4], (H, 4 * H), H),
        "b1":   init(keys[5], (1, 4 * H), H),
        "wmu":  init(keys[6], (H, C), H),
        "bmu":  init(keys[7], (1, C), H),
        "wvar": init(keys[8], (H, C), H),
        "bvar": init(keys[9], (1, C), H),
    }
    x = jax.random.normal(keys[10], (B, T, F), jnp.float32)
    # torch.randn_like(std) equivalent, generated in the wrapper for determinism.
    eps = jax.random.normal(keys[11], (B, C), jnp.float32)

    out = jax.block_until_ready(bayesian_lstm(x, params, eps, n_samples=n_samples))
    ref = bayesian_lstm_ref(x, params, eps, n_samples=n_samples)

    assert out.shape == (n_samples, B, C)
    assert jnp.allclose(out, ref, atol=1e-5, rtol=1e-5), "mismatch vs reference"

    print("KERNEL_OK")
</pallas_src>

<mosaic_0001>
module attributes {stable_mosaic.version = 11 : i64} {
  func.func @_bayesian_lstm_kernel(%arg0: i32, %arg1: memref<16x8x8xf32, #tpu.memory_space<vmem>>, %arg2: memref<8x256xf32, #tpu.memory_space<vmem>>, %arg3: memref<64x256xf32, #tpu.memory_space<vmem>>, %arg4: memref<1x256xf32, #tpu.memory_space<vmem>>, %arg5: memref<64x256xf32, #tpu.memory_space<vmem>>, %arg6: memref<64x256xf32, #tpu.memory_space<vmem>>, %arg7: memref<1x256xf32, #tpu.memory_space<vmem>>, %arg8: memref<64x4xf32, #tpu.memory_space<vmem>>, %arg9: memref<1x4xf32, #tpu.memory_space<vmem>>, %arg10: memref<64x4xf32, #tpu.memory_space<vmem>>, %arg11: memref<1x4xf32, #tpu.memory_space<vmem>>, %arg12: memref<8x4xf32, #tpu.memory_space<vmem>>, %arg13: memref<2x8x4xf32, #tpu.memory_space<vmem>>) attributes {dimension_semantics = [#tpu.dimension_semantics<arbitrary>], iteration_bounds = array<i64: 1>, scalar_prefetch = 0 : i64, scratch_operands = 0 : i64, tpu.core_type = #tpu.core_type<tc>, window_params = [{pipeline_mode = #tpu.pipeline_mode<synchronous>, transform_indices = @transform_0, window_bounds = array<i64: 16, 8, 8>}, {pipeline_mode = #tpu.pipeline_mode<synchronous>, transform_indices = @transform_1, window_bounds = array<i64: 8, 256>}, {pipeline_mode = #tpu.pipeline_mode<synchronous>, transform_indices = @transform_2, window_bounds = array<i64: 64, 256>}, {pipeline_mode = #tpu.pipeline_mode<synchronous>, transform_indices = @transform_3, window_bounds = array<i64: 1, 256>}, {pipeline_mode = #tpu.pipeline_mode<synchronous>, transform_indices = @transform_4, window_bounds = array<i64: 64, 256>}, {pipeline_mode = #tpu.pipeline_mode<synchronous>, transform_indices = @transform_5, window_bounds = array<i64: 64, 256>}, {pipeline_mode = #tpu.pipeline_mode<synchronous>, transform_indices = @transform_6, window_bounds = array<i64: 1, 256>}, {pipeline_mode = #tpu.pipeline_mode<synchronous>, transform_indices = @transform_7, window_bounds = array<i64: 64, 4>}, {pipeline_mode = #tpu.pipeline_mode<synchronous>, transform_indices = @transform_8, window_bounds = array<i64: 1, 4>}, {pipeline_mode = #tpu.pipeline_mode<synchronous>, transform_indices = @transform_9, window_bounds = array<i64: 64, 4>}, {pipeline_mode = #tpu.pipeline_mode<synchronous>, transform_indices = @transform_10, window_bounds = array<i64: 1, 4>}, {pipeline_mode = #tpu.pipeline_mode<synchronous>, transform_indices = @transform_11, window_bounds = array<i64: 8, 4>}, {pipeline_mode = #tpu.pipeline_mode<synchronous>, transform_indices = @transform_12, window_bounds = array<i64: 2, 8, 4>}]} {
    %c0 = arith.constant 0 : index
    %c0_0 = arith.constant 0 : index
    %0 = vector.load %arg2[%c0, %c0_0] : memref<8x256xf32, #tpu.memory_space<vmem>>, vector<8x256xf32>
    %c0_1 = arith.constant 0 : index
    %c0_2 = arith.constant 0 : index
    %1 = vector.load %arg3[%c0_1, %c0_2] : memref<64x256xf32, #tpu.memory_space<vmem>>, vector<64x256xf32>
    %c0_3 = arith.constant 0 : index
    %c0_4 = arith.constant 0 : index
    %2 = vector.load %arg4[%c0_3, %c0_4] : memref<1x256xf32, #tpu.memory_space<vmem>>, vector<1x256xf32>
    %c0_5 = arith.constant 0 : index
    %c0_6 = arith.constant 0 : index
    %3 = vector.load %arg5[%c0_5, %c0_6] : memref<64x256xf32, #tpu.memory_space<vmem>>, vector<64x256xf32>
    %c0_7 = arith.constant 0 : index
    %c0_8 = arith.constant 0 : index
    %4 = vector.load %arg6[%c0_7, %c0_8] : memref<64x256xf32, #tpu.memory_space<vmem>>, vector<64x256xf32>
    %c0_9 = arith.constant 0 : index
    %c0_10 = arith.constant 0 : index
    %5 = vector.load %arg7[%c0_9, %c0_10] : memref<1x256xf32, #tpu.memory_space<vmem>>, vector<1x256xf32>
    %cst = arith.constant 0.000000e+00 : f32
    %6 = vector.broadcast %cst : f32 to vector<8x64xf32>
    %c0_i32 = arith.constant 0 : i32
    %7 = arith.index_cast %c0_i32 : i32 to index
    %c0_11 = arith.constant 0 : index
    %c0_12 = arith.constant 0 : index
    %8 = vector.load %arg1[%7, %c0_11, %c0_12] : memref<16x8x8xf32, #tpu.memory_space<vmem>>, vector<1x8x8xf32>
    %9 = vector.shape_cast %8 : vector<1x8x8xf32> to vector<8x8xf32>
    %cst_13 = arith.constant dense<0.000000e+00> : vector<8x256xf32>
    %10 = tpu.matmul %9, %0, %cst_13 {dimension_numbers = #tpu.dot_dimension_numbers<[1], [0], [0], [1], [0, 0, 1, 1], [], []>} : vector<8x8xf32>, vector<8x256xf32>, vector<8x256xf32> -> vector<8x256xf32>
    %cst_14 = arith.constant dense<0.000000e+00> : vector<8x256xf32>
    %11 = tpu.matmul %6, %1, %cst_14 {dimension_numbers = #tpu.dot_dimension_numbers<[1], [0], [0], [1], [0, 0, 1, 1], [], []>} : vector<8x64xf32>, vector<64x256xf32>, vector<8x256xf32> -> vector<8x256xf32>
    %12 = arith.addf %10, %11 : vector<8x256xf32>
    %13 = vector.broadcast %2 : vector<1x256xf32> to vector<8x256xf32>
    %14 = arith.addf %12, %13 : vector<8x256xf32>
    %15 = vector.extract_strided_slice %14 {offsets = [0, 0], sizes = [8, 64], strides = [1, 1]} : vector<8x256xf32> to vector<8x64xf32>
    %16 = arith.negf %15 : vector<8x64xf32>
    %17 = math.exp %16 : vector<8x64xf32>
    %cst_15 = arith.constant 1.000000e+00 : f32
    %18 = vector.broadcast %cst_15 : f32 to vector<8x64xf32>
    %19 = arith.addf %18, %17 : vector<8x64xf32>
    %20 = arith.divf %18, %19 : vector<8x64xf32>
    %21 = vector.extract_strided_slice %14 {offsets = [0, 64], sizes = [8, 64], strides = [1, 1]} : vector<8x256xf32> to vector<8x64xf32>
    %22 = arith.negf %21 : vector<8x64xf32>
    %23 = math.exp %22 : vector<8x64xf32>
    %cst_16 = arith.constant 1.000000e+00 : f32
    %24 = vector.broadcast %cst_16 : f32 to vector<8x64xf32>
    %25 = arith.addf %24, %23 : vector<8x64xf32>
    %26 = arith.divf %24, %25 : vector<8x64xf32>
    %27 = vector.extract_strided_slice %14 {offsets = [0, 128], sizes = [8, 64], strides = [1, 1]} : vector<8x256xf32> to vector<8x64xf32>
    %28 = math.tanh %27 : vector<8x64xf32>
    %29 = vector.extract_strided_slice %14 {offsets = [0, 192], sizes = [8, 64], strides = [1, 1]} : vector<8x256xf32> to vector<8x64xf32>
    %30 = arith.negf %29 : vector<8x64xf32>
    %31 = math.exp %30 : vector<8x64xf32>
    %cst_17 = arith.constant 1.000000e+00 : f32
    %32 = vector.broadcast %cst_17 : f32 to vector<8x64xf32>
    %33 = arith.addf %32, %31 : vector<8x64xf32>
    %34 = arith.divf %32, %33 : vector<8x64xf32>
    %35 = arith.mulf %26, %6 : vector<8x64xf32>
    %36 = arith.mulf %20, %28 : vector<8x64xf32>
    %37 = arith.addf %35, %36 : vector<8x64xf32>
    %38 = math.tanh %37 : vector<8x64xf32>
    %39 = arith.mulf %34, %38 : vector<8x64xf32>
    %cst_18 = arith.constant dense<0.000000e+00> : vector<8x256xf32>
    %40 = tpu.matmul %39, %3, %cst_18 {dimension_numbers = #tpu.dot_dimension_numbers<[1], [0], [0], [1], [0, 0, 1, 1], [], []>} : vector<8x64xf32>, vector<64x256xf32>, vector<8x256xf32> -> vector<8x256xf32>
    %cst_19 = arith.constant dense<0.000000e+00> : vector<8x256xf32>
    %41 = tpu.matmul %6, %4, %cst_19 {dimension_numbers = #tpu.dot_dimension_numbers<[1], [0], [0], [1], [0, 0, 1, 1], [], []>} : vector<8x64xf32>, vector<64x256xf32>, vector<8x256xf32> -> vector<8x256xf32>
    %42 = arith.addf %40, %41 : vector<8x256xf32>
    %43 = vector.broadcast %5 : vector<1x256xf32> to vector<8x256xf32>
    %44 = arith.addf %42, %43 : vector<8x256xf32>
    %45 = vector.extract_strided_slice %44 {offsets = [0, 0], sizes = [8, 64], strides = [1, 1]} : vector<8x256xf32> to vector<8x64xf32>
    %46 = arith.negf %45 : vector<8x64xf32>
    %47 = math.exp %46 : vector<8x64xf32>
    %cst_20 = arith.constant 1.000000e+00 : f32
    %48 = vector.broadcast %cst_20 : f32 to vector<8x64xf32>
    %49 = arith.addf %48, %47 : vector<8x64xf32>
    %50 = arith.divf %48, %49 : vector<8x64xf32>
    %51 = vector.extract_strided_slice %44 {offsets = [0, 64], sizes = [8, 64], strides = [1, 1]} : vector<8x256xf32> to vector<8x64xf32>
    %52 = arith.negf %51 : vector<8x64xf32>
    %53 = math.exp %52 : vector<8x64xf32>
    %cst_21 = arith.constant 1.000000e+00 : f32
    %54 = vector.broadcast %cst_21 : f32 to vector<8x64xf32>
    %55 = arith.addf %54, %53 : vector<8x64xf32>
    %56 = arith.divf %54, %55 : vector<8x64xf32>
    %57 = vector.extract_strided_slice %44 {offsets = [0, 128], sizes = [8, 64], strides = [1, 1]} : vector<8x256xf32> to vector<8x64xf32>
    %58 = math.tanh %57 : vector<8x64xf32>
    %59 = vector.extract_strided_slice %44 {offsets = [0, 192], sizes = [8, 64], strides = [1, 1]} : vector<8x256xf32> to vector<8x64xf32>
    %60 = arith.negf %59 : vector<8x64xf32>
    %61 = math.exp %60 : vector<8x64xf32>
    %cst_22 = arith.constant 1.000000e+00 : f32
    %62 = vector.broadcast %cst_22 : f32 to vector<8x64xf32>
    %63 = arith.addf %62, %61 : vector<8x64xf32>
    %64 = arith.divf %62, %63 : vector<8x64xf32>
    %65 = arith.mulf %56, %6 : vector<8x64xf32>
    %66 = arith.mulf %50, %58 : vector<8x64xf32>
    %67 = arith.addf %65, %66 : vector<8x64xf32>
    %68 = math.tanh %67 : vector<8x64xf32>
    %69 = arith.mulf %64, %68 : vector<8x64xf32>
    %c1_i32 = arith.constant 1 : i32
    %70 = arith.index_cast %c1_i32 : i32 to index
    %c0_23 = arith.constant 0 : index
    %c0_24 = arith.constant 0 : index
    %71 = vector.load %arg1[%70, %c0_23, %c0_24] : memref<16x8x8xf32, #tpu.memory_space<vmem>>, vector<1x8x8xf32>
    %72 = vector.shape_cast %71 : vector<1x8x8xf32> to vector<8x8xf32>
    %cst_25 = arith.constant dense<0.000000e+00> : vector<8x256xf32>
    %73 = tpu.matmul %72, %0, %cst_25 {dimension_numbers = #tpu.dot_dimension_numbers<[1], [0], [0], [1], [0, 0, 1, 1], [], []>} : vector<8x8xf32>, vector<8x256xf32>, vector<8x256xf32> -> vector<8x256xf32>
    %cst_26 = arith.constant dense<0.000000e+00> : vector<8x256xf32>
    %74 = tpu.matmul %39, %1, %cst_26 {dimension_numbers = #tpu.dot_dimension_numbers<[1], [0], [0], [1], [0, 0, 1, 1], [], []>} : vector<8x64xf32>, vector<64x256xf32>, vector<8x256xf32> -> vector<8x256xf32>
    %75 = arith.addf %73, %74 : vector<8x256xf32>
    %76 = vector.broadcast %2 : vector<1x256xf32> to vector<8x256xf32>
    %77 = arith.addf %75, %76 : vector<8x256xf32>
    %78 = vector.extract_strided_slice %77 {offsets = [0, 0], sizes = [8, 64], strides = [1, 1]} : vector<8x256xf32> to vector<8x64xf32>
    %79 = arith.negf %78 : vector<8x64xf32>
    %80 = math.exp %79 : vector<8x64xf32>
    %cst_27 = arith.constant 1.000000e+00 : f32
    %81 = vector.broadcast %cst_27 : f32 to vector<8x64xf32>
    %82 = arith.addf %81, %80 : vector<8x64xf32>
    %83 = arith.divf %81, %82 : vector<8x64xf32>
    %84 = vector.extract_strided_slice %77 {offsets = [0, 64], sizes = [8, 64], strides = [1, 1]} : vector<8x256xf32> to vector<8x64xf32>
    %85 = arith.negf %84 : vector<8x64xf32>
    %86 = math.exp %85 : vector<8x64xf32>
    %cst_28 = arith.constant 1.000000e+00 : f32
    %87 = vector.broadcast %cst_28 : f32 to vector<8x64xf32>
    %88 = arith.addf %87, %86 : vector<8x64xf32>
    %89 = arith.divf %87, %88 : vector<8x64xf32>
    %90 = vector.extract_strided_slice %77 {offsets = [0, 128], sizes = [8, 64], strides = [1, 1]} : vector<8x256xf32> to vector<8x64xf32>
    %91 = math.tanh %90 : vector<8x64xf32>
    %92 = vector.extract_strided_slice %77 {offsets = [0, 192], sizes = [8, 64], strides = [1, 1]} : vector<8x256xf32> to vector<8x64xf32>
    %93 = arith.negf %92 : vector<8x64xf32>
    %94 = math.exp %93 : vector<8x64xf32>
    %cst_29 = arith.constant 1.000000e+00 : f32
    %95 = vector.broadcast %cst_29 : f32 to vector<8x64xf32>
    %96 = arith.addf %95, %94 : vector<8x64xf32>
    %97 = arith.divf %95, %96 : vector<8x64xf32>
    %98 = arith.mulf %89, %37 : vector<8x64xf32>
    %99 = arith.mulf %83, %91 : vector<8x64xf32>
    %100 = arith.addf %98, %99 : vector<8x64xf32>
    %101 = math.tanh %100 : vector<8x64xf32>
    %102 = arith.mulf %97, %101 : vector<8x64xf32>
    %cst_30 = arith.constant dense<0.000000e+00> : vector<8x256xf32>
    %103 = tpu.matmul %102, %3, %cst_30 {dimension_numbers = #tpu.dot_dimension_numbers<[1], [0], [0], [1], [0, 0, 1, 1], [], []>} : vector<8x64xf32>, vector<64x256xf32>, vector<8x256xf32> -> vector<8x256xf32>
    %cst_31 = arith.constant dense<0.000000e+00> : vector<8x256xf32>
    %104 = tpu.matmul %69, %4, %cst_31 {dimension_numbers = #tpu.dot_dimension_numbers<[1], [0], [0], [1], [0, 0, 1, 1], [], []>} : vector<8x64xf32>, vector<64x256xf32>, vector<8x256xf32> -> vector<8x256xf32>
    %105 = arith.addf %103, %104 : vector<8x256xf32>
    %106 = vector.broadcast %5 : vector<1x256xf32> to vector<8x256xf32>
    %107 = arith.addf %105, %106 : vector<8x256xf32>
    %108 = vector.extract_strided_slice %107 {offsets = [0, 0], sizes = [8, 64], strides = [1, 1]} : vector<8x256xf32> to vector<8x64xf32>
    %109 = arith.negf %108 : vector<8x64xf32>
    %110 = math.exp %109 : vector<8x64xf32>
    %cst_32 = arith.constant 1.000000e+00 : f32
    %111 = vector.broadcast %cst_32 : f32 to vector<8x64xf32>
    %112 = arith.addf %111, %110 : vector<8x64xf32>
    %113 = arith.divf %111, %112 : vector<8x64xf32>
    %114 = vector.extract_strided_slice %107 {offsets = [0, 64], sizes = [8, 64], strides = [1, 1]} : vector<8x256xf32> to vector<8x64xf32>
    %115 = arith.negf %114 : vector<8x64xf32>
    %116 = math.exp %115 : vector<8x64xf32>
    %cst_33 = arith.constant 1.000000e+00 : f32
    %117 = vector.broadcast %cst_33 : f32 to vector<8x64xf32>
    %118 = arith.addf %117, %116 : vector<8x64xf32>
    %119 = arith.divf %117, %118 : vector<8x64xf32>
    %120 = vector.extract_strided_slice %107 {offsets = [0, 128], sizes = [8, 64], strides = [1, 1]} : vector<8x256xf32> to vector<8x64xf32>
    %121 = math.tanh %120 : vector<8x64xf32>
    %122 = vector.extract_strided_slice %107 {offsets = [0, 192], sizes = [8, 64], strides = [1, 1]} : vector<8x256xf32> to vector<8x64xf32>
    %123 = arith.negf %122 : vector<8x64xf32>
    %124 = math.exp %123 : vector<8x64xf32>
    %cst_34 = arith.constant 1.000000e+00 : f32
    %125 = vector.broadcast %cst_34 : f32 to vector<8x64xf32>
    %126 = arith.addf %125, %124 : vector<8x64xf32>
    %127 = arith.divf %125, %126 : vector<8x64xf32>
    %128 = arith.mulf %119, %67 : vector<8x64xf32>
    %129 = arith.mulf %113, %121 : vector<8x64xf32>
    %130 = arith.addf %128, %129 : vector<8x64xf32>
    %131 = math.tanh %130 : vector<8x64xf32>
    %132 = arith.mulf %127, %131 : vector<8x64xf32>
    %c2_i32 = arith.constant 2 : i32
    %133 = arith.index_cast %c2_i32 : i32 to index
    %c0_35 = arith.constant 0 : index
    %c0_36 = arith.constant 0 : index
    %134 = vector.load %arg1[%133, %c0_35, %c0_36] : memref<16x8x8xf32, #tpu.memory_space<vmem>>, vector<1x8x8xf32>
    %135 = vector.shape_cast %134 : vector<1x8x8xf32> to vector<8x8xf32>
    %cst_37 = arith.constant dense<0.000000e+00> : vector<8x256xf32>
    %136 = tpu.matmul %135, %0, %cst_37 {dimension_numbers = #tpu.dot_dimension_numbers<[1], [0], [0], [1], [0, 0, 1, 1], [], []>} : vector<8x8xf32>, vector<8x256xf32>, vector<8x256xf32> -> vector<8x256xf32>
    %cst_38 = arith.constant dense<0.000000e+00> : vector<8x256xf32>
    %137 = tpu.matmul %102, %1, %cst_38 {dimension_numbers = #tpu.dot_dimension_numbers<[1], [0], [0], [1], [0, 0, 1, 1], [], []>} : vector<8x64xf32>, vector<64x256xf32>, vector<8x256xf32> -> vector<8x256xf32>
    %138 = arith.addf %136, %137 : vector<8x256xf32>
    %139 = vector.broadcast %2 : vector<1x256xf32> to vector<8x256xf32>
    %140 = arith.addf %138, %139 : vector<8x256xf32>
    %141 = vector.extract_strided_slice %140 {offsets = [0, 0], sizes = [8, 64], strides = [1, 1]} : vector<8x256xf32> to vector<8x64xf32>
    %142 = arith.negf %141 : vector<8x64xf32>
    %143 = math.exp %142 : vector<8x64xf32>
    %cst_39 = arith.constant 1.000000e+00 : f32
    %144 = vector.broadcast %cst_39 : f32 to vector<8x64xf32>
    %145 = arith.addf %144, %143 : vector<8x64xf32>
    %146 = arith.divf %144, %145 : vector<8x64xf32>
    %147 = vector.extract_strided_slice %140 {offsets = [0, 64], sizes = [8, 64], strides = [1, 1]} : vector<8x256xf32> to vector<8x64xf32>
    %148 = arith.negf %147 : vector<8x64xf32>
    %149 = math.exp %148 : vector<8x64xf32>
    %cst_40 = arith.constant 1.000000e+00 : f32
    %150 = vector.broadcast %cst_40 : f32 to vector<8x64xf32>
    %151 = arith.addf %150, %149 : vector<8x64xf32>
    %152 = arith.divf %150, %151 : vector<8x64xf32>
    %153 = vector.extract_strided_slice %140 {offsets = [0, 128], sizes = [8, 64], strides = [1, 1]} : vector<8x256xf32> to vector<8x64xf32>
    %154 = math.tanh %153 : vector<8x64xf32>
    %155 = vector.extract_strided_slice %140 {offsets = [0, 192], sizes = [8, 64], strides = [1, 1]} : vector<8x256xf32> to vector<8x64xf32>
    %156 = arith.negf %155 : vector<8x64xf32>
    %157 = math.exp %156 : vector<8x64xf32>
    %cst_41 = arith.constant 1.000000e+00 : f32
    %158 = vector.broadcast %cst_41 : f32 to vector<8x64xf32>
    %159 = arith.addf %158, %157 : vector<8x64xf32>
    %160 = arith.divf %158, %159 : vector<8x64xf32>
    %161 = arith.mulf %152, %100 : vector<8x64xf32>
    %162 = arith.mulf %146, %154 : vector<8x64xf32>
    %163 = arith.addf %161, %162 : vector<8x64xf32>
    %164 = math.tanh %163 : vector<8x64xf32>
    %165 = arith.mulf %160, %164 : vector<8x64xf32>
    %cst_42 = arith.constant dense<0.000000e+00> : vector<8x256xf32>
    %166 = tpu.matmul %165, %3, %cst_42 {dimension_numbers = #tpu.dot_dimension_numbers<[1], [0], [0], [1], [0, 0, 1, 1], [], []>} : vector<8x64xf32>, vector<64x256xf32>, vector<8x256xf32> -> vector<8x256xf32>
    %cst_43 = arith.constant dense<0.000000e+00> : vector<8x256xf32>
    %167 = tpu.matmul %132, %4, %cst_43 {dimension_numbers = #tpu.dot_dimension_numbers<[1], [0], [0], [1], [0, 0, 1, 1], [], []>} : vector<8x64xf32>, vector<64x256xf32>, vector<8x256xf32> -> vector<8x256xf32>
    %168 = arith.addf %166, %167 : vector<8x256xf32>
    %169 = vector.broadcast %5 : vector<1x256xf32> to vector<8x256xf32>
    %170 = arith.addf %168, %169 : vector<8x256xf32>
    %171 = vector.extract_strided_slice %170 {offsets = [0, 0], sizes = [8, 64], strides = [1, 1]} : vector<8x256xf32> to vector<8x64xf32>
    %172 = arith.negf %171 : vector<8x64xf32>
    %173 = math.exp %172 : vector<8x64xf32>
    %cst_44 = arith.constant 1.000000e+00 : f32
    %174 = vector.broadcast %cst_44 : f32 to vector<8x64xf32>
    %175 = arith.addf %174, %173 : vector<8x64xf32>
    %176 = arith.divf %174, %175 : vector<8x64xf32>
    %177 = vector.extract_strided_slice %170 {offsets = [0, 64], sizes = [8, 64], strides = [1, 1]} : vector<8x256xf32> to vector<8x64xf32>
    %178 = arith.negf %177 : vector<8x64xf32>
    %179 = math.exp %178 : vector<8x64xf32>
    %cst_45 = arith.constant 1.000000e+00 : f32
    %180 = vector.broadcast %cst_45 : f32 to vector<8x64xf32>
    %181 = arith.addf %180, %179 : vector<8x64xf32>
    %182 = arith.divf %180, %181 : vector<8x64xf32>
    %183 = vector.extract_strided_slice %170 {offsets = [0, 128], sizes = [8, 64], strides = [1, 1]} : vector<8x256xf32> to vector<8x64xf32>
    %184 = math.tanh %183 : vector<8x64xf32>
    %185 = vector.extract_strided_slice %170 {offsets = [0, 192], sizes = [8, 64], strides = [1, 1]} : vector<8x256xf32> to vector<8x64xf32>
    %186 = arith.negf %185 : vector<8x64xf32>
    %187 = math.exp %186 : vector<8x64xf32>
    %cst_46 = arith.constant 1.000000e+00 : f32
    %188 = vector.broadcast %cst_46 : f32 to vector<8x64xf32>
    %189 = arith.addf %188, %187 : vector<8x64xf32>
    %190 = arith.divf %188, %189 : vector<8x64xf32>
    %191 = arith.mulf %182, %130 : vector<8x64xf32>
    %192 = arith.mulf %176, %184 : vector<8x64xf32>
    %193 = arith.addf %191, %192 : vector<8x64xf32>
    %194 = math.tanh %193 : vector<8x64xf32>
    %195 = arith.mulf %190, %194 : vector<8x64xf32>
    %c3_i32 = arith.constant 3 : i32
    %196 = arith.index_cast %c3_i32 : i32 to index
    %c0_47 = arith.constant 0 : index
    %c0_48 = arith.constant 0 : index
    %197 = vector.load %arg1[%196, %c0_47, %c0_48] : memref<16x8x8xf32, #tpu.memory_space<vmem>>, vector<1x8x8xf32>
    %198 = vector.shape_cast %197 : vector<1x8x8xf32> to vector<8x8xf32>
    %cst_49 = arith.constant dense<0.000000e+00> : vector<8x256xf32>
    %199 = tpu.matmul %198, %0, %cst_49 {dimension_numbers = #tpu.dot_dimension_numbers<[1], [0], [0], [1], [0, 0, 1, 1], [], []>} : vector<8x8xf32>, vector<8x256xf32>, vector<8x256xf32> -> vector<8x256xf32>
    %cst_50 = arith.constant dense<0.000000e+00> : vector<8x256xf32>
    %200 = tpu.matmul %165, %1, %cst_50 {dimension_numbers = #tpu.dot_dimension_numbers<[1], [0], [0], [1], [0, 0, 1, 1], [], []>} : vector<8x64xf32>, vector<64x256xf32>, vector<8x256xf32> -> vector<8x256xf32>
    %201 = arith.addf %199, %200 : vector<8x256xf32>
    %202 = vector.broadcast %2 : vector<1x256xf32> to vector<8x256xf32>
    %203 = arith.addf %201, %202 : vector<8x256xf32>
    %204 = vector.extract_strided_slice %203 {offsets = [0, 0], sizes = [8, 64], strides = [1, 1]} : vector<8x256xf32> to vector<8x64xf32>
    %205 = arith.negf %204 : vector<8x64xf32>
    %206 = math.exp %205 : vector<8x64xf32>
    %cst_51 = arith.constant 1.000000e+00 : f32
    %207 = vector.broadcast %cst_51 : f32 to vector<8x64xf32>
    %208 = arith.addf %207, %206 : vector<8x64xf32>
    %209 = arith.divf %207, %208 : vector<8x64xf32>
    %210 = vector.extract_strided_slice %203 {offsets = [0, 64], sizes = [8, 64], strides = [1, 1]} : vector<8x256xf32> to vector<8x64xf32>
    %211 = arith.negf %210 : vector<8x64xf32>
    %212 = math.exp %211 : vector<8x64xf32>
    %cst_52 = arith.constant 1.000000e+00 : f32
    %213 = vector.broadcast %cst_52 : f32 to vector<8x64xf32>
    %214 = arith.addf %213, %212 : vector<8x64xf32>
    %215 = arith.divf %213, %214 : vector<8x64xf32>
    %216 = vector.extract_strided_slice %203 {offsets = [0, 128], sizes = [8, 64], strides = [1, 1]} : vector<8x256xf32> to vector<8x64xf32>
    %217 = math.tanh %216 : vector<8x64xf32>
    %218 = vector.extract_strided_slice %203 {offsets = [0, 192], sizes = [8, 64], strides = [1, 1]} : vector<8x256xf32> to vector<8x64xf32>
    %219 = arith.negf %218 : vector<8x64xf32>
    %220 = math.exp %219 : vector<8x64xf32>
    %cst_53 = arith.constant 1.000000e+00 : f32
    %221 = vector.broadcast %cst_53 : f32 to vector<8x64xf32>
    %222 = arith.addf %221, %220 : vector<8x64xf32>
    %223 = arith.divf %221, %222 : vector<8x64xf32>
    %224 = arith.mulf %215, %163 : vector<8x64xf32>
    %225 = arith.mulf %209, %217 : vector<8x64xf32>
    %226 = arith.addf %224, %225 : vector<8x64xf32>
    %227 = math.tanh %226 : vector<8x64xf32>
    %228 = arith.mulf %223, %227 : vector<8x64xf32>
    %cst_54 = arith.constant dense<0.000000e+00> : vector<8x256xf32>
    %229 = tpu.matmul %228, %3, %cst_54 {dimension_numbers = #tpu.dot_dimension_numbers<[1], [0], [0], [1], [0, 0, 1, 1], [], []>} : vector<8x64xf32>, vector<64x256xf32>, vector<8x256xf32> -> vector<8x256xf32>
    %cst_55 = arith.constant dense<0.000000e+00> : vector<8x256xf32>
    %230 = tpu.matmul %195, %4, %cst_55 {dimension_numbers = #tpu.dot_dimension_numbers<[1], [0], [0], [1], [0, 0, 1, 1], [], []>} : vector<8x64xf32>, vector<64x256xf32>, vector<8x256xf32> -> vector<8x256xf32>
    %231 = arith.addf %229, %230 : vector<8x256xf32>
    %232 = vector.broadcast %5 : vector<1x256xf32> to vector<8x256xf32>
    %233 = arith.addf %231, %232 : vector<8x256xf32>
    %234 = vector.extract_strided_slice %233 {offsets = [0, 0], sizes = [8, 64], strides = [1, 1]} : vector<8x256xf32> to vector<8x64xf32>
    %235 = arith.negf %234 : vector<8x64xf32>
    %236 = math.exp %235 : vector<8x64xf32>
    %cst_56 = arith.constant 1.000000e+00 : f32
    %237 = vector.broadcast %cst_56 : f32 to vector<8x64xf32>
    %238 = arith.addf %237, %236 : vector<8x64xf32>
    %239 = arith.divf %237, %238 : vector<8x64xf32>
    %240 = vector.extract_strided_slice %233 {offsets = [0, 64], sizes = [8, 64], strides = [1, 1]} : vector<8x256xf32> to vector<8x64xf32>
    %241 = arith.negf %240 : vector<8x64xf32>
    %242 = math.exp %241 : vector<8x64xf32>
    %cst_57 = arith.constant 1.000000e+00 : f32
    %243 = vector.broadcast %cst_57 : f32 to vector<8x64xf32>
    %244 = arith.addf %243, %242 : vector<8x64xf32>
    %245 = arith.divf %243, %244 : vector<8x64xf32>
    %246 = vector.extract_strided_slice %233 {offsets = [0, 128], sizes = [8, 64], strides = [1, 1]} : vector<8x256xf32> to vector<8x64xf32>
    %247 = math.tanh %246 : vector<8x64xf32>
    %248 = vector.extract_strided_slice %233 {offsets = [0, 192], sizes = [8, 64], strides = [1, 1]} : vector<8x256xf32> to vector<8x64xf32>
    %249 = arith.negf %248 : vector<8x64xf32>
    %250 = math.exp %249 : vector<8x64xf32>
    %cst_58 = arith.constant 1.000000e+00 : f32
    %251 = vector.broadcast %cst_58 : f32 to vector<8x64xf32>
    %252 = arith.addf %251, %250 : vector<8x64xf32>
    %253 = arith.divf %251, %252 : vector<8x64xf32>
    %254 = arith.mulf %245, %193 : vector<8x64xf32>
    %255 = arith.mulf %239, %247 : vector<8x64xf32>
    %256 = arith.addf %254, %255 : vector<8x64xf32>
    %257 = math.tanh %256 : vector<8x64xf32>
    %258 = arith.mulf %253, %257 : vector<8x64xf32>
    %c4_i32 = arith.constant 4 : i32
    %259 = arith.index_cast %c4_i32 : i32 to index
    %c0_59 = arith.constant 0 : index
    %c0_60 = arith.constant 0 : index
    %260 = vector.load %arg1[%259, %c0_59, %c0_60] : memref<16x8x8xf32, #tpu.memory_space<vmem>>, vector<1x8x8xf32>
    %261 = vector.shape_cast %260 : vector<1x8x8xf32> to vector<8x8xf32>
    %cst_61 = arith.constant dense<0.000000e+00> : vector<8x256xf32>
    %262 = tpu.matmul %261, %0, %cst_61 {dimension_numbers = #tpu.dot_dimension_numbers<[1], [0], [0], [1], [0, 0, 1, 1], [], []>} : vector<8x8xf32>, vector<8x256xf32>, vector<8x256xf32> -> vector<8x256xf32>
    %cst_62 = arith.constant dense<0.000000e+00> : vector<8x256xf32>
    %263 = tpu.matmul %228, %1, %cst_62 {dimension_numbers = #tpu.dot_dimension_numbers<[1], [0], [0], [1], [0, 0, 1, 1], [], []>} : vector<8x64xf32>, vector<64x256xf32>, vector<8x256xf32> -> vector<8x256xf32>
    %264 = arith.addf %262, %263 : vector<8x256xf32>
    %265 = vector.broadcast %2 : vector<1x256xf32> to vector<8x256xf32>
    %266 = arith.addf %264, %265 : vector<8x256xf32>
    %267 = vector.extract_strided_slice %266 {offsets = [0, 0], sizes = [8, 64], strides = [1, 1]} : vector<8x256xf32> to vector<8x64xf32>
    %268 = arith.negf %267 : vector<8x64xf32>
    %269 = math.exp %268 : vector<8x64xf32>
    %cst_63 = arith.constant 1.000000e+00 : f32
    %270 = vector.broadcast %cst_63 : f32 to vector<8x64xf32>
    %271 = arith.addf %270, %269 : vector<8x64xf32>
    %272 = arith.divf %270, %271 : vector<8x64xf32>
    %273 = vector.extract_strided_slice %266 {offsets = [0, 64], sizes = [8, 64], strides = [1, 1]} : vector<8x256xf32> to vector<8x64xf32>
    %274 = arith.negf %273 : vector<8x64xf32>
    %275 = math.exp %274 : vector<8x64xf32>
    %cst_64 = arith.constant 1.000000e+00 : f32
    %276 = vector.broadcast %cst_64 : f32 to vector<8x64xf32>
    %277 = arith.addf %276, %275 : vector<8x64xf32>
    %278 = arith.divf %276, %277 : vector<8x64xf32>
    %279 = vector.extract_strided_slice %266 {offsets = [0, 128], sizes = [8, 64], strides = [1, 1]} : vector<8x256xf32> to vector<8x64xf32>
    %280 = math.tanh %279 : vector<8x64xf32>
    %281 = vector.extract_strided_slice %266 {offsets = [0, 192], sizes = [8, 64], strides = [1, 1]} : vector<8x256xf32> to vector<8x64xf32>
    %282 = arith.negf %281 : vector<8x64xf32>
    %283 = math.exp %282 : vector<8x64xf32>
    %cst_65 = arith.constant 1.000000e+00 : f32
    %284 = vector.broadcast %cst_65 : f32 to vector<8x64xf32>
    %285 = arith.addf %284, %283 : vector<8x64xf32>
    %286 = arith.divf %284, %285 : vector<8x64xf32>
    %287 = arith.mulf %278, %226 : vector<8x64xf32>
    %288 = arith.mulf %272, %280 : vector<8x64xf32>
    %289 = arith.addf %287, %288 : vector<8x64xf32>
    %290 = math.tanh %289 : vector<8x64xf32>
    %291 = arith.mulf %286, %290 : vector<8x64xf32>
    %cst_66 = arith.constant dense<0.000000e+00> : vector<8x256xf32>
    %292 = tpu.matmul %291, %3, %cst_66 {dimension_numbers = #tpu.dot_dimension_numbers<[1], [0], [0], [1], [0, 0, 1, 1], [], []>} : vector<8x64xf32>, vector<64x256xf32>, vector<8x256xf32> -> vector<8x256xf32>
    %cst_67 = arith.constant dense<0.000000e+00> : vector<8x256xf32>
    %293 = tpu.matmul %258, %4, %cst_67 {dimension_numbers = #tpu.dot_dimension_numbers<[1], [0], [0], [1], [0, 0, 1, 1], [], []>} : vector<8x64xf32>, vector<64x256xf32>, vector<8x256xf32> -> vector<8x256xf32>
    %294 = arith.addf %292, %293 : vector<8x256xf32>
    %295 = vector.broadcast %5 : vector<1x256xf32> to vector<8x256xf32>
    %296 = arith.addf %294, %295 : vector<8x256xf32>
    %297 = vector.extract_strided_slice %296 {offsets = [0, 0], sizes = [8, 64], strides = [1, 1]} : vector<8x256xf32> to vector<8x64xf32>
    %298 = arith.negf %297 : vector<8x64xf32>
    %299 = math.exp %298 : vector<8x64xf32>
    %cst_68 = arith.constant 1.000000e+00 : f32
    %300 = vector.broadcast %cst_68 : f32 to vector<8x64xf32>
    %301 = arith.addf %300, %299 : vector<8x64xf32>
    %302 = arith.divf %300, %301 : vector<8x64xf32>
    %303 = vector.extract_strided_slice %296 {offsets = [0, 64], sizes = [8, 64], strides = [1, 1]} : vector<8x256xf32> to vector<8x64xf32>
    %304 = arith.negf %303 : vector<8x64xf32>
    %305 = math.exp %304 : vector<8x64xf32>
    %cst_69 = arith.constant 1.000000e+00 : f32
    %306 = vector.broadcast %cst_69 : f32 to vector<8x64xf32>
    %307 = arith.addf %306, %305 : vector<8x64xf32>
    %308 = arith.divf %306, %307 : vector<8x64xf32>
    %309 = vector.extract_strided_slice %296 {offsets = [0, 128], sizes = [8, 64], strides = [1, 1]} : vector<8x256xf32> to vector<8x64xf32>
    %310 = math.tanh %309 : vector<8x64xf32>
    %311 = vector.extract_strided_slice %296 {offsets = [0, 192], sizes = [8, 64], strides = [1, 1]} : vector<8x256xf32> to vector<8x64xf32>
    %312 = arith.negf %311 : vector<8x64xf32>
    %313 = math.exp %312 : vector<8x64xf32>
    %cst_70 = arith.constant 1.000000e+00 : f32
    %314 = vector.broadcast %cst_70 : f32 to vector<8x64xf32>
    %315 = arith.addf %314, %313 : vector<8x64xf32>
    %316 = arith.divf %314, %315 : vector<8x64xf32>
    %317 = arith.mulf %308, %256 : vector<8x64xf32>
    %318 = arith.mulf %302, %310 : vector<8x64xf32>
    %319 = arith.addf %317, %318 : vector<8x64xf32>
    %320 = math.tanh %319 : vector<8x64xf32>
    %321 = arith.mulf %316, %320 : vector<8x64xf32>
    %c5_i32 = arith.constant 5 : i32
    %322 = arith.index_cast %c5_i32 : i32 to index
    %c0_71 = arith.constant 0 : index
    %c0_72 = arith.constant 0 : index
    %323 = vector.load %arg1[%322, %c0_71, %c0_72] : memref<16x8x8xf32, #tpu.memory_space<vmem>>, vector<1x8x8xf32>
    %324 = vector.shape_cast %323 : vector<1x8x8xf32> to vector<8x8xf32>
    %cst_73 = arith.constant dense<0.000000e+00> : vector<8x256xf32>
    %325 = tpu.matmul %324, %0, %cst_73 {dimension_numbers = #tpu.dot_dimension_numbers<[1], [0], [0], [1], [0, 0, 1, 1], [], []>} : vector<8x8xf32>, vector<8x256xf32>, vector<8x256xf32> -> vector<8x256xf32>
    %cst_74 = arith.constant dense<0.000000e+00> : vector<8x256xf32>
    %326 = tpu.matmul %291, %1, %cst_74 {dimension_numbers = #tpu.dot_dimension_numbers<[1], [0], [0], [1], [0, 0, 1, 1], [], []>} : vector<8x64xf32>, vector<64x256xf32>, vector<8x256xf32> -> vector<8x256xf32>
    %327 = arith.addf %325, %326 : vector<8x256xf32>
    %328 = vector.broadcast %2 : vector<1x256xf32> to vector<8x256xf32>
    %329 = arith.addf %327, %328 : vector<8x256xf32>
    %330 = vector.extract_strided_slice %329 {offsets = [0, 0], sizes = [8, 64], strides = [1, 1]} : vector<8x256xf32> to vector<8x64xf32>
    %331 = arith.negf %330 : vector<8x64xf32>
    %332 = math.exp %331 : vector<8x64xf32>
    %cst_75 = arith.constant 1.000000e+00 : f32
    %333 = vector.broadcast %cst_75 : f32 to vector<8x64xf32>
    %334 = arith.addf %333, %332 : vector<8x64xf32>
    %335 = arith.divf %333, %334 : vector<8x64xf32>
    %336 = vector.extract_strided_slice %329 {offsets = [0, 64], sizes = [8, 64], strides = [1, 1]} : vector<8x256xf32> to vector<8x64xf32>
    %337 = arith.negf %336 : vector<8x64xf32>
    %338 = math.exp %337 : vector<8x64xf32>
    %cst_76 = arith.constant 1.000000e+00 : f32
    %339 = vector.broadcast %cst_76 : f32 to vector<8x64xf32>
    %340 = arith.addf %339, %338 : vector<8x64xf32>
    %341 = arith.divf %339, %340 : vector<8x64xf32>
    %342 = vector.extract_strided_slice %329 {offsets = [0, 128], sizes = [8, 64], strides = [1, 1]} : vector<8x256xf32> to vector<8x64xf32>
    %343 = math.tanh %342 : vector<8x64xf32>
    %344 = vector.extract_strided_slice %329 {offsets = [0, 192], sizes = [8, 64], strides = [1, 1]} : vector<8x256xf32> to vector<8x64xf32>
    %345 = arith.negf %344 : vector<8x64xf32>
    %346 = math.exp %345 : vector<8x64xf32>
    %cst_77 = arith.constant 1.000000e+00 : f32
    %347 = vector.broadcast %cst_77 : f32 to vector<8x64xf32>
    %348 = arith.addf %347, %346 : vector<8x64xf32>
    %349 = arith.divf %347, %348 : vector<8x64xf32>
    %350 = arith.mulf %341, %289 : vector<8x64xf32>
    %351 = arith.mulf %335, %343 : vector<8x64xf32>
    %352 = arith.addf %350, %351 : vector<8x64xf32>
    %353 = math.tanh %352 : vector<8x64xf32>
    %354 = arith.mulf %349, %353 : vector<8x64xf32>
    %cst_78 = arith.constant dense<0.000000e+00> : vector<8x256xf32>
    %355 = tpu.matmul %354, %3, %cst_78 {dimension_numbers = #tpu.dot_dimension_numbers<[1], [0], [0], [1], [0, 0, 1, 1], [], []>} : vector<8x64xf32>, vector<64x256xf32>, vector<8x256xf32> -> vector<8x256xf32>
    %cst_79 = arith.constant dense<0.000000e+00> : vector<8x256xf32>
    %356 = tpu.matmul %321, %4, %cst_79 {dimension_numbers = #tpu.dot_dimension_numbers<[1], [0], [0], [1], [0, 0, 1, 1], [], []>} : vector<8x64xf32>, vector<64x256xf32>, vector<8x256xf32> -> vector<8x256xf32>
    %357 = arith.addf %355, %356 : vector<8x256xf32>
    %358 = vector.broadcast %5 : vector<1x256xf32> to vector<8x256xf32>
    %359 = arith.addf %357, %358 : vector<8x256xf32>
    %360 = vector.extract_strided_slice %359 {offsets = [0, 0], sizes = [8, 64], strides = [1, 1]} : vector<8x256xf32> to vector<8x64xf32>
    %361 = arith.negf %360 : vector<8x64xf32>
    %362 = math.exp %361 : vector<8x64xf32>
    %cst_80 = arith.constant 1.000000e+00 : f32
    %363 = vector.broadcast %cst_80 : f32 to vector<8x64xf32>
    %364 = arith.addf %363, %362 : vector<8x64xf32>
    %365 = arith.divf %363, %364 : vector<8x64xf32>
    %366 = vector.extract_strided_slice %359 {offsets = [0, 64], sizes = [8, 64], strides = [1, 1]} : vector<8x256xf32> to vector<8x64xf32>
    %367 = arith.negf %366 : vector<8x64xf32>
    %368 = math.exp %367 : vector<8x64xf32>
    %cst_81 = arith.constant 1.000000e+00 : f32
    %369 = vector.broadcast %cst_81 : f32 to vector<8x64xf32>
    %370 = arith.addf %369, %368 : vector<8x64xf32>
    %371 = arith.divf %369, %370 : vector<8x64xf32>
    %372 = vector.extract_strided_slice %359 {offsets = [0, 128], sizes = [8, 64], strides = [1, 1]} : vector<8x256xf32> to vector<8x64xf32>
    %373 = math.tanh %372 : vector<8x64xf32>
    %374 = vector.extract_strided_slice %359 {offsets = [0, 192], sizes = [8, 64], strides = [1, 1]} : vector<8x256xf32> to vector<8x64xf32>
    %375 = arith.negf %374 : vector<8x64xf32>
    %376 = math.exp %375 : vector<8x64xf32>
    %cst_82 = arith.constant 1.000000e+00 : f32
    %377 = vector.broadcast %cst_82 : f32 to vector<8x64xf32>
    %378 = arith.addf %377, %376 : vector<8x64xf32>
    %379 = arith.divf %377, %378 : vector<8x64xf32>
    %380 = arith.mulf %371, %319 : vector<8x64xf32>
    %381 = arith.mulf %365, %373 : vector<8x64xf32>
    %382 = arith.addf %380, %381 : vector<8x64xf32>
    %383 = math.tanh %382 : vector<8x64xf32>
    %384 = arith.mulf %379, %383 : vector<8x64xf32>
    %c6_i32 = arith.constant 6 : i32
    %385 = arith.index_cast %c6_i32 : i32 to index
    %c0_83 = arith.constant 0 : index
    %c0_84 = arith.constant 0 : index
    %386 = vector.load %arg1[%385, %c0_83, %c0_84] : memref<16x8x8xf32, #tpu.memory_space<vmem>>, vector<1x8x8xf32>
    %387 = vector.shape_cast %386 : vector<1x8x8xf32> to vector<8x8xf32>
    %cst_85 = arith.constant dense<0.000000e+00> : vector<8x256xf32>
    %388 = tpu.matmul %387, %0, %cst_85 {dimension_numbers = #tpu.dot_dimension_numbers<[1], [0], [0], [1], [0, 0, 1, 1], [], []>} : vector<8x8xf32>, vector<8x256xf32>, vector<8x256xf32> -> vector<8x256xf32>
    %cst_86 = arith.constant dense<0.000000e+00> : vector<8x256xf32>
    %389 = tpu.matmul %354, %1, %cst_86 {dimension_numbers = #tpu.dot_dimension_numbers<[1], [0], [0], [1], [0, 0, 1, 1], [], []>} : vector<8x64xf32>, vector<64x256xf32>, vector<8x256xf32> -> vector<8x256xf32>
    %390 = arith.addf %388, %389 : vector<8x256xf32>
    %391 = vector.broadcast %2 : vector<1x256xf32> to vector<8x256xf32>
    %392 = arith.addf %390, %391 : vector<8x256xf32>
    %393 = vector.extract_strided_slice %392 {offsets = [0, 0], sizes = [8, 64], strides = [1, 1]} : vector<8x256xf32> to vector<8x64xf32>
    %394 = arith.negf %393 : vector<8x64xf32>
    %395 = math.exp %394 : vector<8x64xf32>
    %cst_87 = arith.constant 1.000000e+00 : f32
    %396 = vector.broadcast %cst_87 : f32 to vector<8x64xf32>
    %397 = arith.addf %396, %395 : vector<8x64xf32>
    %398 = arith.divf %396, %397 : vector<8x64xf32>
    %399 = vector.extract_strided_slice %392 {offsets = [0, 64], sizes = [8, 64], strides = [1, 1]} : vector<8x256xf32> to vector<8x64xf32>
    %400 = arith.negf %399 : vector<8x64xf32>
    %401 = math.exp %400 : vector<8x64xf32>
    %cst_88 = arith.constant 1.000000e+00 : f32
    %402 = vector.broadcast %cst_88 : f32 to vector<8x64xf32>
    %403 = arith.addf %402, %401 : vector<8x64xf32>
    %404 = arith.divf %402, %403 : vector<8x64xf32>
    %405 = vector.extract_strided_slice %392 {offsets = [0, 128], sizes = [8, 64], strides = [1, 1]} : vector<8x256xf32> to vector<8x64xf32>
    %406 = math.tanh %405 : vector<8x64xf32>
    %407 = vector.extract_strided_slice %392 {offsets = [0, 192], sizes = [8, 64], strides = [1, 1]} : vector<8x256xf32> to vector<8x64xf32>
    %408 = arith.negf %407 : vector<8x64xf32>
    %409 = math.exp %408 : vector<8x64xf32>
    %cst_89 = arith.constant 1.000000e+00 : f32
    %410 = vector.broadcast %cst_89 : f32 to vector<8x64xf32>
    %411 = arith.addf %410, %409 : vector<8x64xf32>
    %412 = arith.divf %410, %411 : vector<8x64xf32>
    %413 = arith.mulf %404, %352 : vector<8x64xf32>
    %414 = arith.mulf %398, %406 : vector<8x64xf32>
    %415 = arith.addf %413, %414 : vector<8x64xf32>
    %416 = math.tanh %415 : vector<8x64xf32>
    %417 = arith.mulf %412, %416 : vector<8x64xf32>
    %cst_90 = arith.constant dense<0.000000e+00> : vector<8x256xf32>
    %418 = tpu.matmul %417, %3, %cst_90 {dimension_numbers = #tpu.dot_dimension_numbers<[1], [0], [0], [1], [0, 0, 1, 1], [], []>} : vector<8x64xf32>, vector<64x256xf32>, vector<8x256xf32> -> vector<8x256xf32>
    %cst_91 = arith.constant dense<0.000000e+00> : vector<8x256xf32>
    %419 = tpu.matmul %384, %4, %cst_91 {dimension_numbers = #tpu.dot_dimension_numbers<[1], [0], [0], [1], [0, 0, 1, 1], [], []>} : vector<8x64xf32>, vector<64x256xf32>, vector<8x256xf32> -> vector<8x256xf32>
    %420 = arith.addf %418, %419 : vector<8x256xf32>
    %421 = vector.broadcast %5 : vector<1x256xf32> to vector<8x256xf32>
    %422 = arith.addf %420, %421 : vector<8x256xf32>
    %423 = vector.extract_strided_slice %422 {offsets = [0, 0], sizes = [8, 64], strides = [1, 1]} : vector<8x256xf32> to vector<8x64xf32>
    %424 = arith.negf %423 : vector<8x64xf32>
    %425 = math.exp %424 : vector<8x64xf32>
    %cst_92 = arith.constant 1.000000e+00 : f32
    %426 = vector.broadcast %cst_92 : f32 to vector<8x64xf32>
    %427 = arith.addf %426, %425 : vector<8x64xf32>
    %428 = arith.divf %426, %427 : vector<8x64xf32>
    %429 = vector.extract_strided_slice %422 {offsets = [0, 64], sizes = [8, 64], strides = [1, 1]} : vector<8x256xf32> to vector<8x64xf32>
    %430 = arith.negf %429 : vector<8x64xf32>
    %431 = math.exp %430 : vector<8x64xf32>
    %cst_93 = arith.constant 1.000000e+00 : f32
    %432 = vector.broadcast %cst_93 : f32 to vector<8x64xf32>
    %433 = arith.addf %432, %431 : vector<8x64xf32>
    %434 = arith.divf %432, %433 : vector<8x64xf32>
    %435 = vector.extract_strided_slice %422 {offsets = [0, 128], sizes = [8, 64], strides = [1, 1]} : vector<8x256xf32> to vector<8x64xf32>
    %436 = math.tanh %435 : vector<8x64xf32>
    %437 = vector.extract_strided_slice %422 {offsets = [0, 192], sizes = [8, 64], strides = [1, 1]} : vector<8x256xf32> to vector<8x64xf32>
    %438 = arith.negf %437 : vector<8x64xf32>
    %439 = math.exp %438 : vector<8x64xf32>
    %cst_94 = arith.constant 1.000000e+00 : f32
    %440 = vector.broadcast %cst_94 : f32 to vector<8x64xf32>
    %441 = arith.addf %440, %439 : vector<8x64xf32>
    %442 = arith.divf %440, %441 : vector<8x64xf32>
    %443 = arith.mulf %434, %382 : vector<8x64xf32>
    %444 = arith.mulf %428, %436 : vector<8x64xf32>
    %445 = arith.addf %443, %444 : vector<8x64xf32>
    %446 = math.tanh %445 : vector<8x64xf32>
    %447 = arith.mulf %442, %446 : vector<8x64xf32>
    %c7_i32 = arith.constant 7 : i32
    %448 = arith.index_cast %c7_i32 : i32 to index
    %c0_95 = arith.constant 0 : index
    %c0_96 = arith.constant 0 : index
    %449 = vector.load %arg1[%448, %c0_95, %c0_96] : memref<16x8x8xf32, #tpu.memory_space<vmem>>, vector<1x8x8xf32>
    %450 = vector.shape_cast %449 : vector<1x8x8xf32> to vector<8x8xf32>
    %cst_97 = arith.constant dense<0.000000e+00> : vector<8x256xf32>
    %451 = tpu.matmul %450, %0, %cst_97 {dimension_numbers = #tpu.dot_dimension_numbers<[1], [0], [0], [1], [0, 0, 1, 1], [], []>} : vector<8x8xf32>, vector<8x256xf32>, vector<8x256xf32> -> vector<8x256xf32>
    %cst_98 = arith.constant dense<0.000000e+00> : vector<8x256xf32>
    %452 = tpu.matmul %417, %1, %cst_98 {dimension_numbers = #tpu.dot_dimension_numbers<[1], [0], [0], [1], [0, 0, 1, 1], [], []>} : vector<8x64xf32>, vector<64x256xf32>, vector<8x256xf32> -> vector<8x256xf32>
    %453 = arith.addf %451, %452 : vector<8x256xf32>
    %454 = vector.broadcast %2 : vector<1x256xf32> to vector<8x256xf32>
    %455 = arith.addf %453, %454 : vector<8x256xf32>
    %456 = vector.extract_strided_slice %455 {offsets = [0, 0], sizes = [8, 64], strides = [1, 1]} : vector<8x256xf32> to vector<8x64xf32>
    %457 = arith.negf %456 : vector<8x64xf32>
    %458 = math.exp %457 : vector<8x64xf32>
    %cst_99 = arith.constant 1.000000e+00 : f32
    %459 = vector.broadcast %cst_99 : f32 to vector<8x64xf32>
    %460 = arith.addf %459, %458 : vector<8x64xf32>
    %461 = arith.divf %459, %460 : vector<8x64xf32>
    %462 = vector.extract_strided_slice %455 {offsets = [0, 64], sizes = [8, 64], strides = [1, 1]} : vector<8x256xf32> to vector<8x64xf32>
    %463 = arith.negf %462 : vector<8x64xf32>
    %464 = math.exp %463 : vector<8x64xf32>
    %cst_100 = arith.constant 1.000000e+00 : f32
    %465 = vector.broadcast %cst_100 : f32 to vector<8x64xf32>
    %466 = arith.addf %465, %464 : vector<8x64xf32>
    %467 = arith.divf %465, %466 : vector<8x64xf32>
    %468 = vector.extract_strided_slice %455 {offsets = [0, 128], sizes = [8, 64], strides = [1, 1]} : vector<8x256xf32> to vector<8x64xf32>
    %469 = math.tanh %468 : vector<8x64xf32>
    %470 = vector.extract_strided_slice %455 {offsets = [0, 192], sizes = [8, 64], strides = [1, 1]} : vector<8x256xf32> to vector<8x64xf32>
    %471 = arith.negf %470 : vector<8x64xf32>
    %472 = math.exp %471 : vector<8x64xf32>
    %cst_101 = arith.constant 1.000000e+00 : f32
    %473 = vector.broadcast %cst_101 : f32 to vector<8x64xf32>
    %474 = arith.addf %473, %472 : vector<8x64xf32>
    %475 = arith.divf %473, %474 : vector<8x64xf32>
    %476 = arith.mulf %467, %415 : vector<8x64xf32>
    %477 = arith.mulf %461, %469 : vector<8x64xf32>
    %478 = arith.addf %476, %477 : vector<8x64xf32>
    %479 = math.tanh %478 : vector<8x64xf32>
    %480 = arith.mulf %475, %479 : vector<8x64xf32>
    %cst_102 = arith.constant dense<0.000000e+00> : vector<8x256xf32>
    %481 = tpu.matmul %480, %3, %cst_102 {dimension_numbers = #tpu.dot_dimension_numbers<[1], [0], [0], [1], [0, 0, 1, 1], [], []>} : vector<8x64xf32>, vector<64x256xf32>, vector<8x256xf32> -> vector<8x256xf32>
    %cst_103 = arith.constant dense<0.000000e+00> : vector<8x256xf32>
    %482 = tpu.matmul %447, %4, %cst_103 {dimension_numbers = #tpu.dot_dimension_numbers<[1], [0], [0], [1], [0, 0, 1, 1], [], []>} : vector<8x64xf32>, vector<64x256xf32>, vector<8x256xf32> -> vector<8x256xf32>
    %483 = arith.addf %481, %482 : vector<8x256xf32>
    %484 = vector.broadcast %5 : vector<1x256xf32> to vector<8x256xf32>
    %485 = arith.addf %483, %484 : vector<8x256xf32>
    %486 = vector.extract_strided_slice %485 {offsets = [0, 0], sizes = [8, 64], strides = [1, 1]} : vector<8x256xf32> to vector<8x64xf32>
    %487 = arith.negf %486 : vector<8x64xf32>
    %488 = math.exp %487 : vector<8x64xf32>
    %cst_104 = arith.constant 1.000000e+00 : f32
    %489 = vector.broadcast %cst_104 : f32 to vector<8x64xf32>
    %490 = arith.addf %489, %488 : vector<8x64xf32>
    %491 = arith.divf %489, %490 : vector<8x64xf32>
    %492 = vector.extract_strided_slice %485 {offsets = [0, 64], sizes = [8, 64], strides = [1, 1]} : vector<8x256xf32> to vector<8x64xf32>
    %493 = arith.negf %492 : vector<8x64xf32>
    %494 = math.exp %493 : vector<8x64xf32>
    %cst_105 = arith.constant 1.000000e+00 : f32
    %495 = vector.broadcast %cst_105 : f32 to vector<8x64xf32>
    %496 = arith.addf %495, %494 : vector<8x64xf32>
    %497 = arith.divf %495, %496 : vector<8x64xf32>
    %498 = vector.extract_strided_slice %485 {offsets = [0, 128], sizes = [8, 64], strides = [1, 1]} : vector<8x256xf32> to vector<8x64xf32>
    %499 = math.tanh %498 : vector<8x64xf32>
    %500 = vector.extract_strided_slice %485 {offsets = [0, 192], sizes = [8, 64], strides = [1, 1]} : vector<8x256xf32> to vector<8x64xf32>
    %501 = arith.negf %500 : vector<8x64xf32>
    %502 = math.exp %501 : vector<8x64xf32>
    %cst_106 = arith.constant 1.000000e+00 : f32
    %503 = vector.broadcast %cst_106 : f32 to vector<8x64xf32>
    %504 = arith.addf %503, %502 : vector<8x64xf32>
    %505 = arith.divf %503, %504 : vector<8x64xf32>
    %506 = arith.mulf %497, %445 : vector<8x64xf32>
    %507 = arith.mulf %491, %499 : vector<8x64xf32>
    %508 = arith.addf %506, %507 : vector<8x64xf32>
    %509 = math.tanh %508 : vector<8x64xf32>
    %510 = arith.mulf %505, %509 : vector<8x64xf32>
    %c8_i32 = arith.constant 8 : i32
    %511 = arith.index_cast %c8_i32 : i32 to index
    %c0_107 = arith.constant 0 : index
    %c0_108 = arith.constant 0 : index
    %512 = vector.load %arg1[%511, %c0_107, %c0_108] : memref<16x8x8xf32, #tpu.memory_space<vmem>>, vector<1x8x8xf32>
    %513 = vector.shape_cast %512 : vector<1x8x8xf32> to vector<8x8xf32>
    %cst_109 = arith.constant dense<0.000000e+00> : vector<8x256xf32>
    %514 = tpu.matmul %513, %0, %cst_109 {dimension_numbers = #tpu.dot_dimension_numbers<[1], [0], [0], [1], [0, 0, 1, 1], [], []>} : vector<8x8xf32>, vector<8x256xf32>, vector<8x256xf32> -> vector<8x256xf32>
    %cst_110 = arith.constant dense<0.000000e+00> : vector<8x256xf32>
    %515 = tpu.matmul %480, %1, %cst_110 {dimension_numbers = #tpu.dot_dimension_numbers<[1], [0], [0], [1], [0, 0, 1, 1], [], []>} : vector<8x64xf32>, vector<64x256xf32>, vector<8x256xf32> -> vector<8x256xf32>
    %516 = arith.addf %514, %515 : vector<8x256xf32>
    %517 = vector.broadcast %2 : vector<1x256xf32> to vector<8x256xf32>
    %518 = arith.addf %516, %517 : vector<8x256xf32>
    %519 = vector.extract_strided_slice %518 {offsets = [0, 0], sizes = [8, 64], strides = [1, 1]} : vector<8x256xf32> to vector<8x64xf32>
    %520 = arith.negf %519 : vector<8x64xf32>
    %521 = math.exp %520 : vector<8x64xf32>
    %cst_111 = arith.constant 1.000000e+00 : f32
    %522 = vector.broadcast %cst_111 : f32 to vector<8x64xf32>
    %523 = arith.addf %522, %521 : vector<8x64xf32>
    %524 = arith.divf %522, %523 : vector<8x64xf32>
    %525 = vector.extract_strided_slice %518 {offsets = [0, 64], sizes = [8, 64], strides = [1, 1]} : vector<8x256xf32> to vector<8x64xf32>
    %526 = arith.negf %525 : vector<8x64xf32>
    %527 = math.exp %526 : vector<8x64xf32>
    %cst_112 = arith.constant 1.000000e+00 : f32
    %528 = vector.broadcast %cst_112 : f32 to vector<8x64xf32>
    %529 = arith.addf %528, %527 : vector<8x64xf32>
    %530 = arith.divf %528, %529 : vector<8x64xf32>
    %531 = vector.extract_strided_slice %518 {offsets = [0, 128], sizes = [8, 64], strides = [1, 1]} : vector<8x256xf32> to vector<8x64xf32>
    %532 = math.tanh %531 : vector<8x64xf32>
    %533 = vector.extract_strided_slice %518 {offsets = [0, 192], sizes = [8, 64], strides = [1, 1]} : vector<8x256xf32> to vector<8x64xf32>
    %534 = arith.negf %533 : vector<8x64xf32>
    %535 = math.exp %534 : vector<8x64xf32>
    %cst_113 = arith.constant 1.000000e+00 : f32
    %536 = vector.broadcast %cst_113 : f32 to vector<8x64xf32>
    %537 = arith.addf %536, %535 : vector<8x64xf32>
    %538 = arith.divf %536, %537 : vector<8x64xf32>
    %539 = arith.mulf %530, %478 : vector<8x64xf32>
    %540 = arith.mulf %524, %532 : vector<8x64xf32>
    %541 = arith.addf %539, %540 : vector<8x64xf32>
    %542 = math.tanh %541 : vector<8x64xf32>
    %543 = arith.mulf %538, %542 : vector<8x64xf32>
    %cst_114 = arith.constant dense<0.000000e+00> : vector<8x256xf32>
    %544 = tpu.matmul %543, %3, %cst_114 {dimension_numbers = #tpu.dot_dimension_numbers<[1], [0], [0], [1], [0, 0, 1, 1], [], []>} : vector<8x64xf32>, vector<64x256xf32>, vector<8x256xf32> -> vector<8x256xf32>
    %cst_115 = arith.constant dense<0.000000e+00> : vector<8x256xf32>
    %545 = tpu.matmul %510, %4, %cst_115 {dimension_numbers = #tpu.dot_dimension_numbers<[1], [0], [0], [1], [0, 0, 1, 1], [], []>} : vector<8x64xf32>, vector<64x256xf32>, vector<8x256xf32> -> vector<8x256xf32>
    %546 = arith.addf %544, %545 : vector<8x256xf32>
    %547 = vector.broadcast %5 : vector<1x256xf32> to vector<8x256xf32>
    %548 = arith.addf %546, %547 : vector<8x256xf32>
    %549 = vector.extract_strided_slice %548 {offsets = [0, 0], sizes = [8, 64], strides = [1, 1]} : vector<8x256xf32> to vector<8x64xf32>
    %550 = arith.negf %549 : vector<8x64xf32>
    %551 = math.exp %550 : vector<8x64xf32>
    %cst_116 = arith.constant 1.000000e+00 : f32
    %552 = vector.broadcast %cst_116 : f32 to vector<8x64xf32>
    %553 = arith.addf %552, %551 : vector<8x64xf32>
    %554 = arith.divf %552, %553 : vector<8x64xf32>
    %555 = vector.extract_strided_slice %548 {offsets = [0, 64], sizes = [8, 64], strides = [1, 1]} : vector<8x256xf32> to vector<8x64xf32>
    %556 = arith.negf %555 : vector<8x64xf32>
    %557 = math.exp %556 : vector<8x64xf32>
    %cst_117 = arith.constant 1.000000e+00 : f32
    %558 = vector.broadcast %cst_117 : f32 to vector<8x64xf32>
    %559 = arith.addf %558, %557 : vector<8x64xf32>
    %560 = arith.divf %558, %559 : vector<8x64xf32>
    %561 = vector.extract_strided_slice %548 {offsets = [0, 128], sizes = [8, 64], strides = [1, 1]} : vector<8x256xf32> to vector<8x64xf32>
    %562 = math.tanh %561 : vector<8x64xf32>
    %563 = vector.extract_strided_slice %548 {offsets = [0, 192], sizes = [8, 64], strides = [1, 1]} : vector<8x256xf32> to vector<8x64xf32>
    %564 = arith.negf %563 : vector<8x64xf32>
    %565 = math.exp %564 : vector<8x64xf32>
    %cst_118 = arith.constant 1.000000e+00 : f32
    %566 = vector.broadcast %cst_118 : f32 to vector<8x64xf32>
    %567 = arith.addf %566, %565 : vector<8x64xf32>
    %568 = arith.divf %566, %567 : vector<8x64xf32>
    %569 = arith.mulf %560, %508 : vector<8x64xf32>
    %570 = arith.mulf %554, %562 : vector<8x64xf32>
    %571 = arith.addf %569, %570 : vector<8x64xf32>
    %572 = math.tanh %571 : vector<8x64xf32>
    %573 = arith.mulf %568, %572 : vector<8x64xf32>
    %c9_i32 = arith.constant 9 : i32
    %574 = arith.index_cast %c9_i32 : i32 to index
    %c0_119 = arith.constant 0 : index
    %c0_120 = arith.constant 0 : index
    %575 = vector.load %arg1[%574, %c0_119, %c0_120] : memref<16x8x8xf32, #tpu.memory_space<vmem>>, vector<1x8x8xf32>
    %576 = vector.shape_cast %575 : vector<1x8x8xf32> to vector<8x8xf32>
    %cst_121 = arith.constant dense<0.000000e+00> : vector<8x256xf32>
    %577 = tpu.matmul %576, %0, %cst_121 {dimension_numbers = #tpu.dot_dimension_numbers<[1], [0], [0], [1], [0, 0, 1, 1], [], []>} : vector<8x8xf32>, vector<8x256xf32>, vector<8x256xf32> -> vector<8x256xf32>
    %cst_122 = arith.constant dense<0.000000e+00> : vector<8x256xf32>
    %578 = tpu.matmul %543, %1, %cst_122 {dimension_numbers = #tpu.dot_dimension_numbers<[1], [0], [0], [1], [0, 0, 1, 1], [], []>} : vector<8x64xf32>, vector<64x256xf32>, vector<8x256xf32> -> vector<8x256xf32>
    %579 = arith.addf %577, %578 : vector<8x256xf32>
    %580 = vector.broadcast %2 : vector<1x256xf32> to vector<8x256xf32>
    %581 = arith.addf %579, %580 : vector<8x256xf32>
    %582 = vector.extract_strided_slice %581 {offsets = [0, 0], sizes = [8, 64], strides = [1, 1]} : vector<8x256xf32> to vector<8x64xf32>
    %583 = arith.negf %582 : vector<8x64xf32>
    %584 = math.exp %583 : vector<8x64xf32>
    %cst_123 = arith.constant 1.000000e+00 : f32
    %585 = vector.broadcast %cst_123 : f32 to vector<8x64xf32>
    %586 = arith.addf %585, %584 : vector<8x64xf32>
    %587 = arith.divf %585, %586 : vector<8x64xf32>
    %588 = vector.extract_strided_slice %581 {offsets = [0, 64], sizes = [8, 64], strides = [1, 1]} : vector<8x256xf32> to vector<8x64xf32>
    %589 = arith.negf %588 : vector<8x64xf32>
    %590 = math.exp %589 : vector<8x64xf32>
    %cst_124 = arith.constant 1.000000e+00 : f32
    %591 = vector.broadcast %cst_124 : f32 to vector<8x64xf32>
    %592 = arith.addf %591, %590 : vector<8x64xf32>
    %593 = arith.divf %591, %592 : vector<8x64xf32>
    %594 = vector.extract_strided_slice %581 {offsets = [0, 128], sizes = [8, 64], strides = [1, 1]} : vector<8x256xf32> to vector<8x64xf32>
    %595 = math.tanh %594 : vector<8x64xf32>
    %596 = vector.extract_strided_slice %581 {offsets = [0, 192], sizes = [8, 64], strides = [1, 1]} : vector<8x256xf32> to vector<8x64xf32>
    %597 = arith.negf %596 : vector<8x64xf32>
    %598 = math.exp %597 : vector<8x64xf32>
    %cst_125 = arith.constant 1.000000e+00 : f32
    %599 = vector.broadcast %cst_125 : f32 to vector<8x64xf32>
    %600 = arith.addf %599, %598 : vector<8x64xf32>
    %601 = arith.divf %599, %600 : vector<8x64xf32>
    %602 = arith.mulf %593, %541 : vector<8x64xf32>
    %603 = arith.mulf %587, %595 : vector<8x64xf32>
    %604 = arith.addf %602, %603 : vector<8x64xf32>
    %605 = math.tanh %604 : vector<8x64xf32>
    %606 = arith.mulf %601, %605 : vector<8x64xf32>
    %cst_126 = arith.constant dense<0.000000e+00> : vector<8x256xf32>
    %607 = tpu.matmul %606, %3, %cst_126 {dimension_numbers = #tpu.dot_dimension_numbers<[1], [0], [0], [1], [0, 0, 1, 1], [], []>} : vector<8x64xf32>, vector<64x256xf32>, vector<8x256xf32> -> vector<8x256xf32>
    %cst_127 = arith.constant dense<0.000000e+00> : vector<8x256xf32>
    %608 = tpu.matmul %573, %4, %cst_127 {dimension_numbers = #tpu.dot_dimension_numbers<[1], [0], [0], [1], [0, 0, 1, 1], [], []>} : vector<8x64xf32>, vector<64x256xf32>, vector<8x256xf32> -> vector<8x256xf32>
    %609 = arith.addf %607, %608 : vector<8x256xf32>
    %610 = vector.broadcast %5 : vector<1x256xf32> to vector<8x256xf32>
    %611 = arith.addf %609, %610 : vector<8x256xf32>
    %612 = vector.extract_strided_slice %611 {offsets = [0, 0], sizes = [8, 64], strides = [1, 1]} : vector<8x256xf32> to vector<8x64xf32>
    %613 = arith.negf %612 : vector<8x64xf32>
    %614 = math.exp %613 : vector<8x64xf32>
    %cst_128 = arith.constant 1.000000e+00 : f32
    %615 = vector.broadcast %cst_128 : f32 to vector<8x64xf32>
    %616 = arith.addf %615, %614 : vector<8x64xf32>
    %617 = arith.divf %615, %616 : vector<8x64xf32>
    %618 = vector.extract_strided_slice %611 {offsets = [0, 64], sizes = [8, 64], strides = [1, 1]} : vector<8x256xf32> to vector<8x64xf32>
    %619 = arith.negf %618 : vector<8x64xf32>
    %620 = math.exp %619 : vector<8x64xf32>
    %cst_129 = arith.constant 1.000000e+00 : f32
    %621 = vector.broadcast %cst_129 : f32 to vector<8x64xf32>
    %622 = arith.addf %621, %620 : vector<8x64xf32>
    %623 = arith.divf %621, %622 : vector<8x64xf32>
    %624 = vector.extract_strided_slice %611 {offsets = [0, 128], sizes = [8, 64], strides = [1, 1]} : vector<8x256xf32> to vector<8x64xf32>
    %625 = math.tanh %624 : vector<8x64xf32>
    %626 = vector.extract_strided_slice %611 {offsets = [0, 192], sizes = [8, 64], strides = [1, 1]} : vector<8x256xf32> to vector<8x64xf32>
    %627 = arith.negf %626 : vector<8x64xf32>
    %628 = math.exp %627 : vector<8x64xf32>
    %cst_130 = arith.constant 1.000000e+00 : f32
    %629 = vector.broadcast %cst_130 : f32 to vector<8x64xf32>
    %630 = arith.addf %629, %628 : vector<8x64xf32>
    %631 = arith.divf %629, %630 : vector<8x64xf32>
    %632 = arith.mulf %623, %571 : vector<8x64xf32>
    %633 = arith.mulf %617, %625 : vector<8x64xf32>
    %634 = arith.addf %632, %633 : vector<8x64xf32>
    %635 = math.tanh %634 : vector<8x64xf32>
    %636 = arith.mulf %631, %635 : vector<8x64xf32>
    %c10_i32 = arith.constant 10 : i32
    %637 = arith.index_cast %c10_i32 : i32 to index
    %c0_131 = arith.constant 0 : index
    %c0_132 = arith.constant 0 : index
    %638 = vector.load %arg1[%637, %c0_131, %c0_132] : memref<16x8x8xf32, #tpu.memory_space<vmem>>, vector<1x8x8xf32>
    %639 = vector.shape_cast %638 : vector<1x8x8xf32> to vector<8x8xf32>
    %cst_133 = arith.constant dense<0.000000e+00> : vector<8x256xf32>
    %640 = tpu.matmul %639, %0, %cst_133 {dimension_numbers = #tpu.dot_dimension_numbers<[1], [0], [0], [1], [0, 0, 1, 1], [], []>} : vector<8x8xf32>, vector<8x256xf32>, vector<8x256xf32> -> vector<8x256xf32>
    %cst_134 = arith.constant dense<0.000000e+00> : vector<8x256xf32>
    %641 = tpu.matmul %606, %1, %cst_134 {dimension_numbers = #tpu.dot_dimension_numbers<[1], [0], [0], [1], [0, 0, 1, 1], [], []>} : vector<8x64xf32>, vector<64x256xf32>, vector<8x256xf32> -> vector<8x256xf32>
    %642 = arith.addf %640, %641 : vector<8x256xf32>
    %643 = vector.broadcast %2 : vector<1x256xf32> to vector<8x256xf32>
    %644 = arith.addf %642, %643 : vector<8x256xf32>
    %645 = vector.extract_strided_slice %644 {offsets = [0, 0], sizes = [8, 64], strides = [1, 1]} : vector<8x256xf32> to vector<8x64xf32>
    %646 = arith.negf %645 : vector<8x64xf32>
    %647 = math.exp %646 : vector<8x64xf32>
    %cst_135 = arith.constant 1.000000e+00 : f32
    %648 = vector.broadcast %cst_135 : f32 to vector<8x64xf32>
    %649 = arith.addf %648, %647 : vector<8x64xf32>
    %650 = arith.divf %648, %649 : vector<8x64xf32>
    %651 = vector.extract_strided_slice %644 {offsets = [0, 64], sizes = [8, 64], strides = [1, 1]} : vector<8x256xf32> to vector<8x64xf32>
    %652 = arith.negf %651 : vector<8x64xf32>
    %653 = math.exp %652 : vector<8x64xf32>
    %cst_136 = arith.constant 1.000000e+00 : f32
    %654 = vector.broadcast %cst_136 : f32 to vector<8x64xf32>
    %655 = arith.addf %654, %653 : vector<8x64xf32>
    %656 = arith.divf %654, %655 : vector<8x64xf32>
    %657 = vector.extract_strided_slice %644 {offsets = [0, 128], sizes = [8, 64], strides = [1, 1]} : vector<8x256xf32> to vector<8x64xf32>
    %658 = math.tanh %657 : vector<8x64xf32>
    %659 = vector.extract_strided_slice %644 {offsets = [0, 192], sizes = [8, 64], strides = [1, 1]} : vector<8x256xf32> to vector<8x64xf32>
    %660 = arith.negf %659 : vector<8x64xf32>
    %661 = math.exp %660 : vector<8x64xf32>
    %cst_137 = arith.constant 1.000000e+00 : f32
    %662 = vector.broadcast %cst_137 : f32 to vector<8x64xf32>
    %663 = arith.addf %662, %661 : vector<8x64xf32>
    %664 = arith.divf %662, %663 : vector<8x64xf32>
    %665 = arith.mulf %656, %604 : vector<8x64xf32>
    %666 = arith.mulf %650, %658 : vector<8x64xf32>
    %667 = arith.addf %665, %666 : vector<8x64xf32>
    %668 = math.tanh %667 : vector<8x64xf32>
    %669 = arith.mulf %664, %668 : vector<8x64xf32>
    %cst_138 = arith.constant dense<0.000000e+00> : vector<8x256xf32>
    %670 = tpu.matmul %669, %3, %cst_138 {dimension_numbers = #tpu.dot_dimension_numbers<[1], [0], [0], [1], [0, 0, 1, 1], [], []>} : vector<8x64xf32>, vector<64x256xf32>, vector<8x256xf32> -> vector<8x256xf32>
    %cst_139 = arith.constant dense<0.000000e+00> : vector<8x256xf32>
    %671 = tpu.matmul %636, %4, %cst_139 {dimension_numbers = #tpu.dot_dimension_numbers<[1], [0], [0], [1], [0, 0, 1, 1], [], []>} : vector<8x64xf32>, vector<64x256xf32>, vector<8x256xf32> -> vector<8x256xf32>
    %672 = arith.addf %670, %671 : vector<8x256xf32>
    %673 = vector.broadcast %5 : vector<1x256xf32> to vector<8x256xf32>
    %674 = arith.addf %672, %673 : vector<8x256xf32>
    %675 = vector.extract_strided_slice %674 {offsets = [0, 0], sizes = [8, 64], strides = [1, 1]} : vector<8x256xf32> to vector<8x64xf32>
    %676 = arith.negf %675 : vector<8x64xf32>
    %677 = math.exp %676 : vector<8x64xf32>
    %cst_140 = arith.constant 1.000000e+00 : f32
    %678 = vector.broadcast %cst_140 : f32 to vector<8x64xf32>
    %679 = arith.addf %678, %677 : vector<8x64xf32>
    %680 = arith.divf %678, %679 : vector<8x64xf32>
    %681 = vector.extract_strided_slice %674 {offsets = [0, 64], sizes = [8, 64], strides = [1, 1]} : vector<8x256xf32> to vector<8x64xf32>
    %682 = arith.negf %681 : vector<8x64xf32>
    %683 = math.exp %682 : vector<8x64xf32>
    %cst_141 = arith.constant 1.000000e+00 : f32
    %684 = vector.broadcast %cst_141 : f32 to vector<8x64xf32>
    %685 = arith.addf %684, %683 : vector<8x64xf32>
    %686 = arith.divf %684, %685 : vector<8x64xf32>
    %687 = vector.extract_strided_slice %674 {offsets = [0, 128], sizes = [8, 64], strides = [1, 1]} : vector<8x256xf32> to vector<8x64xf32>
    %688 = math.tanh %687 : vector<8x64xf32>
    %689 = vector.extract_strided_slice %674 {offsets = [0, 192], sizes = [8, 64], strides = [1, 1]} : vector<8x256xf32> to vector<8x64xf32>
    %690 = arith.negf %689 : vector<8x64xf32>
    %691 = math.exp %690 : vector<8x64xf32>
    %cst_142 = arith.constant 1.000000e+00 : f32
    %692 = vector.broadcast %cst_142 : f32 to vector<8x64xf32>
    %693 = arith.addf %692, %691 : vector<8x64xf32>
    %694 = arith.divf %692, %693 : vector<8x64xf32>
    %695 = arith.mulf %686, %634 : vector<8x64xf32>
    %696 = arith.mulf %680, %688 : vector<8x64xf32>
    %697 = arith.addf %695, %696 : vector<8x64xf32>
    %698 = math.tanh %697 : vector<8x64xf32>
    %699 = arith.mulf %694, %698 : vector<8x64xf32>
    %c11_i32 = arith.constant 11 : i32
    %700 = arith.index_cast %c11_i32 : i32 to index
    %c0_143 = arith.constant 0 : index
    %c0_144 = arith.constant 0 : index
    %701 = vector.load %arg1[%700, %c0_143, %c0_144] : memref<16x8x8xf32, #tpu.memory_space<vmem>>, vector<1x8x8xf32>
    %702 = vector.shape_cast %701 : vector<1x8x8xf32> to vector<8x8xf32>
    %cst_145 = arith.constant dense<0.000000e+00> : vector<8x256xf32>
    %703 = tpu.matmul %702, %0, %cst_145 {dimension_numbers = #tpu.dot_dimension_numbers<[1], [0], [0], [1], [0, 0, 1, 1], [], []>} : vector<8x8xf32>, vector<8x256xf32>, vector<8x256xf32> -> vector<8x256xf32>
    %cst_146 = arith.constant dense<0.000000e+00> : vector<8x256xf32>
    %704 = tpu.matmul %669, %1, %cst_146 {dimension_numbers = #tpu.dot_dimension_numbers<[1], [0], [0], [1], [0, 0, 1, 1], [], []>} : vector<8x64xf32>, vector<64x256xf32>, vector<8x256xf32> -> vector<8x256xf32>
    %705 = arith.addf %703, %704 : vector<8x256xf32>
    %706 = vector.broadcast %2 : vector<1x256xf32> to vector<8x256xf32>
    %707 = arith.addf %705, %706 : vector<8x256xf32>
    %708 = vector.extract_strided_slice %707 {offsets = [0, 0], sizes = [8, 64], strides = [1, 1]} : vector<8x256xf32> to vector<8x64xf32>
    %709 = arith.negf %708 : vector<8x64xf32>
    %710 = math.exp %709 : vector<8x64xf32>
    %cst_147 = arith.constant 1.000000e+00 : f32
    %711 = vector.broadcast %cst_147 : f32 to vector<8x64xf32>
    %712 = arith.addf %711, %710 : vector<8x64xf32>
    %713 = arith.divf %711, %712 : vector<8x64xf32>
    %714 = vector.extract_strided_slice %707 {offsets = [0, 64], sizes = [8, 64], strides = [1, 1]} : vector<8x256xf32> to vector<8x64xf32>
    %715 = arith.negf %714 : vector<8x64xf32>
    %716 = math.exp %715 : vector<8x64xf32>
    %cst_148 = arith.constant 1.000000e+00 : f32
    %717 = vector.broadcast %cst_148 : f32 to vector<8x64xf32>
    %718 = arith.addf %717, %716 : vector<8x64xf32>
    %719 = arith.divf %717, %718 : vector<8x64xf32>
    %720 = vector.extract_strided_slice %707 {offsets = [0, 128], sizes = [8, 64], strides = [1, 1]} : vector<8x256xf32> to vector<8x64xf32>
    %721 = math.tanh %720 : vector<8x64xf32>
    %722 = vector.extract_strided_slice %707 {offsets = [0, 192], sizes = [8, 64], strides = [1, 1]} : vector<8x256xf32> to vector<8x64xf32>
    %723 = arith.negf %722 : vector<8x64xf32>
    %724 = math.exp %723 : vector<8x64xf32>
    %cst_149 = arith.constant 1.000000e+00 : f32
    %725 = vector.broadcast %cst_149 : f32 to vector<8x64xf32>
    %726 = arith.addf %725, %724 : vector<8x64xf32>
    %727 = arith.divf %725, %726 : vector<8x64xf32>
    %728 = arith.mulf %719, %667 : vector<8x64xf32>
    %729 = arith.mulf %713, %721 : vector<8x64xf32>
    %730 = arith.addf %728, %729 : vector<8x64xf32>
    %731 = math.tanh %730 : vector<8x64xf32>
    %732 = arith.mulf %727, %731 : vector<8x64xf32>
    %cst_150 = arith.constant dense<0.000000e+00> : vector<8x256xf32>
    %733 = tpu.matmul %732, %3, %cst_150 {dimension_numbers = #tpu.dot_dimension_numbers<[1], [0], [0], [1], [0, 0, 1, 1], [], []>} : vector<8x64xf32>, vector<64x256xf32>, vector<8x256xf32> -> vector<8x256xf32>
    %cst_151 = arith.constant dense<0.000000e+00> : vector<8x256xf32>
    %734 = tpu.matmul %699, %4, %cst_151 {dimension_numbers = #tpu.dot_dimension_numbers<[1], [0], [0], [1], [0, 0, 1, 1], [], []>} : vector<8x64xf32>, vector<64x256xf32>, vector<8x256xf32> -> vector<8x256xf32>
    %735 = arith.addf %733, %734 : vector<8x256xf32>
    %736 = vector.broadcast %5 : vector<1x256xf32> to vector<8x256xf32>
    %737 = arith.addf %735, %736 : vector<8x256xf32>
    %738 = vector.extract_strided_slice %737 {offsets = [0, 0], sizes = [8, 64], strides = [1, 1]} : vector<8x256xf32> to vector<8x64xf32>
    %739 = arith.negf %738 : vector<8x64xf32>
    %740 = math.exp %739 : vector<8x64xf32>
    %cst_152 = arith.constant 1.000000e+00 : f32
    %741 = vector.broadcast %cst_152 : f32 to vector<8x64xf32>
    %742 = arith.addf %741, %740 : vector<8x64xf32>
    %743 = arith.divf %741, %742 : vector<8x64xf32>
    %744 = vector.extract_strided_slice %737 {offsets = [0, 64], sizes = [8, 64], strides = [1, 1]} : vector<8x256xf32> to vector<8x64xf32>
    %745 = arith.negf %744 : vector<8x64xf32>
    %746 = math.exp %745 : vector<8x64xf32>
    %cst_153 = arith.constant 1.000000e+00 : f32
    %747 = vector.broadcast %cst_153 : f32 to vector<8x64xf32>
    %748 = arith.addf %747, %746 : vector<8x64xf32>
    %749 = arith.divf %747, %748 : vector<8x64xf32>
    %750 = vector.extract_strided_slice %737 {offsets = [0, 128], sizes = [8, 64], strides = [1, 1]} : vector<8x256xf32> to vector<8x64xf32>
    %751 = math.tanh %750 : vector<8x64xf32>
    %752 = vector.extract_strided_slice %737 {offsets = [0, 192], sizes = [8, 64], strides = [1, 1]} : vector<8x256xf32> to vector<8x64xf32>
    %753 = arith.negf %752 : vector<8x64xf32>
    %754 = math.exp %753 : vector<8x64xf32>
    %cst_154 = arith.constant 1.000000e+00 : f32
    %755 = vector.broadcast %cst_154 : f32 to vector<8x64xf32>
    %756 = arith.addf %755, %754 : vector<8x64xf32>
    %757 = arith.divf %755, %756 : vector<8x64xf32>
    %758 = arith.mulf %749, %697 : vector<8x64xf32>
    %759 = arith.mulf %743, %751 : vector<8x64xf32>
    %760 = arith.addf %758, %759 : vector<8x64xf32>
    %761 = math.tanh %760 : vector<8x64xf32>
    %762 = arith.mulf %757, %761 : vector<8x64xf32>
    %c12_i32 = arith.constant 12 : i32
    %763 = arith.index_cast %c12_i32 : i32 to index
    %c0_155 = arith.constant 0 : index
    %c0_156 = arith.constant 0 : index
    %764 = vector.load %arg1[%763, %c0_155, %c0_156] : memref<16x8x8xf32, #tpu.memory_space<vmem>>, vector<1x8x8xf32>
    %765 = vector.shape_cast %764 : vector<1x8x8xf32> to vector<8x8xf32>
    %cst_157 = arith.constant dense<0.000000e+00> : vector<8x256xf32>
    %766 = tpu.matmul %765, %0, %cst_157 {dimension_numbers = #tpu.dot_dimension_numbers<[1], [0], [0], [1], [0, 0, 1, 1], [], []>} : vector<8x8xf32>, vector<8x256xf32>, vector<8x256xf32> -> vector<8x256xf32>
    %cst_158 = arith.constant dense<0.000000e+00> : vector<8x256xf32>
    %767 = tpu.matmul %732, %1, %cst_158 {dimension_numbers = #tpu.dot_dimension_numbers<[1], [0], [0], [1], [0, 0, 1, 1], [], []>} : vector<8x64xf32>, vector<64x256xf32>, vector<8x256xf32> -> vector<8x256xf32>
    %768 = arith.addf %766, %767 : vector<8x256xf32>
    %769 = vector.broadcast %2 : vector<1x256xf32> to vector<8x256xf32>
    %770 = arith.addf %768, %769 : vector<8x256xf32>
    %771 = vector.extract_strided_slice %770 {offsets = [0, 0], sizes = [8, 64], strides = [1, 1]} : vector<8x256xf32> to vector<8x64xf32>
    %772 = arith.negf %771 : vector<8x64xf32>
    %773 = math.exp %772 : vector<8x64xf32>
    %cst_159 = arith.constant 1.000000e+00 : f32
    %774 = vector.broadcast %cst_159 : f32 to vector<8x64xf32>
    %775 = arith.addf %774, %773 : vector<8x64xf32>
    %776 = arith.divf %774, %775 : vector<8x64xf32>
    %777 = vector.extract_strided_slice %770 {offsets = [0, 64], sizes = [8, 64], strides = [1, 1]} : vector<8x256xf32> to vector<8x64xf32>
    %778 = arith.negf %777 : vector<8x64xf32>
    %779 = math.exp %778 : vector<8x64xf32>
    %cst_160 = arith.constant 1.000000e+00 : f32
    %780 = vector.broadcast %cst_160 : f32 to vector<8x64xf32>
    %781 = arith.addf %780, %779 : vector<8x64xf32>
    %782 = arith.divf %780, %781 : vector<8x64xf32>
    %783 = vector.extract_strided_slice %770 {offsets = [0, 128], sizes = [8, 64], strides = [1, 1]} : vector<8x256xf32> to vector<8x64xf32>
    %784 = math.tanh %783 : vector<8x64xf32>
    %785 = vector.extract_strided_slice %770 {offsets = [0, 192], sizes = [8, 64], strides = [1, 1]} : vector<8x256xf32> to vector<8x64xf32>
    %786 = arith.negf %785 : vector<8x64xf32>
    %787 = math.exp %786 : vector<8x64xf32>
    %cst_161 = arith.constant 1.000000e+00 : f32
    %788 = vector.broadcast %cst_161 : f32 to vector<8x64xf32>
    %789 = arith.addf %788, %787 : vector<8x64xf32>
    %790 = arith.divf %788, %789 : vector<8x64xf32>
    %791 = arith.mulf %782, %730 : vector<8x64xf32>
    %792 = arith.mulf %776, %784 : vector<8x64xf32>
    %793 = arith.addf %791, %792 : vector<8x64xf32>
    %794 = math.tanh %793 : vector<8x64xf32>
    %795 = arith.mulf %790, %794 : vector<8x64xf32>
    %cst_162 = arith.constant dense<0.000000e+00> : vector<8x256xf32>
    %796 = tpu.matmul %795, %3, %cst_162 {dimension_numbers = #tpu.dot_dimension_numbers<[1], [0], [0], [1], [0, 0, 1, 1], [], []>} : vector<8x64xf32>, vector<64x256xf32>, vector<8x256xf32> -> vector<8x256xf32>
    %cst_163 = arith.constant dense<0.000000e+00> : vector<8x256xf32>
    %797 = tpu.matmul %762, %4, %cst_163 {dimension_numbers = #tpu.dot_dimension_numbers<[1], [0], [0], [1], [0, 0, 1, 1], [], []>} : vector<8x64xf32>, vector<64x256xf32>, vector<8x256xf32> -> vector<8x256xf32>
    %798 = arith.addf %796, %797 : vector<8x256xf32>
    %799 = vector.broadcast %5 : vector<1x256xf32> to vector<8x256xf32>
    %800 = arith.addf %798, %799 : vector<8x256xf32>
    %801 = vector.extract_strided_slice %800 {offsets = [0, 0], sizes = [8, 64], strides = [1, 1]} : vector<8x256xf32> to vector<8x64xf32>
    %802 = arith.negf %801 : vector<8x64xf32>
    %803 = math.exp %802 : vector<8x64xf32>
    %cst_164 = arith.constant 1.000000e+00 : f32
    %804 = vector.broadcast %cst_164 : f32 to vector<8x64xf32>
    %805 = arith.addf %804, %803 : vector<8x64xf32>
    %806 = arith.divf %804, %805 : vector<8x64xf32>
    %807 = vector.extract_strided_slice %800 {offsets = [0, 64], sizes = [8, 64], strides = [1, 1]} : vector<8x256xf32> to vector<8x64xf32>
    %808 = arith.negf %807 : vector<8x64xf32>
    %809 = math.exp %808 : vector<8x64xf32>
    %cst_165 = arith.constant 1.000000e+00 : f32
    %810 = vector.broadcast %cst_165 : f32 to vector<8x64xf32>
    %811 = arith.addf %810, %809 : vector<8x64xf32>
    %812 = arith.divf %810, %811 : vector<8x64xf32>
    %813 = vector.extract_strided_slice %800 {offsets = [0, 128], sizes = [8, 64], strides = [1, 1]} : vector<8x256xf32> to vector<8x64xf32>
    %814 = math.tanh %813 : vector<8x64xf32>
    %815 = vector.extract_strided_slice %800 {offsets = [0, 192], sizes = [8, 64], strides = [1, 1]} : vector<8x256xf32> to vector<8x64xf32>
    %816 = arith.negf %815 : vector<8x64xf32>
    %817 = math.exp %816 : vector<8x64xf32>
    %cst_166 = arith.constant 1.000000e+00 : f32
    %818 = vector.broadcast %cst_166 : f32 to vector<8x64xf32>
    %819 = arith.addf %818, %817 : vector<8x64xf32>
    %820 = arith.divf %818, %819 : vector<8x64xf32>
    %821 = arith.mulf %812, %760 : vector<8x64xf32>
    %822 = arith.mulf %806, %814 : vector<8x64xf32>
    %823 = arith.addf %821, %822 : vector<8x64xf32>
    %824 = math.tanh %823 : vector<8x64xf32>
    %825 = arith.mulf %820, %824 : vector<8x64xf32>
    %c13_i32 = arith.constant 13 : i32
    %826 = arith.index_cast %c13_i32 : i32 to index
    %c0_167 = arith.constant 0 : index
    %c0_168 = arith.constant 0 : index
    %827 = vector.load %arg1[%826, %c0_167, %c0_168] : memref<16x8x8xf32, #tpu.memory_space<vmem>>, vector<1x8x8xf32>
    %828 = vector.shape_cast %827 : vector<1x8x8xf32> to vector<8x8xf32>
    %cst_169 = arith.constant dense<0.000000e+00> : vector<8x256xf32>
    %829 = tpu.matmul %828, %0, %cst_169 {dimension_numbers = #tpu.dot_dimension_numbers<[1], [0], [0], [1], [0, 0, 1, 1], [], []>} : vector<8x8xf32>, vector<8x256xf32>, vector<8x256xf32> -> vector<8x256xf32>
    %cst_170 = arith.constant dense<0.000000e+00> : vector<8x256xf32>
    %830 = tpu.matmul %795, %1, %cst_170 {dimension_numbers = #tpu.dot_dimension_numbers<[1], [0], [0], [1], [0, 0, 1, 1], [], []>} : vector<8x64xf32>, vector<64x256xf32>, vector<8x256xf32> -> vector<8x256xf32>
    %831 = arith.addf %829, %830 : vector<8x256xf32>
    %832 = vector.broadcast %2 : vector<1x256xf32> to vector<8x256xf32>
    %833 = arith.addf %831, %832 : vector<8x256xf32>
    %834 = vector.extract_strided_slice %833 {offsets = [0, 0], sizes = [8, 64], strides = [1, 1]} : vector<8x256xf32> to vector<8x64xf32>
    %835 = arith.negf %834 : vector<8x64xf32>
    %836 = math.exp %835 : vector<8x64xf32>
    %cst_171 = arith.constant 1.000000e+00 : f32
    %837 = vector.broadcast %cst_171 : f32 to vector<8x64xf32>
    %838 = arith.addf %837, %836 : vector<8x64xf32>
    %839 = arith.divf %837, %838 : vector<8x64xf32>
    %840 = vector.extract_strided_slice %833 {offsets = [0, 64], sizes = [8, 64], strides = [1, 1]} : vector<8x256xf32> to vector<8x64xf32>
    %841 = arith.negf %840 : vector<8x64xf32>
    %842 = math.exp %841 : vector<8x64xf32>
    %cst_172 = arith.constant 1.000000e+00 : f32
    %843 = vector.broadcast %cst_172 : f32 to vector<8x64xf32>
    %844 = arith.addf %843, %842 : vector<8x64xf32>
    %845 = arith.divf %843, %844 : vector<8x64xf32>
    %846 = vector.extract_strided_slice %833 {offsets = [0, 128], sizes = [8, 64], strides = [1, 1]} : vector<8x256xf32> to vector<8x64xf32>
    %847 = math.tanh %846 : vector<8x64xf32>
    %848 = vector.extract_strided_slice %833 {offsets = [0, 192], sizes = [8, 64], strides = [1, 1]} : vector<8x256xf32> to vector<8x64xf32>
    %849 = arith.negf %848 : vector<8x64xf32>
    %850 = math.exp %849 : vector<8x64xf32>
    %cst_173 = arith.constant 1.000000e+00 : f32
    %851 = vector.broadcast %cst_173 : f32 to vector<8x64xf32>
    %852 = arith.addf %851, %850 : vector<8x64xf32>
    %853 = arith.divf %851, %852 : vector<8x64xf32>
    %854 = arith.mulf %845, %793 : vector<8x64xf32>
    %855 = arith.mulf %839, %847 : vector<8x64xf32>
    %856 = arith.addf %854, %855 : vector<8x64xf32>
    %857 = math.tanh %856 : vector<8x64xf32>
    %858 = arith.mulf %853, %857 : vector<8x64xf32>
    %cst_174 = arith.constant dense<0.000000e+00> : vector<8x256xf32>
    %859 = tpu.matmul %858, %3, %cst_174 {dimension_numbers = #tpu.dot_dimension_numbers<[1], [0], [0], [1], [0, 0, 1, 1], [], []>} : vector<8x64xf32>, vector<64x256xf32>, vector<8x256xf32> -> vector<8x256xf32>
    %cst_175 = arith.constant dense<0.000000e+00> : vector<8x256xf32>
    %860 = tpu.matmul %825, %4, %cst_175 {dimension_numbers = #tpu.dot_dimension_numbers<[1], [0], [0], [1], [0, 0, 1, 1], [], []>} : vector<8x64xf32>, vector<64x256xf32>, vector<8x256xf32> -> vector<8x256xf32>
    %861 = arith.addf %859, %860 : vector<8x256xf32>
    %862 = vector.broadcast %5 : vector<1x256xf32> to vector<8x256xf32>
    %863 = arith.addf %861, %862 : vector<8x256xf32>
    %864 = vector.extract_strided_slice %863 {offsets = [0, 0], sizes = [8, 64], strides = [1, 1]} : vector<8x256xf32> to vector<8x64xf32>
    %865 = arith.negf %864 : vector<8x64xf32>
    %866 = math.exp %865 : vector<8x64xf32>
    %cst_176 = arith.constant 1.000000e+00 : f32
    %867 = vector.broadcast %cst_176 : f32 to vector<8x64xf32>
    %868 = arith.addf %867, %866 : vector<8x64xf32>
    %869 = arith.divf %867, %868 : vector<8x64xf32>
    %870 = vector.extract_strided_slice %863 {offsets = [0, 64], sizes = [8, 64], strides = [1, 1]} : vector<8x256xf32> to vector<8x64xf32>
    %871 = arith.negf %870 : vector<8x64xf32>
    %872 = math.exp %871 : vector<8x64xf32>
    %cst_177 = arith.constant 1.000000e+00 : f32
    %873 = vector.broadcast %cst_177 : f32 to vector<8x64xf32>
    %874 = arith.addf %873, %872 : vector<8x64xf32>
    %875 = arith.divf %873, %874 : vector<8x64xf32>
    %876 = vector.extract_strided_slice %863 {offsets = [0, 128], sizes = [8, 64], strides = [1, 1]} : vector<8x256xf32> to vector<8x64xf32>
    %877 = math.tanh %876 : vector<8x64xf32>
    %878 = vector.extract_strided_slice %863 {offsets = [0, 192], sizes = [8, 64], strides = [1, 1]} : vector<8x256xf32> to vector<8x64xf32>
    %879 = arith.negf %878 : vector<8x64xf32>
    %880 = math.exp %879 : vector<8x64xf32>
    %cst_178 = arith.constant 1.000000e+00 : f32
    %881 = vector.broadcast %cst_178 : f32 to vector<8x64xf32>
    %882 = arith.addf %881, %880 : vector<8x64xf32>
    %883 = arith.divf %881, %882 : vector<8x64xf32>
    %884 = arith.mulf %875, %823 : vector<8x64xf32>
    %885 = arith.mulf %869, %877 : vector<8x64xf32>
    %886 = arith.addf %884, %885 : vector<8x64xf32>
    %887 = math.tanh %886 : vector<8x64xf32>
    %888 = arith.mulf %883, %887 : vector<8x64xf32>
    %c14_i32 = arith.constant 14 : i32
    %889 = arith.index_cast %c14_i32 : i32 to index
    %c0_179 = arith.constant 0 : index
    %c0_180 = arith.constant 0 : index
    %890 = vector.load %arg1[%889, %c0_179, %c0_180] : memref<16x8x8xf32, #tpu.memory_space<vmem>>, vector<1x8x8xf32>
    %891 = vector.shape_cast %890 : vector<1x8x8xf32> to vector<8x8xf32>
    %cst_181 = arith.constant dense<0.000000e+00> : vector<8x256xf32>
    %892 = tpu.matmul %891, %0, %cst_181 {dimension_numbers = #tpu.dot_dimension_numbers<[1], [0], [0], [1], [0, 0, 1, 1], [], []>} : vector<8x8xf32>, vector<8x256xf32>, vector<8x256xf32> -> vector<8x256xf32>
    %cst_182 = arith.constant dense<0.000000e+00> : vector<8x256xf32>
    %893 = tpu.matmul %858, %1, %cst_182 {dimension_numbers = #tpu.dot_dimension_numbers<[1], [0], [0], [1], [0, 0, 1, 1], [], []>} : vector<8x64xf32>, vector<64x256xf32>, vector<8x256xf32> -> vector<8x256xf32>
    %894 = arith.addf %892, %893 : vector<8x256xf32>
    %895 = vector.broadcast %2 : vector<1x256xf32> to vector<8x256xf32>
    %896 = arith.addf %894, %895 : vector<8x256xf32>
    %897 = vector.extract_strided_slice %896 {offsets = [0, 0], sizes = [8, 64], strides = [1, 1]} : vector<8x256xf32> to vector<8x64xf32>
    %898 = arith.negf %897 : vector<8x64xf32>
    %899 = math.exp %898 : vector<8x64xf32>
    %cst_183 = arith.constant 1.000000e+00 : f32
    %900 = vector.broadcast %cst_183 : f32 to vector<8x64xf32>
    %901 = arith.addf %900, %899 : vector<8x64xf32>
    %902 = arith.divf %900, %901 : vector<8x64xf32>
    %903 = vector.extract_strided_slice %896 {offsets = [0, 64], sizes = [8, 64], strides = [1, 1]} : vector<8x256xf32> to vector<8x64xf32>
    %904 = arith.negf %903 : vector<8x64xf32>
    %905 = math.exp %904 : vector<8x64xf32>
    %cst_184 = arith.constant 1.000000e+00 : f32
    %906 = vector.broadcast %cst_184 : f32 to vector<8x64xf32>
    %907 = arith.addf %906, %905 : vector<8x64xf32>
    %908 = arith.divf %906, %907 : vector<8x64xf32>
    %909 = vector.extract_strided_slice %896 {offsets = [0, 128], sizes = [8, 64], strides = [1, 1]} : vector<8x256xf32> to vector<8x64xf32>
    %910 = math.tanh %909 : vector<8x64xf32>
    %911 = vector.extract_strided_slice %896 {offsets = [0, 192], sizes = [8, 64], strides = [1, 1]} : vector<8x256xf32> to vector<8x64xf32>
    %912 = arith.negf %911 : vector<8x64xf32>
    %913 = math.exp %912 : vector<8x64xf32>
    %cst_185 = arith.constant 1.000000e+00 : f32
    %914 = vector.broadcast %cst_185 : f32 to vector<8x64xf32>
    %915 = arith.addf %914, %913 : vector<8x64xf32>
    %916 = arith.divf %914, %915 : vector<8x64xf32>
    %917 = arith.mulf %908, %856 : vector<8x64xf32>
    %918 = arith.mulf %902, %910 : vector<8x64xf32>
    %919 = arith.addf %917, %918 : vector<8x64xf32>
    %920 = math.tanh %919 : vector<8x64xf32>
    %921 = arith.mulf %916, %920 : vector<8x64xf32>
    %cst_186 = arith.constant dense<0.000000e+00> : vector<8x256xf32>
    %922 = tpu.matmul %921, %3, %cst_186 {dimension_numbers = #tpu.dot_dimension_numbers<[1], [0], [0], [1], [0, 0, 1, 1], [], []>} : vector<8x64xf32>, vector<64x256xf32>, vector<8x256xf32> -> vector<8x256xf32>
    %cst_187 = arith.constant dense<0.000000e+00> : vector<8x256xf32>
    %923 = tpu.matmul %888, %4, %cst_187 {dimension_numbers = #tpu.dot_dimension_numbers<[1], [0], [0], [1], [0, 0, 1, 1], [], []>} : vector<8x64xf32>, vector<64x256xf32>, vector<8x256xf32> -> vector<8x256xf32>
    %924 = arith.addf %922, %923 : vector<8x256xf32>
    %925 = vector.broadcast %5 : vector<1x256xf32> to vector<8x256xf32>
    %926 = arith.addf %924, %925 : vector<8x256xf32>
    %927 = vector.extract_strided_slice %926 {offsets = [0, 0], sizes = [8, 64], strides = [1, 1]} : vector<8x256xf32> to vector<8x64xf32>
    %928 = arith.negf %927 : vector<8x64xf32>
    %929 = math.exp %928 : vector<8x64xf32>
    %cst_188 = arith.constant 1.000000e+00 : f32
    %930 = vector.broadcast %cst_188 : f32 to vector<8x64xf32>
    %931 = arith.addf %930, %929 : vector<8x64xf32>
    %932 = arith.divf %930, %931 : vector<8x64xf32>
    %933 = vector.extract_strided_slice %926 {offsets = [0, 64], sizes = [8, 64], strides = [1, 1]} : vector<8x256xf32> to vector<8x64xf32>
    %934 = arith.negf %933 : vector<8x64xf32>
    %935 = math.exp %934 : vector<8x64xf32>
    %cst_189 = arith.constant 1.000000e+00 : f32
    %936 = vector.broadcast %cst_189 : f32 to vector<8x64xf32>
    %937 = arith.addf %936, %935 : vector<8x64xf32>
    %938 = arith.divf %936, %937 : vector<8x64xf32>
    %939 = vector.extract_strided_slice %926 {offsets = [0, 128], sizes = [8, 64], strides = [1, 1]} : vector<8x256xf32> to vector<8x64xf32>
    %940 = math.tanh %939 : vector<8x64xf32>
    %941 = vector.extract_strided_slice %926 {offsets = [0, 192], sizes = [8, 64], strides = [1, 1]} : vector<8x256xf32> to vector<8x64xf32>
    %942 = arith.negf %941 : vector<8x64xf32>
    %943 = math.exp %942 : vector<8x64xf32>
    %cst_190 = arith.constant 1.000000e+00 : f32
    %944 = vector.broadcast %cst_190 : f32 to vector<8x64xf32>
    %945 = arith.addf %944, %943 : vector<8x64xf32>
    %946 = arith.divf %944, %945 : vector<8x64xf32>
    %947 = arith.mulf %938, %886 : vector<8x64xf32>
    %948 = arith.mulf %932, %940 : vector<8x64xf32>
    %949 = arith.addf %947, %948 : vector<8x64xf32>
    %950 = math.tanh %949 : vector<8x64xf32>
    %951 = arith.mulf %946, %950 : vector<8x64xf32>
    %c15_i32 = arith.constant 15 : i32
    %952 = arith.index_cast %c15_i32 : i32 to index
    %c0_191 = arith.constant 0 : index
    %c0_192 = arith.constant 0 : index
    %953 = vector.load %arg1[%952, %c0_191, %c0_192] : memref<16x8x8xf32, #tpu.memory_space<vmem>>, vector<1x8x8xf32>
    %954 = vector.shape_cast %953 : vector<1x8x8xf32> to vector<8x8xf32>
    %cst_193 = arith.constant dense<0.000000e+00> : vector<8x256xf32>
    %955 = tpu.matmul %954, %0, %cst_193 {dimension_numbers = #tpu.dot_dimension_numbers<[1], [0], [0], [1], [0, 0, 1, 1], [], []>} : vector<8x8xf32>, vector<8x256xf32>, vector<8x256xf32> -> vector<8x256xf32>
    %cst_194 = arith.constant dense<0.000000e+00> : vector<8x256xf32>
    %956 = tpu.matmul %921, %1, %cst_194 {dimension_numbers = #tpu.dot_dimension_numbers<[1], [0], [0], [1], [0, 0, 1, 1], [], []>} : vector<8x64xf32>, vector<64x256xf32>, vector<8x256xf32> -> vector<8x256xf32>
    %957 = arith.addf %955, %956 : vector<8x256xf32>
    %958 = vector.broadcast %2 : vector<1x256xf32> to vector<8x256xf32>
    %959 = arith.addf %957, %958 : vector<8x256xf32>
    %960 = vector.extract_strided_slice %959 {offsets = [0, 0], sizes = [8, 64], strides = [1, 1]} : vector<8x256xf32> to vector<8x64xf32>
    %961 = arith.negf %960 : vector<8x64xf32>
    %962 = math.exp %961 : vector<8x64xf32>
    %cst_195 = arith.constant 1.000000e+00 : f32
    %963 = vector.broadcast %cst_195 : f32 to vector<8x64xf32>
    %964 = arith.addf %963, %962 : vector<8x64xf32>
    %965 = arith.divf %963, %964 : vector<8x64xf32>
    %966 = vector.extract_strided_slice %959 {offsets = [0, 64], sizes = [8, 64], strides = [1, 1]} : vector<8x256xf32> to vector<8x64xf32>
    %967 = arith.negf %966 : vector<8x64xf32>
    %968 = math.exp %967 : vector<8x64xf32>
    %cst_196 = arith.constant 1.000000e+00 : f32
    %969 = vector.broadcast %cst_196 : f32 to vector<8x64xf32>
    %970 = arith.addf %969, %968 : vector<8x64xf32>
    %971 = arith.divf %969, %970 : vector<8x64xf32>
    %972 = vector.extract_strided_slice %959 {offsets = [0, 128], sizes = [8, 64], strides = [1, 1]} : vector<8x256xf32> to vector<8x64xf32>
    %973 = math.tanh %972 : vector<8x64xf32>
    %974 = vector.extract_strided_slice %959 {offsets = [0, 192], sizes = [8, 64], strides = [1, 1]} : vector<8x256xf32> to vector<8x64xf32>
    %975 = arith.negf %974 : vector<8x64xf32>
    %976 = math.exp %975 : vector<8x64xf32>
    %cst_197 = arith.constant 1.000000e+00 : f32
    %977 = vector.broadcast %cst_197 : f32 to vector<8x64xf32>
    %978 = arith.addf %977, %976 : vector<8x64xf32>
    %979 = arith.divf %977, %978 : vector<8x64xf32>
    %980 = arith.mulf %971, %919 : vector<8x64xf32>
    %981 = arith.mulf %965, %973 : vector<8x64xf32>
    %982 = arith.addf %980, %981 : vector<8x64xf32>
    %983 = math.tanh %982 : vector<8x64xf32>
    %984 = arith.mulf %979, %983 : vector<8x64xf32>
    %cst_198 = arith.constant dense<0.000000e+00> : vector<8x256xf32>
    %985 = tpu.matmul %984, %3, %cst_198 {dimension_numbers = #tpu.dot_dimension_numbers<[1], [0], [0], [1], [0, 0, 1, 1], [], []>} : vector<8x64xf32>, vector<64x256xf32>, vector<8x256xf32> -> vector<8x256xf32>
    %cst_199 = arith.constant dense<0.000000e+00> : vector<8x256xf32>
    %986 = tpu.matmul %951, %4, %cst_199 {dimension_numbers = #tpu.dot_dimension_numbers<[1], [0], [0], [1], [0, 0, 1, 1], [], []>} : vector<8x64xf32>, vector<64x256xf32>, vector<8x256xf32> -> vector<8x256xf32>
    %987 = arith.addf %985, %986 : vector<8x256xf32>
    %988 = vector.broadcast %5 : vector<1x256xf32> to vector<8x256xf32>
    %989 = arith.addf %987, %988 : vector<8x256xf32>
    %990 = vector.extract_strided_slice %989 {offsets = [0, 0], sizes = [8, 64], strides = [1, 1]} : vector<8x256xf32> to vector<8x64xf32>
    %991 = arith.negf %990 : vector<8x64xf32>
    %992 = math.exp %991 : vector<8x64xf32>
    %cst_200 = arith.constant 1.000000e+00 : f32
    %993 = vector.broadcast %cst_200 : f32 to vector<8x64xf32>
    %994 = arith.addf %993, %992 : vector<8x64xf32>
    %995 = arith.divf %993, %994 : vector<8x64xf32>
    %996 = vector.extract_strided_slice %989 {offsets = [0, 64], sizes = [8, 64], strides = [1, 1]} : vector<8x256xf32> to vector<8x64xf32>
    %997 = arith.negf %996 : vector<8x64xf32>
    %998 = math.exp %997 : vector<8x64xf32>
    %cst_201 = arith.constant 1.000000e+00 : f32
    %999 = vector.broadcast %cst_201 : f32 to vector<8x64xf32>
    %1000 = arith.addf %999, %998 : vector<8x64xf32>
    %1001 = arith.divf %999, %1000 : vector<8x64xf32>
    %1002 = vector.extract_strided_slice %989 {offsets = [0, 128], sizes = [8, 64], strides = [1, 1]} : vector<8x256xf32> to vector<8x64xf32>
    %1003 = math.tanh %1002 : vector<8x64xf32>
    %1004 = vector.extract_strided_slice %989 {offsets = [0, 192], sizes = [8, 64], strides = [1, 1]} : vector<8x256xf32> to vector<8x64xf32>
    %1005 = arith.negf %1004 : vector<8x64xf32>
    %1006 = math.exp %1005 : vector<8x64xf32>
    %cst_202 = arith.constant 1.000000e+00 : f32
    %1007 = vector.broadcast %cst_202 : f32 to vector<8x64xf32>
    %1008 = arith.addf %1007, %1006 : vector<8x64xf32>
    %1009 = arith.divf %1007, %1008 : vector<8x64xf32>
    %1010 = arith.mulf %1001, %949 : vector<8x64xf32>
    %1011 = arith.mulf %995, %1003 : vector<8x64xf32>
    %1012 = arith.addf %1010, %1011 : vector<8x64xf32>
    %1013 = math.tanh %1012 : vector<8x64xf32>
    %1014 = arith.mulf %1009, %1013 : vector<8x64xf32>
    %c16_i32 = arith.constant 16 : i32
    %c0_203 = arith.constant 0 : index
    %c0_204 = arith.constant 0 : index
    %1015 = vector.load %arg8[%c0_203, %c0_204] : memref<64x4xf32, #tpu.memory_space<vmem>>, vector<64x4xf32>
    %cst_205 = arith.constant dense<0.000000e+00> : vector<8x4xf32>
    %1016 = tpu.matmul %1014, %1015, %cst_205 {dimension_numbers = #tpu.dot_dimension_numbers<[1], [0], [0], [1], [0, 0, 1, 1], [], []>} : vector<8x64xf32>, vector<64x4xf32>, vector<8x4xf32> -> vector<8x4xf32>
    %c0_206 = arith.constant 0 : index
    %c0_207 = arith.constant 0 : index
    %1017 = vector.load %arg9[%c0_206, %c0_207] : memref<1x4xf32, #tpu.memory_space<vmem>>, vector<1x4xf32>
    %1018 = vector.broadcast %1017 : vector<1x4xf32> to vector<8x4xf32>
    %1019 = arith.addf %1016, %1018 : vector<8x4xf32>
    %c0_208 = arith.constant 0 : index
    %c0_209 = arith.constant 0 : index
    %1020 = vector.load %arg10[%c0_208, %c0_209] : memref<64x4xf32, #tpu.memory_space<vmem>>, vector<64x4xf32>
    %cst_210 = arith.constant dense<0.000000e+00> : vector<8x4xf32>
    %1021 = tpu.matmul %1014, %1020, %cst_210 {dimension_numbers = #tpu.dot_dimension_numbers<[1], [0], [0], [1], [0, 0, 1, 1], [], []>} : vector<8x64xf32>, vector<64x4xf32>, vector<8x4xf32> -> vector<8x4xf32>
    %c0_211 = arith.constant 0 : index
    %c0_212 = arith.constant 0 : index
    %1022 = vector.load %arg11[%c0_211, %c0_212] : memref<1x4xf32, #tpu.memory_space<vmem>>, vector<1x4xf32>
    %1023 = vector.broadcast %1022 : vector<1x4xf32> to vector<8x4xf32>
    %1024 = arith.addf %1021, %1023 : vector<8x4xf32>
    %cst_213 = arith.constant 5.000000e-01 : f32
    %1025 = vector.broadcast %cst_213 : f32 to vector<8x4xf32>
    %1026 = arith.mulf %1025, %1024 : vector<8x4xf32>
    %1027 = math.exp %1026 : vector<8x4xf32>
    %c0_214 = arith.constant 0 : index
    %c0_215 = arith.constant 0 : index
    %1028 = vector.load %arg12[%c0_214, %c0_215] : memref<8x4xf32, #tpu.memory_space<vmem>>, vector<8x4xf32>
    %1029 = arith.mulf %1028, %1027 : vector<8x4xf32>
    %1030 = arith.addf %1019, %1029 : vector<8x4xf32>
    %cst_216 = arith.constant dense<0xFF800000> : vector<8xf32>
    %1031 = vector.multi_reduction <maximumf>, %1030, %cst_216 [1] : vector<8x4xf32> to vector<8xf32>
    %cst_217 = arith.constant 0xFF800000 : f32
    %1032 = vector.broadcast %cst_217 : f32 to vector<8xf32>
    %1033 = arith.maximumf %1032, %1031 : vector<8xf32>
    %1034 = vector.shape_cast %1033 : vector<8xf32> to vector<8x1xf32>
    %1035 = vector.broadcast %1034 : vector<8x1xf32> to vector<8x4xf32>
    %1036 = arith.subf %1030, %1035 : vector<8x4xf32>
    %1037 = math.exp %1036 : vector<8x4xf32>
    %cst_218 = arith.constant dense<0.000000e+00> : vector<8xf32>
    %1038 = vector.multi_reduction <add>, %1037, %cst_218 [1] : vector<8x4xf32> to vector<8xf32>
    %1039 = vector.shape_cast %1038 : vector<8xf32> to vector<8x1xf32>
    %1040 = vector.broadcast %1039 : vector<8x1xf32> to vector<8x4xf32>
    %1041 = arith.divf %1037, %1040 : vector<8x4xf32>
    %1042 = vector.shape_cast %1041 : vector<8x4xf32> to vector<1x8x4xf32>
    %1043 = vector.shape_cast %1042 : vector<1x8x4xf32> to vector<1x8x4xf32>
    %1044 = vector.broadcast %1043 : vector<1x8x4xf32> to vector<2x8x4xf32>
    %c0_219 = arith.constant 0 : index
    %c0_220 = arith.constant 0 : index
    %c0_221 = arith.constant 0 : index
    %1045 = vector.load %arg13[%c0_219, %c0_220, %c0_221] : memref<2x8x4xf32, #tpu.memory_space<vmem>>, vector<2x8x4xf32>
    tpu.vector_store %arg13[%c0_219, %c0_220, %c0_221], %1044 {strides = array<i32>} : memref<2x8x4xf32, #tpu.memory_space<vmem>>, vector<2x8x4xf32>,
    return
  }
  func.func @transform_0(%arg0: i32) -> (i32, i32, i32) {
    %c0_i32 = arith.constant 0 : i32
    %c0_i32_0 = arith.constant 0 : i32
    %c0_i32_1 = arith.constant 0 : i32
    %c0_i32_2 = arith.constant 0 : i32
    return %c0_i32, %c0_i32_0, %c0_i32_1 : i32, i32, i32
  }
  func.func @transform_1(%arg0: i32) -> (i32, i32) {
    %c0_i32 = arith.constant 0 : i32
    %c0_i32_0 = arith.constant 0 : i32
    %c0_i32_1 = arith.constant 0 : i32
    return %c0_i32, %c0_i32_0 : i32, i32
  }
  func.func @transform_2(%arg0: i32) -> (i32, i32) {
    %c0_i32 = arith.constant 0 : i32
    %c0_i32_0 = arith.constant 0 : i32
    %c0_i32_1 = arith.constant 0 : i32
    return %c0_i32, %c0_i32_0 : i32, i32
  }
  func.func @transform_3(%arg0: i32) -> (i32, i32) {
    %c0_i32 = arith.constant 0 : i32
    %c0_i32_0 = arith.constant 0 : i32
    %c0_i32_1 = arith.constant 0 : i32
    return %c0_i32, %c0_i32_0 : i32, i32
  }
  func.func @transform_4(%arg0: i32) -> (i32, i32) {
    %c0_i32 = arith.constant 0 : i32
    %c0_i32_0 = arith.constant 0 : i32
    %c0_i32_1 = arith.constant 0 : i32
    return %c0_i32, %c0_i32_0 : i32, i32
  }
  func.func @transform_5(%arg0: i32) -> (i32, i32) {
    %c0_i32 = arith.constant 0 : i32
    %c0_i32_0 = arith.constant 0 : i32
    %c0_i32_1 = arith.constant 0 : i32
    return %c0_i32, %c0_i32_0 : i32, i32
  }
  func.func @transform_6(%arg0: i32) -> (i32, i32) {
    %c0_i32 = arith.constant 0 : i32
    %c0_i32_0 = arith.constant 0 : i32
    %c0_i32_1 = arith.constant 0 : i32
    return %c0_i32, %c0_i32_0 : i32, i32
  }
  func.func @transform_7(%arg0: i32) -> (i32, i32) {
    %c0_i32 = arith.constant 0 : i32
    %c0_i32_0 = arith.constant 0 : i32
    %c0_i32_1 = arith.constant 0 : i32
    return %c0_i32, %c0_i32_0 : i32, i32
  }
  func.func @transform_8(%arg0: i32) -> (i32, i32) {
    %c0_i32 = arith.constant 0 : i32
    %c0_i32_0 = arith.constant 0 : i32
    %c0_i32_1 = arith.constant 0 : i32
    return %c0_i32, %c0_i32_0 : i32, i32
  }
  func.func @transform_9(%arg0: i32) -> (i32, i32) {
    %c0_i32 = arith.constant 0 : i32
    %c0_i32_0 = arith.constant 0 : i32
    %c0_i32_1 = arith.constant 0 : i32
    return %c0_i32, %c0_i32_0 : i32, i32
  }
  func.func @transform_10(%arg0: i32) -> (i32, i32) {
    %c0_i32 = arith.constant 0 : i32
    %c0_i32_0 = arith.constant 0 : i32
    %c0_i32_1 = arith.constant 0 : i32
    return %c0_i32, %c0_i32_0 : i32, i32
  }
  func.func @transform_11(%arg0: i32) -> (i32, i32) {
    %c0_i32 = arith.constant 0 : i32
    %c0_i32_0 = arith.constant 0 : i32
    %c0_i32_1 = arith.constant 0 : i32
    return %c0_i32, %c0_i32_0 : i32, i32
  }
  func.func @transform_12(%arg0: i32) -> (i32, i32, i32) {
    %c0_i32 = arith.constant 0 : i32
    %c0_i32_0 = arith.constant 0 : i32
    %c0_i32_1 = arith.constant 0 : i32
    %c0_i32_2 = arith.constant 0 : i32
    return %c0_i32, %c0_i32_0, %c0_i32_1 : i32, i32, i32
  }
}

</mosaic_0001>

<bundles_post_ra>
// kernel: tpu_custom_call.1
= control target key start
LH: loop header
LB: loop body
LE: loop exit
PB: predicated region body
PF: predicated region fallthrough
CT: control target
= control target key end

     0   :  { %17 = vsyncpa [#allocation3], 0  ;;  %s7362_s21 = smov [#allocation2]   ;;  %s8563_s0 = inlined_call_operand.vmem [shape: f32[16,8,8], index: 0, kind: input, shape index: {}]   ;;  %s8564_s1 = inlined_call_operand.vmem [shape: f32[8,256], index: 1, kind: input, shape index: {}]   ;;  %s8565_s2 = inlined_call_operand.vmem [shape: f32[64,256], index: 2, kind: input, shape index: {}]   ;;  %s8566_s3 = inlined_call_operand.vmem [shape: f32[1,256], index: 3, kind: input, shape index: {}]   ;;  %s8567_s4 = inlined_call_operand.vmem [shape: f32[64,256], index: 4, kind: input, shape index: {}]   ;;  %s8568_s5 = inlined_call_operand.hbm [shape: f32[64,256], index: 5, kind: input, shape index: {}]   ;;  %s8569_s6 = inlined_call_operand.vmem [shape: f32[1,256], index: 6, kind: input, shape index: {}]   ;;  %s8570_s7 = inlined_call_operand.vmem [shape: f32[64,4], index: 7, kind: input, shape index: {}]   ;;  %s8571_s8 = inlined_call_operand.vmem [shape: f32[1,4], index: 8, kind: input, shape index: {}]   ;;  %s8572_s9 = inlined_call_operand.vmem [shape: f32[64,4], index: 9, kind: input, shape index: {}]   ;;  %s8573_s10 = inlined_call_operand.vmem [shape: f32[1,4], index: 10, kind: input, shape index: {}]   ;;  %s8574_s11 = inlined_call_operand.vmem [shape: f32[8,4], index: 11, kind: input, shape index: {}]   ;;  %s8575_s12 = inlined_call_operand.vmem [shape: f32[2,8,4], index: 12, kind: output, shape index: {}]  }
   0x1   :  { %s33_s22 = sshll.u32 %s7362_s21, 4  ;;  %s7338_s25 = scalar_lea.hbm %s8568_s5, 2048  ;;  %s34_s22 = int_to_ptr.vmem [resolvable:$true] %s33_s22 }
   0x2   :  { %p7339_p0 = scmp.ne.s32.totalorder %s8568_s5, %s7338_s25  ;;  %p7342_p1 = scmp.lt.u32.totalorder %s7338_s25, %s8568_s5 }
   0x4   :  { %p7344_p2 = pnand %p7342_p1, %p7339_p0 }
   0x6   :  { %7347 = shalt.err (!%p7344_p2)
}
   0x7   :  { %s7348_s30 = scalar_lea.vmem %s34_s22, 2048  ;;  %p7353_p4 = scmp.lt.s32.totalorder %s34_s22, %s34_s22 }
   0x8   :  { %p7349_p3 = scmp.ne.s32.totalorder %s34_s22, %s7348_s30  ;;  %p7354_p5 = scmp.lt.s32.totalorder %s7348_s30, %s7348_s30 }
   0xa   :  { %p7355_p6 = por %p7354_p5, %p7353_p4 }
   0xc   :  { %p7356_p7 = pnand %p7355_p6, %p7349_p3 }
   0xe   :  { %7359 = shalt.err (!%p7356_p7)
}
   0xf   :  { %s7363_s13 = smov 256   ;;  %s7364_s14 = smov 16  }
  0x10   :  { %39 = dma.hbm_to_vmem [thread:$0]  %s8568_s5, 2048, %s34_s22, [#allocation3], %s7363_s13, %s7363_s13, %s7364_s14  }
  0x11   :  { %7360 = dma.done.wait [#allocation3], 2048  }
  0x12   :  { %7361 = vsyncadd [#allocation3], 4294965248  ;;  %v7365_v0 = vmov 0.0   ;;  %v58_v1 = vld [vmem:[%s8565_s2 + $0x8] sm:$0xff]  ;;  %v60_v2 = vld [vmem:[%s8565_s2 + $0x18] sm:$0xff]  ;;  %vm183_vm0 = vcmask 64512   ;;  %v259_v28 = vlaneseq }
  0x13   :  { %251 = vmatprep.mubr.f32.mxu1 %v7365_v0  ;;  %176 = vmatprep.mubr.f32.mxu0 %v7365_v0  ;;  %v57_v3 = vld [vmem:[%s8565_s2] sm:$0xff]  ;;  %v7457_v4 = vpack.c.bf16 %v60_v2, %v58_v1  ;;  %v59_v5 = vld [vmem:[%s8565_s2 + $0x10] sm:$0xff]  ;;  %v62_v6 = vld [vmem:[%s8565_s2 + $0x28] sm:$0xff]  ;;  %vm108_vm1 = vcmask 523264   ;;  %vm7368_vm2 = vmmov 0   ;;  %vm5861_vm3 = vcmask 31744  }
  0x14   :  { %v64_v7 = vld [vmem:[%s8565_s2 + $0x38] sm:$0xff]  ;;  %v7468_v8 = vpack.c.bf16 %v59_v5, %v57_v3  ;;  %v61_v10 = vld [vmem:[%s8565_s2 + $0x20] sm:$0xff]  ;;  %v63_v11 = vld [vmem:[%s8565_s2 + $0x30] sm:$0xff]  ;;  %v7548_v31 = vshrl.u32 %v259_v28, 7 }
  0x15   :  { %v7470_v9 = vpack.c.bf16 %v64_v7, %v62_v6  ;;  %v66_v12 = vld [vmem:[%s8565_s2 + $0x48] sm:$0xff]  ;;  %6082 = vmatprep.subr.bf16.mxu0 %v7457_v4  ;;  %v68_v13 = vld [vmem:[%s8565_s2 + $0x58] sm:$0xff]  ;;  %v7486_v14 = vpack.c.bf16 %v63_v11, %v61_v10  ;;  %v65_v15 = vld [vmem:[%s8565_s2 + $0x40] sm:$0xff] }
  0x16   :  { %6084 = vmatpush1.bf16.msra.mxu0 %v7468_v8  ;;  %v7492_v16 = vpack.c.bf16 %v68_v13, %v66_v12  ;;  %v67_v17 = vld [vmem:[%s8565_s2 + $0x50] sm:$0xff]  ;;  %v7500_v18 = vld [vmem:[%s8564_s1 + $0x8] sm:$0xff]  ;;  %v7505_v19 = vld [vmem:[%s8564_s1] sm:$0xff]  ;;  %v261_v32 = vsub.s32 0, %v7548_v31  ;;  %v265_v41 = vsub.s32 1, %v7548_v31 }
  0x17   :  { %6086 = vmatprep.subr.bf16.mxu0 %v7470_v9  ;;  %v70_v20 = vld [vmem:[%s8565_s2 + $0x68] sm:$0xff]  ;;  %v72_v21 = vld [vmem:[%s8565_s2 + $0x78] sm:$0xff]  ;;  %187 = vmatprep.subr.mxu1 %v7500_v18  ;;  %v107_v22 = vld [vmem:[%s8563_s0] sm:$0xff]  ;;  %v7519_v23 = vpack.c.bf16 %v67_v17, %v65_v15 }
  0x18   :  { %188 = vmatpush1.msra.mxu1 %v7505_v19  ;;  %v7523_v24 = vpack.c.bf16 %v72_v21, %v70_v20  ;;  %v69_v25 = vld [vmem:[%s8565_s2 + $0x60] sm:$0xff]  ;;  %v71_v26 = vld [vmem:[%s8565_s2 + $0x70] sm:$0xff]  ;;  %v91_v49 = vld [vmem:[#allocation2 + $0x8] sm:$0xff] }
  0x19   :  { %5880 = vmatmul.mubr.msk.f32.vlgmr.msra.gmra.mrb[0].mxu1 %vm183_vm0, %v107_v22  ;;  %v7533_v27 = vpack.c.bf16 %v71_v26, %v69_v25  ;;  %v73_v33 = vld [vmem:[%s8566_s3] sm:$0x3]  ;;  %s7366_s3 = smov 64   ;;  %v93_v50 = vld [vmem:[#allocation2 + $0x18] sm:$0xff]  ;;  %v92_v53 = vld [vmem:[#allocation2 + $0x10] sm:$0xff] }
  0x1a   :  { %6088 = vmatpush1.bf16.msra.mxu0 %v7486_v14  ;;  %357 = vmatprep.mubr.f32.mxu1 %v7365_v0  ;;  %v7556_v34 = vrot.slane %v73_v33, %v261_v32  ;;  %v7562_v42 = vrot.slane %v73_v33, %v265_v41  ;;  %v90_v51 = vld [vmem:[#allocation2] sm:$0xff]  ;;  %v7572_v52 = vpack.c.bf16 %v93_v50, %v91_v49  ;;  %v95_v54 = vld [vmem:[#allocation2 + $0x28] sm:$0xff]  ;;  %v97_v55 = vld [vmem:[#allocation2 + $0x38] sm:$0xff] }
  0x1b   :  { %6090 = vmatprep.subr.bf16.mxu0 %v7492_v16  ;;  %v7574_v56 = vpack.c.bf16 %v92_v53, %v90_v51  ;;  %v7576_v57 = vpack.c.bf16 %v97_v55, %v95_v54  ;;  %v94_v58 = vld [vmem:[#allocation2 + $0x20] sm:$0xff]  ;;  %v96_v59 = vld [vmem:[#allocation2 + $0x30] sm:$0xff]  ;;  %v99_v60 = vld [vmem:[#allocation2 + $0x48] sm:$0xff] }
  0x1c   :  { %6098 = vmatprep.subr.bf16.mxu1 %v7572_v52  ;;  %v101_v61 = vld [vmem:[#allocation2 + $0x58] sm:$0xff]  ;;  %v7580_v62 = vpack.c.bf16 %v96_v59, %v94_v58  ;;  %v98_v1 = vld [vmem:[#allocation2 + $0x40] sm:$0xff]  ;;  %v100_v2 = vld [vmem:[#allocation2 + $0x50] sm:$0xff] }
  0x1d   :  { %6100 = vmatpush1.bf16.msra.mxu1 %v7574_v56  ;;  %v7583_v63 = vpack.c.bf16 %v101_v61, %v99_v60  ;;  %v103_v3 = vld [vmem:[#allocation2 + $0x68] sm:$0xff]  ;;  %v105_v5 = vld [vmem:[#allocation2 + $0x78] sm:$0xff]  ;;  %v7586_v6 = vpack.c.bf16 %v100_v2, %v98_v1  ;;  %v102_v10 = vld [vmem:[#allocation2 + $0x60] sm:$0xff] }
  0x1e   :  { %6092 = vmatpush1.bf16.msra.mxu0 %v7519_v23  ;;  %6102 = vmatprep.subr.bf16.mxu1 %v7576_v57  ;;  %v7589_v7 = vpack.c.bf16 %v105_v5, %v103_v3  ;;  %v104_v11 = vld [vmem:[#allocation2 + $0x70] sm:$0xff]  ;;  %v75_v12 = vld [vmem:[%s8567_s4 + $0x8] sm:$0xff]  ;;  %v77_v13 = vld [vmem:[%s8567_s4 + $0x18] sm:$0xff] }
  0x1f   :  { %6094 = vmatprep.subr.bf16.mxu0 %v7523_v24  ;;  %v7598_v15 = vpack.c.bf16 %v104_v11, %v102_v10  ;;  %v7601_v17 = vpack.c.bf16 %v77_v13, %v75_v12  ;;  %v74_v20 = vld [vmem:[%s8567_s4] sm:$0xff]  ;;  %v76_v21 = vld [vmem:[%s8567_s4 + $0x10] sm:$0xff]  ;;  %v79_v22 = vld [vmem:[%s8567_s4 + $0x28] sm:$0xff] }
  0x20   :  { %v81_v25 = vld [vmem:[%s8567_s4 + $0x38] sm:$0xff]  ;;  %v7616_v26 = vpack.c.bf16 %v76_v21, %v74_v20  ;;  %v83_v33 = vld [vmem:[%s8567_s4 + $0x48] sm:$0xff]  ;;  %v88_v49 = vld [vmem:[%s8567_s4 + $0x70] sm:$0xff] }
  0x21   :  { %6104 = vmatpush1.bf16.msra.mxu1 %v7580_v62  ;;  %v7619_v28 = vpack.c.bf16 %v81_v25, %v79_v22 }
  0x22   :  { %6096 = vmatpush1.bf16.msra.mxu0 %v7533_v27  ;;  %6106 = vmatprep.subr.bf16.mxu1 %v7583_v63 }
  0x23   :  { %6130 = vmatprep.subr.bf16.mxu0 %v7457_v4 }
  0x25   :  { %177 = vmatmul.mubr.f32.vlgmr.msra.gmra.mrb[0].mxu0 %v7365_v0  ;;  %6108 = vmatpush1.bf16.msra.mxu1 %v7586_v6 }
  0x26   :  { %6132 = vmatpush1.bf16.msra.mxu0 %v7468_v8  ;;  %541 = vmatprep.mubr.f32.mxu0 %v7365_v0 }
  0x27   :  { %6134 = vmatprep.subr.bf16.mxu0 %v7470_v9  ;;  %6110 = vmatprep.subr.bf16.mxu1 %v7589_v7 }
  0x29   :  { %6112 = vmatpush1.bf16.msra.mxu1 %v7598_v15 }
  0x2a   :  { %6136 = vmatpush1.bf16.msra.mxu0 %v7486_v14  ;;  %6114 = vmatprep.subr.bf16.mxu1 %v7601_v17 }
  0x2b   :  { %6138 = vmatprep.subr.bf16.mxu0 %v7492_v16 }
  0x2c   :  { %358 = vmatmul.mubr.f32.vlgmr.msra.gmra.mrb[2].mxu1 %v7365_v0 }
  0x2d   :  { %6116 = vmatpush1.bf16.msra.mxu1 %v7616_v26  ;;  %433 = vmatprep.mubr.f32.mxu1 %v7365_v0 }
  0x2e   :  { %6140 = vmatpush1.bf16.msra.mxu0 %v7519_v23  ;;  %6118 = vmatprep.subr.bf16.mxu1 %v7619_v28 }
  0x2f   :  { %6142 = vmatprep.subr.bf16.mxu0 %v7523_v24 }
  0x32   :  { %6144 = vmatpush1.bf16.msra.mxu0 %v7533_v27 }
  0x33   :  { %551 = vmatprep.subr.mxu0 %v7500_v18 }
  0xec   :  { %v253_v29 = vpop.f32.mrb[0].mxu1 }
  0xed   :  { %v255_v30 = vpop.f32.mrb[1].mxu1 }
  0xf8   :  { %v178_v35 = vpop.f32.mrb[0].mxu0 }
  0xf9   :  { %v254_v36 = vadd.f32 %v253_v29, %v178_v35  ;;  %v180_v37 = vpop.f32.mrb[1].mxu0  ;;  %v78_v29 = vld [vmem:[%s8567_s4 + $0x20] sm:$0xff]  ;;  %v85_v35 = vld [vmem:[%s8567_s4 + $0x58] sm:$0xff] }
  0xfa   :  { %v256_v38 = vadd.f32 %v255_v30, %v180_v37  ;;  %v80_v30 = vld [vmem:[%s8567_s4 + $0x30] sm:$0xff]  ;;  %v7639_v37 = vpack.c.bf16 %v85_v35, %v83_v33 }
  0xfb   :  { %v269_v39 = vadd.f32 %v7556_v34, %v254_v36  ;;  %v7635_v36 = vpack.c.bf16 %v80_v30, %v78_v29 }
  0xfc   :  { %v7565_v43 = vadd.f32 %v7562_v42, %v256_v38  ;;  %v82_v38 = vld [vmem:[%s8567_s4 + $0x40] sm:$0xff] }
  0xfd   :  { %v5881_v40 = vmul.f32 -1.442695, %v269_v39  ;;  %v84_v39 = vld [vmem:[%s8567_s4 + $0x50] sm:$0xff]  ;;  %6120 = vmatpush1.bf16.msra.mxu1 %v7635_v36 }
  0xfe   :  { %6122 = vmatprep.subr.bf16.mxu1 %v7639_v37  ;;  %v5882_v51 = vmul.f32 -1.442695, %v7565_v43 }
  0xff   :  { %6944 = vpow2.f32 %v5881_v40  ;;  %v87_v40 = vld [vmem:[%s8567_s4 + $0x68] sm:$0xff] }
 0x100   :  { %6946 = vtanh.f32 %v7565_v43  ;;  %v5886_v43 = vld [vmem:[%s8563_s0 + $0x8] sm:$0xff] }
 0x109   :  { %v6945_v44 = vpop.eup %6944 }
 0x10a   :  { %v274_v45 = vadd.f32 1.0, %v6945_v44  ;;  %v6947_v46 = vpop.eup %6946  ;;  %v89_v44 = vld [vmem:[%s8567_s4 + $0x78] sm:$0xff] }
 0x10c   :  { %6948 = vrcp.f32 %v274_v45  ;;  %v7654_v45 = vpack.c.bf16 %v84_v39, %v82_v38 }
 0x10d   :  { %6950 = vpow2.f32 %v5882_v51 }
 0x10e   :  { %6124 = vmatpush1.bf16.msra.mxu1 %v7654_v45 }
 0x116   :  { %v7568_v47 = vpop.eup %6948 }
 0x117   :  { %v285_v48 = vmul.f32 %v7568_v47, %v6947_v46  ;;  %v7657_v46 = vpack.c.bf16 %v89_v44, %v87_v40  ;;  %v6951_v53 = vpop.eup %6950  ;;  %v284_v55 = vmul.f32 0.0, %v7568_v47  ;;  %v106_v47 = vld [vmem:[%s8569_s6] sm:$0x3] }
 0x118   :  { %v281_v54 = vadd.f32 1.0, %v6951_v53  ;;  %v7709_v3 = vrot.slane %v106_v47, %v261_v32  ;;  %v7714_v20 = vrot.slane %v106_v47, %v265_v41 }
 0x119   :  { %287 = vrot.lane.b32.xlu0 %v285_v48, %s7366_s3  ;;  %v86_v48 = vld [vmem:[%s8567_s4 + $0x60] sm:$0xff]  ;;  %6126 = vmatprep.subr.bf16.mxu1 %v7657_v46 }
 0x11a   :  { %v7666_v50 = vpack.c.bf16 %v88_v49, %v86_v48  ;;  %6952 = vrcp.f32 %v281_v54 }
 0x11c   :  { %6128 = vmatpush1.bf16.msra.mxu1 %v7666_v50 }
 0x11d   :  { %6146 = vmatprep.subr.bf16.mxu1 %v7572_v52 }
 0x124   :  { %v6953_v60 = vpop.eup %6952 }
 0x18b   :  { %v288_v58 = vpop.permute.xlu0 %287 }
 0x18c   :  { %v7673_v59 = vadd.f32 %v288_v58, %v284_v55 }
 0x18e   :  { %6954 = vtanh.f32 %v7673_v59 }
 0x198   :  { %v6955_v61 = vpop.eup %6954 }
 0x199   :  { %v292_v1 = vmul.f32 %v6955_v61, %v6953_v60 }
 0x19b   :  { %365 = vrot.lane.b32.xlu0 %v292_v1, %s7366_s3 }
 0x20d   :  { %v366_v2 = vpop.permute.xlu0 %365 }
 0x20e   :  { %5883 = vmatmul.mubr.msk.f32.vlgmr.msra.gmra.mrb[2].mxu1 %vm108_vm1, %v366_v2  ;;  %5887 = vmatmul.mubr.msk.f32.vlgmr.msra.gmra.mrb[2].mxu0 %vm108_vm1, %v366_v2 }
 0x20f   :  { %552 = vmatpush1.msra.mxu0 %v7505_v19  ;;  %615 = vmatprep.mubr.f32.mxu0 %v7365_v0 }
 0x210   :  { %6148 = vmatpush1.bf16.msra.mxu1 %v7574_v56  ;;  %6178 = vmatprep.subr.bf16.mxu0 %v7457_v4 }
 0x211   :  { %6150 = vmatprep.subr.bf16.mxu1 %v7576_v57  ;;  %715 = vmatprep.mubr.f32.mxu1 %v7365_v0 }
 0x214   :  { %6152 = vmatpush1.bf16.msra.mxu1 %v7580_v62 }
 0x215   :  { %6154 = vmatprep.subr.bf16.mxu1 %v7583_v63 }
 0x216   :  { %5888 = vmatmul.mubr.msk.f32.vlgmr.msra.gmra.mrb[2].mxu0 %vm183_vm0, %v5886_v43 }
 0x217   :  { %6180 = vmatpush1.bf16.msra.mxu0 %v7468_v8  ;;  %888 = vmatprep.mubr.f32.mxu0 %v7365_v0 }
 0x218   :  { %6156 = vmatpush1.bf16.msra.mxu1 %v7586_v6  ;;  %6182 = vmatprep.subr.bf16.mxu0 %v7470_v9 }
 0x219   :  { %6158 = vmatprep.subr.bf16.mxu1 %v7589_v7 }
 0x21b   :  { %6184 = vmatpush1.bf16.msra.mxu0 %v7486_v14 }
 0x21c   :  { %6160 = vmatpush1.bf16.msra.mxu1 %v7598_v15  ;;  %6186 = vmatprep.subr.bf16.mxu0 %v7492_v16 }
 0x21d   :  { %6162 = vmatprep.subr.bf16.mxu1 %v7601_v17 }
 0x21f   :  { %6188 = vmatpush1.bf16.msra.mxu0 %v7519_v23 }
 0x220   :  { %6190 = vmatprep.subr.bf16.mxu0 %v7523_v24 }
 0x223   :  { %6192 = vmatpush1.bf16.msra.mxu0 %v7533_v27 }
 0x224   :  { %898 = vmatprep.subr.mxu0 %v7500_v18 }
 0x2e1   :  { %v435_v5 = vpop.f32.mrb[2].mxu1 }
 0x2e2   :  { %v451_v10 = vadd.f32 %v7709_v3, %v435_v5  ;;  %v437_v11 = vpop.f32.mrb[3].mxu1 }
 0x2e3   :  { %v452_v29 = vadd.f32 %v7714_v20, %v437_v11 }
 0x2e4   :  { %v5884_v12 = vmul.f32 -1.442695, %v451_v10 }
 0x2e5   :  { %v5885_v49 = vmul.f32 -1.442695, %v452_v29 }
 0x2e6   :  { %6956 = vpow2.f32 %v5884_v12 }
 0x2e9   :  { %v617_v13 = vpop.f32.mrb[2].mxu0 }
 0x2ea   :  { %v622_v21 = vadd.f32 %v617_v13, %v7556_v34  ;;  %v619_v22 = vpop.f32.mrb[3].mxu0 }
 0x2eb   :  { %v623_v33 = vadd.f32 %v619_v22, %v7562_v42 }
 0x2ec   :  { %v5889_v25 = vmul.f32 -1.442695, %v622_v21 }
 0x2ed   :  { %v5890_v51 = vmul.f32 -1.442695, %v623_v33 }
 0x2ee   :  { %6958 = vpow2.f32 %v5889_v25  ;;  %v5895_v25 = vld [vmem:[%s8563_s0 + $0x10] sm:$0xff] }
 0x2ef   :  { %6960 = vtanh.f32 %v452_v29 }
 0x2f0   :  { %v6957_v32 = vpop.eup %6956 }
 0x2f1   :  { %v456_v30 = vadd.f32 1.0, %v6957_v32 }
 0x2f3   :  { %6962 = vrcp.f32 %v456_v30 }
 0x2f4   :  { %6964 = vtanh.f32 %v623_v33 }
 0x2f8   :  { %v6959_v35 = vpop.eup %6958 }
 0x2f9   :  { %v627_v38 = vadd.f32 1.0, %v6959_v35  ;;  %v6961_v31 = vpop.eup %6960 }
 0x2fb   :  { %6966 = vrcp.f32 %v627_v38 }
 0x2fc   :  { %6968 = vpow2.f32 %v5885_v49 }
 0x2fd   :  { %v6963_v41 = vpop.eup %6962  ;;  %6970 = vpow2.f32 %v5890_v51 }
 0x2fe   :  { %v467_v39 = vmul.f32 %v6963_v41, %v6961_v31  ;;  %v6965_v40 = vpop.eup %6964  ;;  %v466_v55 = vmul.f32 0.0, %v6963_v41 }
 0x300   :  { %469 = vrot.lane.b32.xlu1 %v467_v39, %s7366_s3 }
 0x305   :  { %v6967_v44 = vpop.eup %6966 }
 0x306   :  { %v638_v48 = vmul.f32 %v6967_v44, %v6965_v40  ;;  %v6969_v53 = vpop.eup %6968  ;;  %v637_v2 = vmul.f32 %v6967_v44, %v7673_v59 }
 0x307   :  { %v463_v54 = vadd.f32 1.0, %v6969_v53  ;;  %v6971_v61 = vpop.eup %6970 }
 0x308   :  { %640 = vrot.lane.b32.xlu1 %v638_v48, %s7366_s3  ;;  %v634_v1 = vadd.f32 1.0, %v6971_v61 }
 0x309   :  { %6972 = vrcp.f32 %v463_v54 }
 0x313   :  { %v6973_v5 = vpop.eup %6972 }
 0x372   :  { %v470_v58 = vpop.permute.xlu1 %469 }
 0x373   :  { %v7721_v60 = vadd.f32 %v470_v58, %v466_v55 }
 0x375   :  { %6974 = vtanh.f32 %v7721_v60 }
 0x376   :  { %6976 = vrcp.f32 %v634_v1 }
 0x37a   :  { %v641_v43 = vpop.permute.xlu1 %640 }
 0x37b   :  { %v7725_v47 = vadd.f32 %v641_v43, %v637_v2 }
 0x37d   :  { %6978 = vtanh.f32 %v7725_v47 }
 0x37f   :  { %v6975_v10 = vpop.eup %6974 }
 0x380   :  { %v474_v11 = vmul.f32 %v6975_v10, %v6973_v5  ;;  %v6977_v12 = vpop.eup %6976 }
 0x382   :  { %647 = vrot.lane.b32.xlu0 %v474_v11, %s7366_s3 }
 0x387   :  { %v6979_v13 = vpop.eup %6978 }
 0x388   :  { %v645_v21 = vmul.f32 %v6979_v13, %v6977_v12 }
 0x38a   :  { %723 = vrot.lane.b32.xlu1 %v645_v21, %s7366_s3 }
 0x3f4   :  { %v648_v22 = vpop.permute.xlu0 %647 }
 0x3f5   :  { %5891 = vmatmul.mubr.msk.f32.vlgmr.msra.gmra.mrb[4].mxu1 %vm108_vm1, %v648_v22 }
 0x3f6   :  { %6164 = vmatpush1.bf16.msra.mxu1 %v7616_v26  ;;  %791 = vmatprep.mubr.f32.mxu1 %v7365_v0 }
 0x3f7   :  { %6166 = vmatprep.subr.bf16.mxu1 %v7619_v28 }
 0x3fa   :  { %6168 = vmatpush1.bf16.msra.mxu1 %v7635_v36 }
 0x3fb   :  { %6170 = vmatprep.subr.bf16.mxu1 %v7639_v37 }
 0x3fc   :  { %v724_v59 = vpop.permute.xlu1 %723 }
 0x3fd   :  { %5896 = vmatmul.mubr.msk.f32.vlgmr.msra.gmra.mrb[4].mxu0 %vm108_vm1, %v724_v59 }
 0x3fe   :  { %6172 = vmatpush1.bf16.msra.mxu1 %v7654_v45  ;;  %899 = vmatpush1.msra.mxu0 %v7505_v19 }
 0x3ff   :  { %6174 = vmatprep.subr.bf16.mxu1 %v7657_v46  ;;  %962 = vmatprep.mubr.f32.mxu0 %v7365_v0 }
 0x400   :  { %6194 = vmatprep.subr.bf16.mxu0 %v7572_v52 }
 0x402   :  { %6176 = vmatpush1.bf16.msra.mxu1 %v7666_v50 }
 0x403   :  { %6226 = vmatprep.subr.bf16.mxu1 %v7457_v4 }
 0x405   :  { %5892 = vmatmul.mubr.msk.f32.vlgmr.msra.gmra.mrb[4].mxu1 %vm108_vm1, %v724_v59  ;;  %5897 = vmatmul.mubr.msk.f32.vlgmr.msra.gmra.mrb[4].mxu0 %vm183_vm0, %v5895_v25 }
 0x406   :  { %6196 = vmatpush1.bf16.msra.mxu0 %v7574_v56  ;;  %6228 = vmatpush1.bf16.msra.mxu1 %v7468_v8 }
 0x407   :  { %6198 = vmatprep.subr.bf16.mxu0 %v7576_v57  ;;  %6230 = vmatprep.subr.bf16.mxu1 %v7470_v9 }
 0x408   :  { %1062 = vmatprep.mubr.f32.mxu0 %v7365_v0  ;;  %1235 = vmatprep.mubr.f32.mxu1 %v7365_v0 }
 0x40a   :  { %6200 = vmatpush1.bf16.msra.mxu0 %v7580_v62  ;;  %6232 = vmatpush1.bf16.msra.mxu1 %v7486_v14 }
 0x40b   :  { %6202 = vmatprep.subr.bf16.mxu0 %v7583_v63  ;;  %6234 = vmatprep.subr.bf16.mxu1 %v7492_v16 }
 0x40e   :  { %6204 = vmatpush1.bf16.msra.mxu0 %v7586_v6  ;;  %6236 = vmatpush1.bf16.msra.mxu1 %v7519_v23 }
 0x40f   :  { %6206 = vmatprep.subr.bf16.mxu0 %v7589_v7  ;;  %6238 = vmatprep.subr.bf16.mxu1 %v7523_v24 }
 0x412   :  { %6208 = vmatpush1.bf16.msra.mxu0 %v7598_v15  ;;  %6240 = vmatpush1.bf16.msra.mxu1 %v7533_v27 }
 0x413   :  { %6210 = vmatprep.subr.bf16.mxu0 %v7601_v17  ;;  %1245 = vmatprep.subr.mxu1 %v7500_v18 }
 0x4d8   :  { %v793_v29 = vpop.f32.mrb[4].mxu1  ;;  %v964_v32 = vpop.f32.mrb[4].mxu0 }
 0x4d9   :  { %v798_v30 = vadd.f32 %v793_v29, %v7709_v3  ;;  %v795_v33 = vpop.f32.mrb[5].mxu1  ;;  %v969_v35 = vadd.f32 %v964_v32, %v7556_v34  ;;  %v966_v38 = vpop.f32.mrb[5].mxu0 }
 0x4da   :  { %v799_v39 = vadd.f32 %v795_v33, %v7714_v20  ;;  %v970_v44 = vadd.f32 %v966_v38, %v7562_v42 }
 0x4db   :  { %v5893_v31 = vmul.f32 -1.442695, %v798_v30  ;;  %v5898_v41 = vmul.f32 -1.442695, %v969_v35 }
 0x4dc   :  { %v5894_v2 = vmul.f32 -1.442695, %v799_v39  ;;  %v5899_v43 = vmul.f32 -1.442695, %v970_v44 }
 0x4dd   :  { %6980 = vpow2.f32 %v5893_v31 }
 0x4de   :  { %6982 = vpow2.f32 %v5898_v41  ;;  %v5904_v41 = vld [vmem:[%s8563_s0 + $0x18] sm:$0xff] }
 0x4df   :  { %6984 = vtanh.f32 %v799_v39 }
 0x4e7   :  { %v6981_v40 = vpop.eup %6980 }
 0x4e8   :  { %v803_v48 = vadd.f32 1.0, %v6981_v40  ;;  %v6983_v49 = vpop.eup %6982 }
 0x4e9   :  { %v974_v51 = vadd.f32 1.0, %v6983_v49  ;;  %v6985_v53 = vpop.eup %6984 }
 0x4ea   :  { %6986 = vrcp.f32 %v803_v48 }
 0x4eb   :  { %6988 = vtanh.f32 %v970_v44 }
 0x4ec   :  { %6990 = vrcp.f32 %v974_v51 }
 0x4ed   :  { %6992 = vpow2.f32 %v5894_v2 }
 0x4ee   :  { %6994 = vpow2.f32 %v5899_v43 }
 0x4f4   :  { %v6987_v54 = vpop.eup %6986 }
 0x4f5   :  { %v6989_v55 = vpop.eup %6988  ;;  %v814_v58 = vmul.f32 %v6987_v54, %v6985_v53  ;;  %v813_v12 = vmul.f32 %v6987_v54, %v7721_v60 }
 0x4f6   :  { %v6991_v61 = vpop.eup %6990 }
 0x4f7   :  { %816 = vrot.lane.b32.xlu0 %v814_v58, %s7366_s3  ;;  %v985_v1 = vmul.f32 %v6991_v61, %v6989_v55  ;;  %v6993_v5 = vpop.eup %6992  ;;  %v984_v59 = vmul.f32 %v6991_v61, %v7725_v47 }
 0x4f8   :  { %v6995_v10 = vpop.eup %6994  ;;  %v810_v11 = vadd.f32 1.0, %v6993_v5 }
 0x4f9   :  { %987 = vrot.lane.b32.xlu1 %v985_v1, %s7366_s3  ;;  %v981_v13 = vadd.f32 1.0, %v6995_v10 }
 0x4fa   :  { %6996 = vrcp.f32 %v810_v11 }
 0x504   :  { %v6997_v32 = vpop.eup %6996 }
 0x569   :  { %v817_v21 = vpop.permute.xlu0 %816 }
 0x56a   :  { %v7774_v22 = vadd.f32 %v817_v21, %v813_v12 }
 0x56b   :  { %v988_v25 = vpop.permute.xlu1 %987 }
 0x56c   :  { %6998 = vtanh.f32 %v7774_v22  ;;  %v7778_v29 = vadd.f32 %v988_v25, %v984_v59 }
 0x56d   :  { %7000 = vrcp.f32 %v981_v13 }
 0x56e   :  { %7002 = vtanh.f32 %v7778_v29 }
 0x576   :  { %v6999_v30 = vpop.eup %6998 }
 0x577   :  { %v7001_v33 = vpop.eup %7000  ;;  %v821_v35 = vmul.f32 %v6999_v30, %v6997_v32 }
 0x578   :  { %v7003_v60 = vpop.eup %7002 }
 0x579   :  { %994 = vrot.lane.b32.xlu0 %v821_v35, %s7366_s3  ;;  %v992_v38 = vmul.f32 %v7003_v60, %v7001_v33 }
 0x57b   :  { %1070 = vrot.lane.b32.xlu1 %v992_v38, %s7366_s3 }
 0x5eb   :  { %v995_v47 = vpop.permute.xlu0 %994 }
 0x5ec   :  { %5900 = vmatmul.mubr.msk.f32.vlgmr.msra.gmra.mrb[6].mxu0 %vm108_vm1, %v995_v47 }
 0x5ed   :  { %v1071_v31 = vpop.permute.xlu1 %1070  ;;  %6212 = vmatpush1.bf16.msra.mxu0 %v7616_v26  ;;  %1138 = vmatprep.mubr.f32.mxu0 %v7365_v0 }
 0x5ee   :  { %5905 = vmatmul.mubr.msk.f32.vlgmr.msra.gmra.mrb[6].mxu1 %vm108_vm1, %v1071_v31  ;;  %6214 = vmatprep.subr.bf16.mxu0 %v7619_v28 }
 0x5ef   :  { %1246 = vmatpush1.msra.mxu1 %v7505_v19  ;;  %1309 = vmatprep.mubr.f32.mxu1 %v7365_v0 }
 0x5f0   :  { %6242 = vmatprep.subr.bf16.mxu1 %v7572_v52 }
 0x5f1   :  { %6216 = vmatpush1.bf16.msra.mxu0 %v7635_v36 }
 0x5f2   :  { %6218 = vmatprep.subr.bf16.mxu0 %v7639_v37 }
 0x5f5   :  { %6220 = vmatpush1.bf16.msra.mxu0 %v7654_v45 }
 0x5f6   :  { %5906 = vmatmul.mubr.msk.f32.vlgmr.msra.gmra.mrb[6].mxu1 %vm183_vm0, %v5904_v41  ;;  %6222 = vmatprep.subr.bf16.mxu0 %v7657_v46 }
 0x5f7   :  { %6244 = vmatpush1.bf16.msra.mxu1 %v7574_v56  ;;  %1409 = vmatprep.mubr.f32.mxu1 %v7365_v0 }
 0x5f8   :  { %6246 = vmatprep.subr.bf16.mxu1 %v7576_v57 }
 0x5f9   :  { %6224 = vmatpush1.bf16.msra.mxu0 %v7666_v50 }
 0x5fa   :  { %6274 = vmatprep.subr.bf16.mxu0 %v7457_v4 }
 0x5fb   :  { %6248 = vmatpush1.bf16.msra.mxu1 %v7580_v62 }
 0x5fc   :  { %5901 = vmatmul.mubr.msk.f32.vlgmr.msra.gmra.mrb[6].mxu0 %vm108_vm1, %v1071_v31  ;;  %6250 = vmatprep.subr.bf16.mxu1 %v7583_v63 }
 0x5fd   :  { %6276 = vmatpush1.bf16.msra.mxu0 %v7468_v8  ;;  %1582 = vmatprep.mubr.f32.mxu0 %v7365_v0 }
 0x5fe   :  { %6278 = vmatprep.subr.bf16.mxu0 %v7470_v9 }
 0x5ff   :  { %6252 = vmatpush1.bf16.msra.mxu1 %v7586_v6 }
 0x600   :  { %6254 = vmatprep.subr.bf16.mxu1 %v7589_v7 }
 0x601   :  { %6280 = vmatpush1.bf16.msra.mxu0 %v7486_v14 }
 0x602   :  { %6282 = vmatprep.subr.bf16.mxu0 %v7492_v16 }
 0x603   :  { %6256 = vmatpush1.bf16.msra.mxu1 %v7598_v15 }
 0x604   :  { %6258 = vmatprep.subr.bf16.mxu1 %v7601_v17 }
 0x605   :  { %6284 = vmatpush1.bf16.msra.mxu0 %v7519_v23 }
 0x606   :  { %6286 = vmatprep.subr.bf16.mxu0 %v7523_v24 }
 0x609   :  { %6288 = vmatpush1.bf16.msra.mxu0 %v7533_v27 }
 0x60a   :  { %1592 = vmatprep.subr.mxu0 %v7500_v18 }
 0x6c9   :  { %v1311_v39 = vpop.f32.mrb[6].mxu1 }
 0x6ca   :  { %v1316_v40 = vadd.f32 %v1311_v39, %v7556_v34  ;;  %v1313_v44 = vpop.f32.mrb[7].mxu1 }
 0x6cb   :  { %v1317_v55 = vadd.f32 %v1313_v44, %v7562_v42 }
 0x6cc   :  { %v5907_v48 = vmul.f32 -1.442695, %v1316_v40 }
 0x6cd   :  { %v5908_v59 = vmul.f32 -1.442695, %v1317_v55 }
 0x6ce   :  { %7004 = vpow2.f32 %v5907_v48 }
 0x6cf   :  { %v1140_v49 = vpop.f32.mrb[6].mxu0 }
 0x6d0   :  { %v1145_v51 = vadd.f32 %v1140_v49, %v7709_v3  ;;  %v1142_v53 = vpop.f32.mrb[7].mxu0 }
 0x6d1   :  { %v1146_v1 = vadd.f32 %v1142_v53, %v7714_v20 }
 0x6d2   :  { %v5902_v54 = vmul.f32 -1.442695, %v1145_v51 }
 0x6d3   :  { %v5903_v25 = vmul.f32 -1.442695, %v1146_v1 }
 0x6d4   :  { %7006 = vpow2.f32 %v5902_v54  ;;  %v5913_v54 = vld [vmem:[%s8563_s0 + $0x20] sm:$0xff] }
 0x6d5   :  { %7008 = vtanh.f32 %v1317_v55 }
 0x6d8   :  { %v7005_v58 = vpop.eup %7004 }
 0x6d9   :  { %v1321_v61 = vadd.f32 1.0, %v7005_v58 }
 0x6db   :  { %7010 = vrcp.f32 %v1321_v61 }
 0x6dc   :  { %7012 = vtanh.f32 %v1146_v1 }
 0x6de   :  { %v7007_v2 = vpop.eup %7006 }
 0x6df   :  { %v1150_v43 = vadd.f32 1.0, %v7007_v2  ;;  %v7009_v5 = vpop.eup %7008 }
 0x6e1   :  { %7014 = vrcp.f32 %v1150_v43 }
 0x6e2   :  { %7016 = vpow2.f32 %v5908_v59 }
 0x6e3   :  { %7018 = vpow2.f32 %v5903_v25 }
 0x6e5   :  { %v7011_v10 = vpop.eup %7010 }
 0x6e6   :  { %v1332_v11 = vmul.f32 %v7011_v10, %v7009_v5  ;;  %v7013_v12 = vpop.eup %7012  ;;  %v1331_v33 = vmul.f32 %v7011_v10, %v7778_v29 }
 0x6e8   :  { %1334 = vrot.lane.b32.xlu1 %v1332_v11, %s7366_s3 }
 0x6eb   :  { %v7015_v13 = vpop.eup %7014 }
 0x6ec   :  { %v1161_v21 = vmul.f32 %v7015_v13, %v7013_v12  ;;  %v7017_v32 = vpop.eup %7016  ;;  %v1160_v31 = vmul.f32 %v7015_v13, %v7774_v22 }
 0x6ed   :  { %v1328_v30 = vadd.f32 1.0, %v7017_v32  ;;  %v7019_v60 = vpop.eup %7018 }
 0x6ee   :  { %1163 = vrot.lane.b32.xlu0 %v1161_v21, %s7366_s3  ;;  %v1157_v47 = vadd.f32 1.0, %v7019_v60 }
 0x6ef   :  { %7020 = vrcp.f32 %v1328_v30 }
 0x6f9   :  { %v7021_v40 = vpop.eup %7020 }
 0x75a   :  { %v1335_v35 = vpop.permute.xlu1 %1334 }
 0x75b   :  { %v7827_v38 = vadd.f32 %v1335_v35, %v1331_v33 }
 0x75d   :  { %7022 = vtanh.f32 %v7827_v38 }
 0x75e   :  { %7024 = vrcp.f32 %v1157_v47 }
 0x760   :  { %v1164_v41 = vpop.permute.xlu0 %1163 }
 0x761   :  { %v7831_v39 = vadd.f32 %v1164_v41, %v1160_v31 }
 0x763   :  { %7026 = vtanh.f32 %v7831_v39 }
 0x767   :  { %v7023_v44 = vpop.eup %7022 }
 0x768   :  { %v1339_v48 = vmul.f32 %v7023_v44, %v7021_v40  ;;  %v7025_v29 = vpop.eup %7024 }
 0x76a   :  { %1417 = vrot.lane.b32.xlu1 %v1339_v48, %s7366_s3 }
 0x76d   :  { %v7027_v49 = vpop.eup %7026 }
 0x76e   :  { %v1168_v51 = vmul.f32 %v7027_v49, %v7025_v29 }
 0x770   :  { %1341 = vrot.lane.b32.xlu0 %v1168_v51, %s7366_s3 }
 0x7dc   :  { %v1418_v53 = vpop.permute.xlu1 %1417 }
 0x7dd   :  { %5914 = vmatmul.mubr.msk.f32.vlgmr.msra.gmra.mrb[8].mxu0 %vm108_vm1, %v1418_v53 }
 0x7de   :  { %1593 = vmatpush1.msra.mxu0 %v7505_v19  ;;  %1656 = vmatprep.mubr.f32.mxu0 %v7365_v0 }
 0x7df   :  { %6290 = vmatprep.subr.bf16.mxu0 %v7572_v52 }
 0x7e2   :  { %v1342_v22 = vpop.permute.xlu0 %1341 }
 0x7e3   :  { %5909 = vmatmul.mubr.msk.f32.vlgmr.msra.gmra.mrb[8].mxu1 %vm108_vm1, %v1342_v22 }
 0x7e4   :  { %6260 = vmatpush1.bf16.msra.mxu1 %v7616_v26  ;;  %1485 = vmatprep.mubr.f32.mxu1 %v7365_v0 }
 0x7e5   :  { %5915 = vmatmul.mubr.msk.f32.vlgmr.msra.gmra.mrb[8].mxu0 %vm183_vm0, %v5913_v54  ;;  %6262 = vmatprep.subr.bf16.mxu1 %v7619_v28 }
 0x7e6   :  { %6292 = vmatpush1.bf16.msra.mxu0 %v7574_v56  ;;  %1756 = vmatprep.mubr.f32.mxu0 %v7365_v0 }
 0x7e7   :  { %6294 = vmatprep.subr.bf16.mxu0 %v7576_v57 }
 0x7e8   :  { %6264 = vmatpush1.bf16.msra.mxu1 %v7635_v36 }
 0x7e9   :  { %6266 = vmatprep.subr.bf16.mxu1 %v7639_v37 }
 0x7ea   :  { %6296 = vmatpush1.bf16.msra.mxu0 %v7580_v62 }
 0x7eb   :  { %6298 = vmatprep.subr.bf16.mxu0 %v7583_v63 }
 0x7ec   :  { %6268 = vmatpush1.bf16.msra.mxu1 %v7654_v45 }
 0x7ed   :  { %6270 = vmatprep.subr.bf16.mxu1 %v7657_v46 }
 0x7ee   :  { %6300 = vmatpush1.bf16.msra.mxu0 %v7586_v6 }
 0x7ef   :  { %6302 = vmatprep.subr.bf16.mxu0 %v7589_v7 }
 0x7f0   :  { %6272 = vmatpush1.bf16.msra.mxu1 %v7666_v50 }
 0x7f1   :  { %6322 = vmatprep.subr.bf16.mxu1 %v7457_v4 }
 0x7f2   :  { %6304 = vmatpush1.bf16.msra.mxu0 %v7598_v15 }
 0x7f3   :  { %5910 = vmatmul.mubr.msk.f32.vlgmr.msra.gmra.mrb[8].mxu1 %vm108_vm1, %v1418_v53  ;;  %6306 = vmatprep.subr.bf16.mxu0 %v7601_v17 }
 0x7f4   :  { %6324 = vmatpush1.bf16.msra.mxu1 %v7468_v8  ;;  %1929 = vmatprep.mubr.f32.mxu1 %v7365_v0 }
 0x7f5   :  { %6326 = vmatprep.subr.bf16.mxu1 %v7470_v9 }
 0x7f8   :  { %6328 = vmatpush1.bf16.msra.mxu1 %v7486_v14 }
 0x7f9   :  { %6330 = vmatprep.subr.bf16.mxu1 %v7492_v16 }
 0x7fc   :  { %6332 = vmatpush1.bf16.msra.mxu1 %v7519_v23 }
 0x7fd   :  { %6334 = vmatprep.subr.bf16.mxu1 %v7523_v24 }
 0x800   :  { %6336 = vmatpush1.bf16.msra.mxu1 %v7533_v27 }
 0x801   :  { %1939 = vmatprep.subr.mxu1 %v7500_v18 }
 0x8b8   :  { %v1658_v55 = vpop.f32.mrb[8].mxu0 }
 0x8b9   :  { %v1663_v58 = vadd.f32 %v1658_v55, %v7556_v34  ;;  %v1660_v61 = vpop.f32.mrb[9].mxu0 }
 0x8ba   :  { %v1664_v2 = vadd.f32 %v1660_v61, %v7562_v42 }
 0x8bb   :  { %v5916_v1 = vmul.f32 -1.442695, %v1663_v58 }
 0x8bc   :  { %v5917_v47 = vmul.f32 -1.442695, %v1664_v2 }
 0x8bd   :  { %7028 = vpow2.f32 %v5916_v1 }
 0x8be   :  { %7030 = vtanh.f32 %v1664_v2 }
 0x8c6   :  { %v1487_v43 = vpop.f32.mrb[8].mxu1 }
 0x8c7   :  { %v7029_v5 = vpop.eup %7028  ;;  %v1492_v10 = vadd.f32 %v1487_v43, %v7709_v3  ;;  %v1489_v11 = vpop.f32.mrb[9].mxu1 }
 0x8c8   :  { %v1668_v12 = vadd.f32 1.0, %v7029_v5  ;;  %v7031_v21 = vpop.eup %7030  ;;  %v1493_v59 = vadd.f32 %v1489_v11, %v7714_v20 }
 0x8c9   :  { %v5911_v13 = vmul.f32 -1.442695, %v1492_v10 }
 0x8ca   :  { %7032 = vrcp.f32 %v1668_v12  ;;  %v5912_v41 = vmul.f32 -1.442695, %v1493_v59 }
 0x8cb   :  { %7034 = vpow2.f32 %v5911_v13 }
 0x8cc   :  { %7036 = vtanh.f32 %v1493_v59 }
 0x8d4   :  { %v7033_v18 = vpop.eup %7032 }
 0x8d5   :  { %v1679_v25 = vmul.f32 %v7033_v18, %v7031_v21  ;;  %v7035_v32 = vpop.eup %7034  ;;  %v1678_v44 = vmul.f32 %v7033_v18, %v7827_v38 }
 0x8d6   :  { %v1497_v30 = vadd.f32 1.0, %v7035_v32  ;;  %v7037_v33 = vpop.eup %7036 }
 0x8d7   :  { %1681 = vrot.lane.b32.xlu1 %v1679_v25, %s7366_s3 }
 0x8d8   :  { %7038 = vrcp.f32 %v1497_v30 }
 0x8d9   :  { %7040 = vpow2.f32 %v5917_v47 }
 0x8da   :  { %7042 = vpow2.f32 %v5912_v41 }
 0x8e2   :  { %v7039_v35 = vpop.eup %7038 }
 0x8e3   :  { %v1508_v60 = vmul.f32 %v7039_v35, %v7037_v33  ;;  %v7041_v31 = vpop.eup %7040  ;;  %v1507_v54 = vmul.f32 %v7039_v35, %v7831_v39  ;;  %v5922_v39 = vld [vmem:[%s8563_s0 + $0x28] sm:$0xff] }
 0x8e4   :  { %v1675_v40 = vadd.f32 1.0, %v7041_v31  ;;  %v7043_v49 = vpop.eup %7042 }
 0x8e5   :  { %1510 = vrot.lane.b32.xlu0 %v1508_v60, %s7366_s3  ;;  %v1504_v22 = vadd.f32 1.0, %v7043_v49 }
 0x8e6   :  { %7044 = vrcp.f32 %v1675_v40 }
 0x8f0   :  { %v7045_v51 = vpop.eup %7044 }
 0x949   :  { %v1682_v48 = vpop.permute.xlu1 %1681 }
 0x94a   :  { %v7880_v29 = vadd.f32 %v1682_v48, %v1678_v44 }
 0x94c   :  { %7046 = vtanh.f32 %v7880_v29 }
 0x94d   :  { %7048 = vrcp.f32 %v1504_v22 }
 0x956   :  { %v7047_v53 = vpop.eup %7046 }
 0x957   :  { %v1686_v55 = vmul.f32 %v7047_v53, %v7045_v51  ;;  %v1511_v58 = vpop.permute.xlu0 %1510  ;;  %v7049_v38 = vpop.eup %7048 }
 0x958   :  { %v7884_v61 = vadd.f32 %v1511_v58, %v1507_v54 }
 0x959   :  { %1764 = vrot.lane.b32.xlu1 %v1686_v55, %s7366_s3 }
 0x95a   :  { %7050 = vtanh.f32 %v7884_v61 }
 0x964   :  { %v7051_v1 = vpop.eup %7050 }
 0x965   :  { %v1515_v2 = vmul.f32 %v7051_v1, %v7049_v38 }
 0x967   :  { %1688 = vrot.lane.b32.xlu0 %v1515_v2, %s7366_s3 }
 0x9cb   :  { %v1765_v43 = vpop.permute.xlu1 %1764 }
 0x9cc   :  { %5923 = vmatmul.mubr.msk.f32.vlgmr.msra.gmra.mrb[10].mxu1 %vm108_vm1, %v1765_v43 }
 0x9cd   :  { %1940 = vmatpush1.msra.mxu1 %v7505_v19  ;;  %2003 = vmatprep.mubr.f32.mxu1 %v7365_v0  ;;  %v7928_v19 = vld [vmem:[%s8564_s1 + $0x8] sm:$0xff] }
 0x9ce   :  { %6338 = vmatprep.subr.bf16.mxu1 %v7572_v52 }
 0x9d4   :  { %5924 = vmatmul.mubr.msk.f32.vlgmr.msra.gmra.mrb[10].mxu1 %vm183_vm0, %v5922_v39 }
 0x9d5   :  { %6340 = vmatpush1.bf16.msra.mxu1 %v7574_v56  ;;  %2103 = vmatprep.mubr.f32.mxu1 %v7365_v0 }
 0x9d6   :  { %6342 = vmatprep.subr.bf16.mxu1 %v7576_v57 }
 0x9d9   :  { %6344 = vmatpush1.bf16.msra.mxu1 %v7580_v62  ;;  %v1689_v5 = vpop.permute.xlu0 %1688 }
 0x9da   :  { %6346 = vmatprep.subr.bf16.mxu1 %v7583_v63  ;;  %5918 = vmatmul.mubr.msk.f32.vlgmr.msra.gmra.mrb[10].mxu0 %vm108_vm1, %v1689_v5 }
 0x9db   :  { %6308 = vmatpush1.bf16.msra.mxu0 %v7616_v26  ;;  %1832 = vmatprep.mubr.f32.mxu0 %v7365_v0 }
 0x9dc   :  { %6310 = vmatprep.subr.bf16.mxu0 %v7619_v28 }
 0x9dd   :  { %6348 = vmatpush1.bf16.msra.mxu1 %v7586_v6 }
 0x9de   :  { %6350 = vmatprep.subr.bf16.mxu1 %v7589_v7 }
 0x9df   :  { %6312 = vmatpush1.bf16.msra.mxu0 %v7635_v36 }
 0x9e0   :  { %6314 = vmatprep.subr.bf16.mxu0 %v7639_v37 }
 0x9e1   :  { %6352 = vmatpush1.bf16.msra.mxu1 %v7598_v15 }
 0x9e2   :  { %6354 = vmatprep.subr.bf16.mxu1 %v7601_v17 }
 0x9e3   :  { %6316 = vmatpush1.bf16.msra.mxu0 %v7654_v45 }
 0x9e4   :  { %6318 = vmatprep.subr.bf16.mxu0 %v7657_v46 }
 0x9e7   :  { %6320 = vmatpush1.bf16.msra.mxu0 %v7666_v50 }
 0x9e8   :  { %6370 = vmatprep.subr.bf16.mxu0 %v7457_v4 }
 0x9ea   :  { %5919 = vmatmul.mubr.msk.f32.vlgmr.msra.gmra.mrb[10].mxu0 %vm108_vm1, %v1765_v43 }
 0x9eb   :  { %6372 = vmatpush1.bf16.msra.mxu0 %v7468_v8  ;;  %2276 = vmatprep.mubr.f32.mxu0 %v7365_v0 }
 0x9ec   :  { %6374 = vmatprep.subr.bf16.mxu0 %v7470_v9 }
 0x9ef   :  { %6376 = vmatpush1.bf16.msra.mxu0 %v7486_v14 }
 0x9f0   :  { %6378 = vmatprep.subr.bf16.mxu0 %v7492_v16 }
 0x9f3   :  { %6380 = vmatpush1.bf16.msra.mxu0 %v7519_v23 }
 0x9f4   :  { %6382 = vmatprep.subr.bf16.mxu0 %v7523_v24 }
 0x9f7   :  { %6384 = vmatpush1.bf16.msra.mxu0 %v7533_v27 }
 0x9f8   :  { %2286 = vmatprep.subr.mxu0 %v7928_v19 }
 0xaa7   :  { %v2005_v10 = vpop.f32.mrb[10].mxu1 }
 0xaa8   :  { %v2010_v11 = vadd.f32 %v2005_v10, %v7556_v34  ;;  %v2007_v12 = vpop.f32.mrb[11].mxu1 }
 0xaa9   :  { %v2011_v21 = vadd.f32 %v2007_v12, %v7562_v42 }
 0xaaa   :  { %v5925_v13 = vmul.f32 -1.442695, %v2010_v11 }
 0xaab   :  { %v5926_v51 = vmul.f32 -1.442695, %v2011_v21 }
 0xaac   :  { %7052 = vpow2.f32 %v5925_v13 }
 0xaad   :  { %7054 = vtanh.f32 %v2011_v21 }
 0xab6   :  { %v7053_v18 = vpop.eup %7052 }
 0xab7   :  { %v2015_v59 = vadd.f32 1.0, %v7053_v18  ;;  %v7055_v35 = vpop.eup %7054 }
 0xab9   :  { %7056 = vrcp.f32 %v2015_v59  ;;  %v7951_v59 = vld [vmem:[%s8564_s1] sm:$0xff] }
 0xabd   :  { %v1834_v25 = vpop.f32.mrb[10].mxu0 }
 0xabe   :  { %v1839_v32 = vadd.f32 %v1834_v25, %v7709_v3  ;;  %v1836_v30 = vpop.f32.mrb[11].mxu0 }
 0xabf   :  { %v1840_v31 = vadd.f32 %v1836_v30, %v7714_v20 }
 0xac0   :  { %v5920_v33 = vmul.f32 -1.442695, %v1839_v32 }
 0xac1   :  { %v5921_v38 = vmul.f32 -1.442695, %v1840_v31 }
 0xac2   :  { %7058 = vpow2.f32 %v5920_v33 }
 0xac3   :  { %v7057_v60 = vpop.eup %7056  ;;  %7060 = vtanh.f32 %v1840_v31 }
 0xac4   :  { %v2026_v47 = vmul.f32 %v7057_v60, %v7055_v35  ;;  %v2025_v54 = vmul.f32 %v7057_v60, %v7880_v29 }
 0xac6   :  { %2028 = vrot.lane.b32.xlu1 %v2026_v47, %s7366_s3 }
 0xacc   :  { %v7059_v41 = vpop.eup %7058 }
 0xacd   :  { %v1844_v40 = vadd.f32 1.0, %v7059_v41  ;;  %v7061_v44 = vpop.eup %7060 }
 0xacf   :  { %7062 = vrcp.f32 %v1844_v40 }
 0xad0   :  { %7064 = vpow2.f32 %v5926_v51 }
 0xad9   :  { %v7063_v48 = vpop.eup %7062 }
 0xada   :  { %v1855_v49 = vmul.f32 %v7063_v48, %v7061_v44  ;;  %v7065_v53 = vpop.eup %7064  ;;  %v1854_v10 = vmul.f32 %v7063_v48, %v7884_v61  ;;  %v5931_v61 = vld [vmem:[%s8563_s0 + $0x30] sm:$0xff] }
 0xadb   :  { %v2022_v22 = vadd.f32 1.0, %v7065_v53 }
 0xadc   :  { %1857 = vrot.lane.b32.xlu0 %v1855_v49, %s7366_s3 }
 0xadd   :  { %7066 = vrcp.f32 %v2022_v22 }
 0xae7   :  { %v7067_v1 = vpop.eup %7066 }
 0xb38   :  { %v2029_v55 = vpop.permute.xlu1 %2028 }
 0xb39   :  { %v7938_v58 = vadd.f32 %v2029_v55, %v2025_v54 }
 0xb3b   :  { %7068 = vtanh.f32 %v7938_v58 }
 0xb3c   :  { %7070 = vpow2.f32 %v5921_v38 }
 0xb45   :  { %v7069_v2 = vpop.eup %7068 }
 0xb46   :  { %v2033_v43 = vmul.f32 %v7069_v2, %v7067_v1  ;;  %v7071_v39 = vpop.eup %7070 }
 0xb47   :  { %v1851_v5 = vadd.f32 1.0, %v7071_v39 }
 0xb48   :  { %2111 = vrot.lane.b32.xlu1 %v2033_v43, %s7366_s3 }
 0xb49   :  { %7072 = vrcp.f32 %v1851_v5 }
 0xb4e   :  { %v1858_v11 = vpop.permute.xlu0 %1857 }
 0xb4f   :  { %v7943_v12 = vadd.f32 %v1858_v11, %v1854_v10 }
 0xb51   :  { %7074 = vtanh.f32 %v7943_v12 }
 0xb53   :  { %v7073_v29 = vpop.eup %7072 }
 0xb5b   :  { %v7075_v13 = vpop.eup %7074 }
 0xb5c   :  { %v1862_v21 = vmul.f32 %v7075_v13, %v7073_v29 }
 0xb5e   :  { %2035 = vrot.lane.b32.xlu0 %v1862_v21, %s7366_s3 }
 0xbba   :  { %v2112_v18 = vpop.permute.xlu1 %2111 }
 0xbbb   :  { %5932 = vmatmul.mubr.msk.f32.vlgmr.msra.gmra.mrb[12].mxu0 %vm108_vm1, %v2112_v18 }
 0xbbc   :  { %2287 = vmatpush1.msra.mxu0 %v7951_v59  ;;  %2350 = vmatprep.mubr.f32.mxu0 %v7365_v0 }
 0xbbd   :  { %6386 = vmatprep.subr.bf16.mxu0 %v7572_v52 }
 0xbc3   :  { %5933 = vmatmul.mubr.msk.f32.vlgmr.msra.gmra.mrb[12].mxu0 %vm183_vm0, %v5931_v61 }
 0xbc4   :  { %6388 = vmatpush1.bf16.msra.mxu0 %v7574_v56  ;;  %2450 = vmatprep.mubr.f32.mxu0 %v7365_v0 }
 0xbc5   :  { %6390 = vmatprep.subr.bf16.mxu0 %v7576_v57 }
 0xbc8   :  { %6392 = vmatpush1.bf16.msra.mxu0 %v7580_v62 }
 0xbc9   :  { %6394 = vmatprep.subr.bf16.mxu0 %v7583_v63 }
 0xbcc   :  { %6396 = vmatpush1.bf16.msra.mxu0 %v7586_v6 }
 0xbcd   :  { %6398 = vmatprep.subr.bf16.mxu0 %v7589_v7 }
 0xbd0   :  { %6400 = vmatpush1.bf16.msra.mxu0 %v7598_v15  ;;  %v2036_v25 = vpop.permute.xlu0 %2035 }
 0xbd1   :  { %6402 = vmatprep.subr.bf16.mxu0 %v7601_v17  ;;  %5927 = vmatmul.mubr.msk.f32.vlgmr.msra.gmra.mrb[12].mxu1 %vm108_vm1, %v2036_v25 }
 0xbd2   :  { %6356 = vmatpush1.bf16.msra.mxu1 %v7616_v26  ;;  %2179 = vmatprep.mubr.f32.mxu1 %v7365_v0 }
 0xbd3   :  { %6358 = vmatprep.subr.bf16.mxu1 %v7619_v28 }
 0xbd6   :  { %6360 = vmatpush1.bf16.msra.mxu1 %v7635_v36 }
 0xbd7   :  { %6362 = vmatprep.subr.bf16.mxu1 %v7639_v37 }
 0xbda   :  { %6364 = vmatpush1.bf16.msra.mxu1 %v7654_v45 }
 0xbdb   :  { %6366 = vmatprep.subr.bf16.mxu1 %v7657_v46 }
 0xbde   :  { %6368 = vmatpush1.bf16.msra.mxu1 %v7666_v50 }
 0xbdf   :  { %6418 = vmatprep.subr.bf16.mxu1 %v7457_v4 }
 0xbe1   :  { %5928 = vmatmul.mubr.msk.f32.vlgmr.msra.gmra.mrb[12].mxu1 %vm108_vm1, %v2112_v18 }
 0xbe2   :  { %6420 = vmatpush1.bf16.msra.mxu1 %v7468_v8  ;;  %2623 = vmatprep.mubr.f32.mxu1 %v7365_v0 }
 0xbe3   :  { %6422 = vmatprep.subr.bf16.mxu1 %v7470_v9 }
 0xbe6   :  { %6424 = vmatpush1.bf16.msra.mxu1 %v7486_v14 }
 0xbe7   :  { %6426 = vmatprep.subr.bf16.mxu1 %v7492_v16 }
 0xbea   :  { %6428 = vmatpush1.bf16.msra.mxu1 %v7519_v23 }
 0xbeb   :  { %6430 = vmatprep.subr.bf16.mxu1 %v7523_v24 }
 0xbee   :  { %6432 = vmatpush1.bf16.msra.mxu1 %v7533_v27 }
 0xbef   :  { %2633 = vmatprep.subr.mxu1 %v7928_v19 }
 0xc96   :  { %v2352_v32 = vpop.f32.mrb[12].mxu0 }
 0xc97   :  { %v2357_v30 = vadd.f32 %v2352_v32, %v7556_v34  ;;  %v2354_v33 = vpop.f32.mrb[13].mxu0 }
 0xc98   :  { %v2358_v60 = vadd.f32 %v2354_v33, %v7562_v42 }
 0xc99   :  { %v5934_v35 = vmul.f32 -1.442695, %v2357_v30 }
 0xc9a   :  { %v5935_v43 = vmul.f32 -1.442695, %v2358_v60 }
 0xc9b   :  { %7076 = vpow2.f32 %v5934_v35 }
 0xc9c   :  { %7078 = vtanh.f32 %v2358_v60 }
 0xca5   :  { %v7077_v47 = vpop.eup %7076 }
 0xca6   :  { %v2362_v31 = vadd.f32 1.0, %v7077_v47  ;;  %v7079_v41 = vpop.eup %7078 }
 0xca8   :  { %7080 = vrcp.f32 %v2362_v31 }
 0xcb2   :  { %v7081_v40 = vpop.eup %7080 }
 0xcb3   :  { %v2373_v44 = vmul.f32 %v7081_v40, %v7079_v41  ;;  %v2372_v10 = vmul.f32 %v7081_v40, %v7938_v58 }
 0xcb4   :  { %v2181_v48 = vpop.f32.mrb[12].mxu1 }
 0xcb5   :  { %2375 = vrot.lane.b32.xlu1 %v2373_v44, %s7366_s3  ;;  %v2186_v49 = vadd.f32 %v2181_v48, %v7709_v3  ;;  %v2183_v51 = vpop.f32.mrb[13].mxu1 }
 0xcb6   :  { %v2187_v22 = vadd.f32 %v2183_v51, %v7714_v20 }
 0xcb7   :  { %v5929_v53 = vmul.f32 -1.442695, %v2186_v49 }
 0xcb8   :  { %v5930_v21 = vmul.f32 -1.442695, %v2187_v22 }
 0xcb9   :  { %7082 = vpow2.f32 %v5929_v53 }
 0xcba   :  { %7084 = vtanh.f32 %v2187_v22 }
 0xcc3   :  { %v7083_v54 = vpop.eup %7082 }
 0xcc4   :  { %v2191_v55 = vadd.f32 1.0, %v7083_v54  ;;  %v7085_v38 = vpop.eup %7084 }
 0xcc6   :  { %7086 = vrcp.f32 %v2191_v55 }
 0xcc7   :  { %7088 = vpow2.f32 %v5935_v43 }
 0xcd0   :  { %v7087_v1 = vpop.eup %7086 }
 0xcd1   :  { %v2202_v2 = vmul.f32 %v7087_v1, %v7085_v38  ;;  %v7089_v39 = vpop.eup %7088  ;;  %v2201_v30 = vmul.f32 %v7087_v1, %v7943_v12  ;;  %v5940_v12 = vld [vmem:[%s8563_s0 + $0x38] sm:$0xff] }
 0xcd2   :  { %v2369_v5 = vadd.f32 1.0, %v7089_v39 }
 0xcd3   :  { %2204 = vrot.lane.b32.xlu0 %v2202_v2, %s7366_s3 }
 0xcd4   :  { %7090 = vrcp.f32 %v2369_v5 }
 0xcde   :  { %v7091_v13 = vpop.eup %7090 }
 0xd27   :  { %v2376_v11 = vpop.permute.xlu1 %2375 }
 0xd28   :  { %v7996_v29 = vadd.f32 %v2376_v11, %v2372_v10 }
 0xd2a   :  { %7092 = vtanh.f32 %v7996_v29 }
 0xd2b   :  { %7094 = vpow2.f32 %v5930_v21 }
 0xd34   :  { %v7093_v18 = vpop.eup %7092 }
 0xd35   :  { %v2380_v61 = vmul.f32 %v7093_v18, %v7091_v13  ;;  %v7095_v25 = vpop.eup %7094 }
 0xd36   :  { %v2198_v32 = vadd.f32 1.0, %v7095_v25 }
 0xd37   :  { %2458 = vrot.lane.b32.xlu1 %v2380_v61, %s7366_s3 }
 0xd38   :  { %7096 = vrcp.f32 %v2198_v32 }
 0xd42   :  { %v7097_v58 = vpop.eup %7096 }
 0xd45   :  { %v2205_v33 = vpop.permute.xlu0 %2204 }
 0xd46   :  { %v8001_v35 = vadd.f32 %v2205_v33, %v2201_v30 }
 0xd48   :  { %7098 = vtanh.f32 %v8001_v35 }
 0xd52   :  { %v7099_v60 = vpop.eup %7098 }
 0xd53   :  { %v2209_v47 = vmul.f32 %v7099_v60, %v7097_v58 }
 0xd55   :  { %2382 = vrot.lane.b32.xlu0 %v2209_v47, %s7366_s3 }
 0xda9   :  { %v2459_v31 = vpop.permute.xlu1 %2458 }
 0xdaa   :  { %5941 = vmatmul.mubr.msk.f32.vlgmr.msra.gmra.mrb[14].mxu1 %vm108_vm1, %v2459_v31 }
 0xdab   :  { %2634 = vmatpush1.msra.mxu1 %v7951_v59  ;;  %2697 = vmatprep.mubr.f32.mxu1 %v7365_v0 }
 0xdac   :  { %6434 = vmatprep.subr.bf16.mxu1 %v7572_v52 }
 0xdb2   :  { %5942 = vmatmul.mubr.msk.f32.vlgmr.msra.gmra.mrb[14].mxu1 %vm183_vm0, %v5940_v12 }
 0xdb3   :  { %6436 = vmatpush1.bf16.msra.mxu1 %v7574_v56  ;;  %2797 = vmatprep.mubr.f32.mxu1 %v7365_v0 }
 0xdb4   :  { %6438 = vmatprep.subr.bf16.mxu1 %v7576_v57 }
 0xdb7   :  { %6440 = vmatpush1.bf16.msra.mxu1 %v7580_v62 }
 0xdb8   :  { %6442 = vmatprep.subr.bf16.mxu1 %v7583_v63 }
 0xdbb   :  { %6444 = vmatpush1.bf16.msra.mxu1 %v7586_v6 }
 0xdbc   :  { %6446 = vmatprep.subr.bf16.mxu1 %v7589_v7 }
 0xdbf   :  { %6448 = vmatpush1.bf16.msra.mxu1 %v7598_v15 }
 0xdc0   :  { %6450 = vmatprep.subr.bf16.mxu1 %v7601_v17 }
 0xdc7   :  { %v2383_v41 = vpop.permute.xlu0 %2382 }
 0xdc8   :  { %5936 = vmatmul.mubr.msk.f32.vlgmr.msra.gmra.mrb[14].mxu0 %vm108_vm1, %v2383_v41 }
 0xdc9   :  { %6404 = vmatpush1.bf16.msra.mxu0 %v7616_v26  ;;  %2526 = vmatprep.mubr.f32.mxu0 %v7365_v0 }
 0xdca   :  { %6406 = vmatprep.subr.bf16.mxu0 %v7619_v28 }
 0xdcd   :  { %6408 = vmatpush1.bf16.msra.mxu0 %v7635_v36 }
 0xdce   :  { %6410 = vmatprep.subr.bf16.mxu0 %v7639_v37 }
 0xdd1   :  { %6412 = vmatpush1.bf16.msra.mxu0 %v7654_v45 }
 0xdd2   :  { %6414 = vmatprep.subr.bf16.mxu0 %v7657_v46 }
 0xdd5   :  { %6416 = vmatpush1.bf16.msra.mxu0 %v7666_v50 }
 0xdd6   :  { %6466 = vmatprep.subr.bf16.mxu0 %v7457_v4 }
 0xdd8   :  { %5937 = vmatmul.mubr.msk.f32.vlgmr.msra.gmra.mrb[14].mxu0 %vm108_vm1, %v2459_v31 }
 0xdd9   :  { %6468 = vmatpush1.bf16.msra.mxu0 %v7468_v8  ;;  %2970 = vmatprep.mubr.f32.mxu0 %v7365_v0 }
 0xdda   :  { %6470 = vmatprep.subr.bf16.mxu0 %v7470_v9 }
 0xddd   :  { %6472 = vmatpush1.bf16.msra.mxu0 %v7486_v14 }
 0xdde   :  { %6474 = vmatprep.subr.bf16.mxu0 %v7492_v16 }
 0xde1   :  { %6476 = vmatpush1.bf16.msra.mxu0 %v7519_v23 }
 0xde2   :  { %6478 = vmatprep.subr.bf16.mxu0 %v7523_v24 }
 0xde5   :  { %6480 = vmatpush1.bf16.msra.mxu0 %v7533_v27 }
 0xde6   :  { %2980 = vmatprep.subr.mxu0 %v7928_v19 }
 0xe85   :  { %v2699_v40 = vpop.f32.mrb[14].mxu1 }
 0xe86   :  { %v2704_v44 = vadd.f32 %v2699_v40, %v7556_v34  ;;  %v2701_v48 = vpop.f32.mrb[15].mxu1 }
 0xe87   :  { %v2705_v51 = vadd.f32 %v2701_v48, %v7562_v42 }
 0xe88   :  { %v5943_v49 = vmul.f32 -1.442695, %v2704_v44 }
 0xe89   :  { %v5944_v61 = vmul.f32 -1.442695, %v2705_v51 }
 0xe8a   :  { %7100 = vpow2.f32 %v5943_v49 }
 0xe8b   :  { %7102 = vtanh.f32 %v2705_v51 }
 0xe94   :  { %v7101_v53 = vpop.eup %7100 }
 0xe95   :  { %v2709_v22 = vadd.f32 1.0, %v7101_v53  ;;  %v7103_v54 = vpop.eup %7102 }
 0xe97   :  { %7104 = vrcp.f32 %v2709_v22 }
 0xea1   :  { %v7105_v55 = vpop.eup %7104 }
 0xea2   :  { %v2720_v38 = vmul.f32 %v7105_v55, %v7103_v54  ;;  %v2719_v30 = vmul.f32 %v7105_v55, %v7996_v29 }
 0xea4   :  { %2722 = vrot.lane.b32.xlu1 %v2720_v38, %s7366_s3 }
 0xeab   :  { %v2528_v1 = vpop.f32.mrb[14].mxu0 }
 0xeac   :  { %v2533_v2 = vadd.f32 %v2528_v1, %v7709_v3  ;;  %v2530_v43 = vpop.f32.mrb[15].mxu0 }
 0xead   :  { %v2534_v5 = vadd.f32 %v2530_v43, %v7714_v20 }
 0xeae   :  { %v5938_v39 = vmul.f32 -1.442695, %v2533_v2 }
 0xeaf   :  { %v5939_v12 = vmul.f32 -1.442695, %v2534_v5 }
 0xeb0   :  { %7106 = vpow2.f32 %v5938_v39 }
 0xeb1   :  { %7108 = vtanh.f32 %v2534_v5 }
 0xeba   :  { %v7107_v10 = vpop.eup %7106 }
 0xebb   :  { %v2538_v11 = vadd.f32 1.0, %v7107_v10  ;;  %v7109_v13 = vpop.eup %7108 }
 0xebd   :  { %7110 = vrcp.f32 %v2538_v11 }
 0xebe   :  { %7112 = vpow2.f32 %v5944_v61 }
 0xec7   :  { %v7111_v21 = vpop.eup %7110 }
 0xec8   :  { %v2549_v18 = vmul.f32 %v7111_v21, %v7109_v13  ;;  %v7113_v25 = vpop.eup %7112  ;;  %v2548_v44 = vmul.f32 %v7111_v21, %v8001_v35  ;;  %v5949_v35 = vld [vmem:[%s8563_s0 + $0x40] sm:$0xff] }
 0xec9   :  { %v2716_v32 = vadd.f32 1.0, %v7113_v25 }
 0xeca   :  { %2551 = vrot.lane.b32.xlu0 %v2549_v18, %s7366_s3 }
 0xecb   :  { %7114 = vrcp.f32 %v2716_v32 }
 0xed5   :  { %v7115_v60 = vpop.eup %7114 }
 0xf16   :  { %v2723_v33 = vpop.permute.xlu1 %2722 }
 0xf17   :  { %v8049_v58 = vadd.f32 %v2723_v33, %v2719_v30 }
 0xf19   :  { %7116 = vtanh.f32 %v8049_v58 }
 0xf1a   :  { %7118 = vpow2.f32 %v5939_v12 }
 0xf23   :  { %v7117_v47 = vpop.eup %7116 }
 0xf24   :  { %v2727_v31 = vmul.f32 %v7117_v47, %v7115_v60  ;;  %v7119_v41 = vpop.eup %7118 }
 0xf25   :  { %v2545_v40 = vadd.f32 1.0, %v7119_v41 }
 0xf26   :  { %2805 = vrot.lane.b32.xlu1 %v2727_v31, %s7366_s3 }
 0xf27   :  { %7120 = vrcp.f32 %v2545_v40 }
 0xf31   :  { %v7121_v29 = vpop.eup %7120 }
 0xf3c   :  { %v2552_v48 = vpop.permute.xlu0 %2551 }
 0xf3d   :  { %v8054_v49 = vadd.f32 %v2552_v48, %v2548_v44 }
 0xf3f   :  { %7122 = vtanh.f32 %v8054_v49 }
 0xf49   :  { %v7123_v51 = vpop.eup %7122 }
 0xf4a   :  { %v2556_v53 = vmul.f32 %v7123_v51, %v7121_v29 }
 0xf4c   :  { %2729 = vrot.lane.b32.xlu0 %v2556_v53, %s7366_s3 }
 0xf98   :  { %v2806_v22 = vpop.permute.xlu1 %2805 }
 0xf99   :  { %5950 = vmatmul.mubr.msk.f32.vlgmr.msra.gmra.mrb[16].mxu0 %vm108_vm1, %v2806_v22 }
 0xf9a   :  { %2981 = vmatpush1.msra.mxu0 %v7951_v59  ;;  %3044 = vmatprep.mubr.f32.mxu0 %v7365_v0 }
 0xf9b   :  { %6482 = vmatprep.subr.bf16.mxu0 %v7572_v52 }
 0xfa1   :  { %5951 = vmatmul.mubr.msk.f32.vlgmr.msra.gmra.mrb[16].mxu0 %vm183_vm0, %v5949_v35 }
 0xfa2   :  { %6484 = vmatpush1.bf16.msra.mxu0 %v7574_v56  ;;  %3144 = vmatprep.mubr.f32.mxu0 %v7365_v0 }
 0xfa3   :  { %6486 = vmatprep.subr.bf16.mxu0 %v7576_v57 }
 0xfa6   :  { %6488 = vmatpush1.bf16.msra.mxu0 %v7580_v62 }
 0xfa7   :  { %6490 = vmatprep.subr.bf16.mxu0 %v7583_v63 }
 0xfaa   :  { %6492 = vmatpush1.bf16.msra.mxu0 %v7586_v6 }
 0xfab   :  { %6494 = vmatprep.subr.bf16.mxu0 %v7589_v7 }
 0xfae   :  { %6496 = vmatpush1.bf16.msra.mxu0 %v7598_v15 }
 0xfaf   :  { %6498 = vmatprep.subr.bf16.mxu0 %v7601_v17 }
 0xfbe   :  { %v2730_v54 = vpop.permute.xlu0 %2729 }
 0xfbf   :  { %5945 = vmatmul.mubr.msk.f32.vlgmr.msra.gmra.mrb[16].mxu1 %vm108_vm1, %v2730_v54 }
 0xfc0   :  { %6452 = vmatpush1.bf16.msra.mxu1 %v7616_v26  ;;  %2873 = vmatprep.mubr.f32.mxu1 %v7365_v0 }
 0xfc1   :  { %6454 = vmatprep.subr.bf16.mxu1 %v7619_v28 }
 0xfc4   :  { %6456 = vmatpush1.bf16.msra.mxu1 %v7635_v36 }
 0xfc5   :  { %6458 = vmatprep.subr.bf16.mxu1 %v7639_v37 }
 0xfc8   :  { %6460 = vmatpush1.bf16.msra.mxu1 %v7654_v45 }
 0xfc9   :  { %6462 = vmatprep.subr.bf16.mxu1 %v7657_v46 }
 0xfcc   :  { %6464 = vmatpush1.bf16.msra.mxu1 %v7666_v50 }
 0xfcd   :  { %6514 = vmatprep.subr.bf16.mxu1 %v7457_v4 }
 0xfcf   :  { %5946 = vmatmul.mubr.msk.f32.vlgmr.msra.gmra.mrb[16].mxu1 %vm108_vm1, %v2806_v22 }
 0xfd0   :  { %6516 = vmatpush1.bf16.msra.mxu1 %v7468_v8  ;;  %3317 = vmatprep.mubr.f32.mxu1 %v7365_v0 }
 0xfd1   :  { %6518 = vmatprep.subr.bf16.mxu1 %v7470_v9 }
 0xfd4   :  { %6520 = vmatpush1.bf16.msra.mxu1 %v7486_v14 }
 0xfd5   :  { %6522 = vmatprep.subr.bf16.mxu1 %v7492_v16 }
 0xfd8   :  { %6524 = vmatpush1.bf16.msra.mxu1 %v7519_v23 }
 0xfd9   :  { %6526 = vmatprep.subr.bf16.mxu1 %v7523_v24 }
 0xfdc   :  { %6528 = vmatpush1.bf16.msra.mxu1 %v7533_v27 }
 0xfdd   :  { %3327 = vmatprep.subr.mxu1 %v7928_v19 }
0x1074   :  { %v3046_v55 = vpop.f32.mrb[16].mxu0 }
0x1075   :  { %v3051_v38 = vadd.f32 %v3046_v55, %v7556_v34  ;;  %v3048_v1 = vpop.f32.mrb[17].mxu0 }
0x1076   :  { %v3052_v43 = vadd.f32 %v3048_v1, %v7562_v42 }
0x1077   :  { %v5952_v2 = vmul.f32 -1.442695, %v3051_v38 }
0x1078   :  { %v5953_v12 = vmul.f32 -1.442695, %v3052_v43 }
0x1079   :  { %7124 = vpow2.f32 %v5952_v2 }
0x107a   :  { %7126 = vtanh.f32 %v3052_v43 }
0x1083   :  { %v7125_v39 = vpop.eup %7124 }
0x1084   :  { %v3056_v5 = vadd.f32 1.0, %v7125_v39  ;;  %v7127_v10 = vpop.eup %7126 }
0x1086   :  { %7128 = vrcp.f32 %v3056_v5 }
0x1090   :  { %v7129_v11 = vpop.eup %7128 }
0x1091   :  { %v3067_v13 = vmul.f32 %v7129_v11, %v7127_v10  ;;  %v3066_v44 = vmul.f32 %v7129_v11, %v8049_v58 }
0x1093   :  { %3069 = vrot.lane.b32.xlu1 %v3067_v13, %s7366_s3 }
0x10a2   :  { %v2875_v21 = vpop.f32.mrb[16].mxu1 }
0x10a3   :  { %v2880_v18 = vadd.f32 %v2875_v21, %v7709_v3  ;;  %v2877_v61 = vpop.f32.mrb[17].mxu1 }
0x10a4   :  { %v2881_v32 = vadd.f32 %v2877_v61, %v7714_v20 }
0x10a5   :  { %v5947_v25 = vmul.f32 -1.442695, %v2880_v18 }
0x10a6   :  { %v5948_v35 = vmul.f32 -1.442695, %v2881_v32 }
0x10a7   :  { %7130 = vpow2.f32 %v5947_v25 }
0x10a8   :  { %7132 = vtanh.f32 %v2881_v32 }
0x10b1   :  { %v7131_v30 = vpop.eup %7130 }
0x10b2   :  { %v2885_v33 = vadd.f32 1.0, %v7131_v30  ;;  %v7133_v60 = vpop.eup %7132 }
0x10b4   :  { %7134 = vrcp.f32 %v2885_v33 }
0x10b5   :  { %7136 = vpow2.f32 %v5953_v12 }
0x10be   :  { %v7135_v47 = vpop.eup %7134 }
0x10bf   :  { %v2896_v31 = vmul.f32 %v7135_v47, %v7133_v60  ;;  %v7137_v41 = vpop.eup %7136  ;;  %v2895_v38 = vmul.f32 %v7135_v47, %v8054_v49  ;;  %v5958_v49 = vld [vmem:[%s8563_s0 + $0x48] sm:$0xff] }
0x10c0   :  { %v3063_v40 = vadd.f32 1.0, %v7137_v41 }
0x10c1   :  { %2898 = vrot.lane.b32.xlu0 %v2896_v31, %s7366_s3 }
0x10c2   :  { %7138 = vrcp.f32 %v3063_v40 }
0x10cc   :  { %v7139_v51 = vpop.eup %7138 }
0x1105   :  { %v3070_v48 = vpop.permute.xlu1 %3069 }
0x1106   :  { %v8102_v29 = vadd.f32 %v3070_v48, %v3066_v44 }
0x1108   :  { %7140 = vtanh.f32 %v8102_v29 }
0x1109   :  { %7142 = vpow2.f32 %v5948_v35 }
0x1112   :  { %v7141_v53 = vpop.eup %7140 }
0x1113   :  { %v3074_v22 = vmul.f32 %v7141_v53, %v7139_v51  ;;  %v7143_v54 = vpop.eup %7142 }
0x1114   :  { %v2892_v55 = vadd.f32 1.0, %v7143_v54 }
0x1115   :  { %3152 = vrot.lane.b32.xlu1 %v3074_v22, %s7366_s3 }
0x1116   :  { %7144 = vrcp.f32 %v2892_v55 }
0x1120   :  { %v7145_v58 = vpop.eup %7144 }
0x1133   :  { %v2899_v1 = vpop.permute.xlu0 %2898 }
0x1134   :  { %v8107_v2 = vadd.f32 %v2899_v1, %v2895_v38 }
0x1136   :  { %7146 = vtanh.f32 %v8107_v2 }
0x1140   :  { %v7147_v43 = vpop.eup %7146 }
0x1141   :  { %v2903_v39 = vmul.f32 %v7147_v43, %v7145_v58 }
0x1143   :  { %3076 = vrot.lane.b32.xlu0 %v2903_v39, %s7366_s3 }
0x1187   :  { %v3153_v5 = vpop.permute.xlu1 %3152 }
0x1188   :  { %5959 = vmatmul.mubr.msk.f32.vlgmr.msra.gmra.mrb[18].mxu1 %vm108_vm1, %v3153_v5 }
0x1189   :  { %3328 = vmatpush1.msra.mxu1 %v7951_v59  ;;  %3391 = vmatprep.mubr.f32.mxu1 %v7365_v0 }
0x118a   :  { %6530 = vmatprep.subr.bf16.mxu1 %v7572_v52 }
0x1190   :  { %5960 = vmatmul.mubr.msk.f32.vlgmr.msra.gmra.mrb[18].mxu1 %vm183_vm0, %v5958_v49 }
0x1191   :  { %6532 = vmatpush1.bf16.msra.mxu1 %v7574_v56  ;;  %3491 = vmatprep.mubr.f32.mxu1 %v7365_v0 }
0x1192   :  { %6534 = vmatprep.subr.bf16.mxu1 %v7576_v57 }
0x1195   :  { %6536 = vmatpush1.bf16.msra.mxu1 %v7580_v62 }
0x1196   :  { %6538 = vmatprep.subr.bf16.mxu1 %v7583_v63 }
0x1199   :  { %6540 = vmatpush1.bf16.msra.mxu1 %v7586_v6 }
0x119a   :  { %6542 = vmatprep.subr.bf16.mxu1 %v7589_v7 }
0x119d   :  { %6544 = vmatpush1.bf16.msra.mxu1 %v7598_v15 }
0x119e   :  { %6546 = vmatprep.subr.bf16.mxu1 %v7601_v17 }
0x11b5   :  { %v3077_v10 = vpop.permute.xlu0 %3076 }
0x11b6   :  { %5954 = vmatmul.mubr.msk.f32.vlgmr.msra.gmra.mrb[18].mxu0 %vm108_vm1, %v3077_v10 }
0x11b7   :  { %6500 = vmatpush1.bf16.msra.mxu0 %v7616_v26  ;;  %3220 = vmatprep.mubr.f32.mxu0 %v7365_v0 }
0x11b8   :  { %6502 = vmatprep.subr.bf16.mxu0 %v7619_v28 }
0x11bb   :  { %6504 = vmatpush1.bf16.msra.mxu0 %v7635_v36 }
0x11bc   :  { %6506 = vmatprep.subr.bf16.mxu0 %v7639_v37 }
0x11bf   :  { %6508 = vmatpush1.bf16.msra.mxu0 %v7654_v45 }
0x11c0   :  { %6510 = vmatprep.subr.bf16.mxu0 %v7657_v46 }
0x11c3   :  { %6512 = vmatpush1.bf16.msra.mxu0 %v7666_v50 }
0x11c4   :  { %6562 = vmatprep.subr.bf16.mxu0 %v7457_v4 }
0x11c6   :  { %5955 = vmatmul.mubr.msk.f32.vlgmr.msra.gmra.mrb[18].mxu0 %vm108_vm1, %v3153_v5 }
0x11c7   :  { %6564 = vmatpush1.bf16.msra.mxu0 %v7468_v8  ;;  %3664 = vmatprep.mubr.f32.mxu0 %v7365_v0 }
0x11c8   :  { %6566 = vmatprep.subr.bf16.mxu0 %v7470_v9 }
0x11cb   :  { %6568 = vmatpush1.bf16.msra.mxu0 %v7486_v14 }
0x11cc   :  { %6570 = vmatprep.subr.bf16.mxu0 %v7492_v16 }
0x11cf   :  { %6572 = vmatpush1.bf16.msra.mxu0 %v7519_v23 }
0x11d0   :  { %6574 = vmatprep.subr.bf16.mxu0 %v7523_v24 }
0x11d3   :  { %6576 = vmatpush1.bf16.msra.mxu0 %v7533_v27 }
0x11d4   :  { %3674 = vmatprep.subr.mxu0 %v7928_v19 }
0x1263   :  { %v3393_v11 = vpop.f32.mrb[18].mxu1 }
0x1264   :  { %v3398_v13 = vadd.f32 %v3393_v11, %v7556_v34  ;;  %v3395_v21 = vpop.f32.mrb[19].mxu1 }
0x1265   :  { %v3399_v61 = vadd.f32 %v3395_v21, %v7562_v42 }
0x1266   :  { %v5961_v18 = vmul.f32 -1.442695, %v3398_v13 }
0x1267   :  { %v5962_v35 = vmul.f32 -1.442695, %v3399_v61 }
0x1268   :  { %7148 = vpow2.f32 %v5961_v18 }
0x1269   :  { %7150 = vtanh.f32 %v3399_v61 }
0x1272   :  { %v7149_v25 = vpop.eup %7148 }
0x1273   :  { %v3403_v32 = vadd.f32 1.0, %v7149_v25  ;;  %v7151_v30 = vpop.eup %7150 }
0x1275   :  { %7152 = vrcp.f32 %v3403_v32 }
0x127f   :  { %v7153_v33 = vpop.eup %7152 }
0x1280   :  { %v3414_v60 = vmul.f32 %v7153_v33, %v7151_v30  ;;  %v3413_v38 = vmul.f32 %v7153_v33, %v8102_v29 }
0x1282   :  { %3416 = vrot.lane.b32.xlu1 %v3414_v60, %s7366_s3 }
0x1299   :  { %v3222_v47 = vpop.f32.mrb[18].mxu0 }
0x129a   :  { %v3227_v31 = vadd.f32 %v3222_v47, %v7709_v3  ;;  %v3224_v12 = vpop.f32.mrb[19].mxu0 }
0x129b   :  { %v3228_v40 = vadd.f32 %v3224_v12, %v7714_v20 }
0x129c   :  { %v5956_v41 = vmul.f32 -1.442695, %v3227_v31 }
0x129d   :  { %v5957_v49 = vmul.f32 -1.442695, %v3228_v40 }
0x129e   :  { %7154 = vpow2.f32 %v5956_v41 }
0x129f   :  { %7156 = vtanh.f32 %v3228_v40 }
0x12a8   :  { %v7155_v44 = vpop.eup %7154 }
0x12a9   :  { %v3232_v48 = vadd.f32 1.0, %v7155_v44  ;;  %v7157_v51 = vpop.eup %7156 }
0x12ab   :  { %7158 = vrcp.f32 %v3232_v48 }
0x12ac   :  { %7160 = vpow2.f32 %v5962_v35 }
0x12b5   :  { %v7159_v53 = vpop.eup %7158 }
0x12b6   :  { %v3243_v22 = vmul.f32 %v7159_v53, %v7157_v51  ;;  %v7161_v54 = vpop.eup %7160  ;;  %v3242_v13 = vmul.f32 %v7159_v53, %v8107_v2  ;;  %v5967_v2 = vld [vmem:[%s8563_s0 + $0x50] sm:$0xff] }
0x12b7   :  { %v3410_v55 = vadd.f32 1.0, %v7161_v54 }
0x12b8   :  { %3245 = vrot.lane.b32.xlu0 %v3243_v22, %s7366_s3 }
0x12b9   :  { %7162 = vrcp.f32 %v3410_v55 }
0x12c3   :  { %v7163_v43 = vpop.eup %7162 }
0x12f4   :  { %v3417_v1 = vpop.permute.xlu1 %3416 }
0x12f5   :  { %v8155_v58 = vadd.f32 %v3417_v1, %v3413_v38 }
0x12f7   :  { %7164 = vtanh.f32 %v8155_v58 }
0x12f8   :  { %7166 = vpow2.f32 %v5957_v49 }
0x1301   :  { %v7165_v39 = vpop.eup %7164 }
0x1302   :  { %v3421_v5 = vmul.f32 %v7165_v39, %v7163_v43  ;;  %v7167_v10 = vpop.eup %7166 }
0x1303   :  { %v3239_v11 = vadd.f32 1.0, %v7167_v10 }
0x1304   :  { %3499 = vrot.lane.b32.xlu1 %v3421_v5, %s7366_s3 }
0x1305   :  { %7168 = vrcp.f32 %v3239_v11 }
0x130f   :  { %v7169_v29 = vpop.eup %7168 }
0x132a   :  { %v3246_v21 = vpop.permute.xlu0 %3245 }
0x132b   :  { %v8160_v18 = vadd.f32 %v3246_v21, %v3242_v13 }
0x132d   :  { %7170 = vtanh.f32 %v8160_v18 }
0x1337   :  { %v7171_v61 = vpop.eup %7170 }
0x1338   :  { %v3250_v25 = vmul.f32 %v7171_v61, %v7169_v29 }
0x133a   :  { %3423 = vrot.lane.b32.xlu0 %v3250_v25, %s7366_s3 }
0x1376   :  { %v3500_v32 = vpop.permute.xlu1 %3499 }
0x1377   :  { %5968 = vmatmul.mubr.msk.f32.vlgmr.msra.gmra.mrb[20].mxu0 %vm108_vm1, %v3500_v32 }
0x1378   :  { %3675 = vmatpush1.msra.mxu0 %v7951_v59  ;;  %3738 = vmatprep.mubr.f32.mxu0 %v7365_v0 }
0x1379   :  { %6578 = vmatprep.subr.bf16.mxu0 %v7572_v52 }
0x137f   :  { %5969 = vmatmul.mubr.msk.f32.vlgmr.msra.gmra.mrb[20].mxu0 %vm183_vm0, %v5967_v2 }
0x1380   :  { %6580 = vmatpush1.bf16.msra.mxu0 %v7574_v56  ;;  %3838 = vmatprep.mubr.f32.mxu0 %v7365_v0 }
0x1381   :  { %6582 = vmatprep.subr.bf16.mxu0 %v7576_v57 }
0x1384   :  { %6584 = vmatpush1.bf16.msra.mxu0 %v7580_v62 }
0x1385   :  { %6586 = vmatprep.subr.bf16.mxu0 %v7583_v63 }
0x1388   :  { %6588 = vmatpush1.bf16.msra.mxu0 %v7586_v6 }
0x1389   :  { %6590 = vmatprep.subr.bf16.mxu0 %v7589_v7 }
0x138c   :  { %6592 = vmatpush1.bf16.msra.mxu0 %v7598_v15 }
0x138d   :  { %6594 = vmatprep.subr.bf16.mxu0 %v7601_v17 }
0x13ac   :  { %v3424_v30 = vpop.permute.xlu0 %3423 }
0x13ad   :  { %5963 = vmatmul.mubr.msk.f32.vlgmr.msra.gmra.mrb[20].mxu1 %vm108_vm1, %v3424_v30 }
0x13ae   :  { %6548 = vmatpush1.bf16.msra.mxu1 %v7616_v26  ;;  %3567 = vmatprep.mubr.f32.mxu1 %v7365_v0 }
0x13af   :  { %6550 = vmatprep.subr.bf16.mxu1 %v7619_v28 }
0x13b2   :  { %6552 = vmatpush1.bf16.msra.mxu1 %v7635_v36 }
0x13b3   :  { %6554 = vmatprep.subr.bf16.mxu1 %v7639_v37 }
0x13b6   :  { %6556 = vmatpush1.bf16.msra.mxu1 %v7654_v45 }
0x13b7   :  { %6558 = vmatprep.subr.bf16.mxu1 %v7657_v46 }
0x13ba   :  { %6560 = vmatpush1.bf16.msra.mxu1 %v7666_v50 }
0x13bb   :  { %6610 = vmatprep.subr.bf16.mxu1 %v7457_v4 }
0x13bd   :  { %5964 = vmatmul.mubr.msk.f32.vlgmr.msra.gmra.mrb[20].mxu1 %vm108_vm1, %v3500_v32 }
0x13be   :  { %6612 = vmatpush1.bf16.msra.mxu1 %v7468_v8  ;;  %4011 = vmatprep.mubr.f32.mxu1 %v7365_v0 }
0x13bf   :  { %6614 = vmatprep.subr.bf16.mxu1 %v7470_v9 }
0x13c2   :  { %6616 = vmatpush1.bf16.msra.mxu1 %v7486_v14 }
0x13c3   :  { %6618 = vmatprep.subr.bf16.mxu1 %v7492_v16 }
0x13c6   :  { %6620 = vmatpush1.bf16.msra.mxu1 %v7519_v23 }
0x13c7   :  { %6622 = vmatprep.subr.bf16.mxu1 %v7523_v24 }
0x13ca   :  { %6624 = vmatpush1.bf16.msra.mxu1 %v7533_v27 }
0x13cb   :  { %4021 = vmatprep.subr.mxu1 %v7928_v19 }
0x1452   :  { %v3740_v33 = vpop.f32.mrb[20].mxu0 }
0x1453   :  { %v3745_v60 = vadd.f32 %v3740_v33, %v7556_v34  ;;  %v3742_v47 = vpop.f32.mrb[21].mxu0 }
0x1454   :  { %v3746_v12 = vadd.f32 %v3742_v47, %v7562_v42 }
0x1455   :  { %v5970_v31 = vmul.f32 -1.442695, %v3745_v60 }
0x1456   :  { %v5971_v5 = vmul.f32 -1.442695, %v3746_v12 }
0x1457   :  { %7172 = vpow2.f32 %v5970_v31 }
0x1458   :  { %7174 = vtanh.f32 %v3746_v12 }
0x1461   :  { %v7173_v41 = vpop.eup %7172 }
0x1462   :  { %v3750_v40 = vadd.f32 1.0, %v7173_v41  ;;  %v7175_v44 = vpop.eup %7174 }
0x1464   :  { %7176 = vrcp.f32 %v3750_v40  ;;  %v8256_v40 = vld [vmem:[%s8564_s1 + $0x8] sm:$0xff] }
0x146e   :  { %v7177_v48 = vpop.eup %7176 }
0x146f   :  { %v3761_v51 = vmul.f32 %v7177_v48, %v7175_v44  ;;  %v3760_v11 = vmul.f32 %v7177_v48, %v8155_v58 }
0x1471   :  { %3763 = vrot.lane.b32.xlu1 %v3761_v51, %s7366_s3 }
0x1490   :  { %v3569_v53 = vpop.f32.mrb[20].mxu1 }
0x1491   :  { %v3574_v19 = vadd.f32 %v3569_v53, %v7709_v3  ;;  %v3571_v22 = vpop.f32.mrb[21].mxu1 }
0x1492   :  { %v3575_v54 = vadd.f32 %v3571_v22, %v7714_v20 }
0x1493   :  { %v5965_v35 = vmul.f32 -1.442695, %v3574_v19 }
0x1494   :  { %v5966_v32 = vmul.f32 -1.442695, %v3575_v54 }
0x1495   :  { %7178 = vpow2.f32 %v5965_v35 }
0x1496   :  { %7180 = vtanh.f32 %v3575_v54 }
0x149f   :  { %v7179_v55 = vpop.eup %7178 }
0x14a0   :  { %v3579_v38 = vadd.f32 1.0, %v7179_v55  ;;  %v7181_v1 = vpop.eup %7180 }
0x14a2   :  { %7182 = vrcp.f32 %v3579_v38 }
0x14a3   :  { %7184 = vpow2.f32 %v5971_v5 }
0x14ac   :  { %v7183_v43 = vpop.eup %7182 }
0x14ad   :  { %v3590_v39 = vmul.f32 %v7183_v43, %v7181_v1  ;;  %v7185_v49 = vpop.eup %7184  ;;  %v3589_v33 = vmul.f32 %v7183_v43, %v8160_v18  ;;  %v5976_v18 = vld [vmem:[%s8563_s0 + $0x58] sm:$0xff] }
0x14ae   :  { %v3757_v10 = vadd.f32 1.0, %v7185_v49 }
0x14af   :  { %3592 = vrot.lane.b32.xlu0 %v3590_v39, %s7366_s3 }
0x14b0   :  { %7186 = vrcp.f32 %v3757_v10 }
0x14ba   :  { %v7187_v29 = vpop.eup %7186 }
0x14e3   :  { %v3764_v13 = vpop.permute.xlu1 %3763 }
0x14e4   :  { %v8208_v21 = vadd.f32 %v3764_v13, %v3760_v11 }
0x14e6   :  { %7188 = vtanh.f32 %v8208_v21 }
0x14e7   :  { %7190 = vpow2.f32 %v5966_v32 }
0x14f0   :  { %v7189_v61 = vpop.eup %7188 }
0x14f1   :  { %v3768_v25 = vmul.f32 %v7189_v61, %v7187_v29  ;;  %v7191_v2 = vpop.eup %7190 }
0x14f2   :  { %v3586_v30 = vadd.f32 1.0, %v7191_v2 }
0x14f3   :  { %3846 = vrot.lane.b32.xlu1 %v3768_v25, %s7366_s3 }
0x14f4   :  { %7192 = vrcp.f32 %v3586_v30 }
0x14fe   :  { %v7193_v58 = vpop.eup %7192 }
0x1521   :  { %v3593_v60 = vpop.permute.xlu0 %3592 }
0x1522   :  { %v8213_v47 = vadd.f32 %v3593_v60, %v3589_v33 }
0x1524   :  { %7194 = vtanh.f32 %v8213_v47 }
0x152e   :  { %v7195_v31 = vpop.eup %7194 }
0x152f   :  { %v3597_v12 = vmul.f32 %v7195_v31, %v7193_v58 }
0x1531   :  { %3770 = vrot.lane.b32.xlu0 %v3597_v12, %s7366_s3 }
0x1565   :  { %v3847_v41 = vpop.permute.xlu1 %3846 }
0x1566   :  { %5977 = vmatmul.mubr.msk.f32.vlgmr.msra.gmra.mrb[22].mxu1 %vm108_vm1, %v3847_v41 }
0x1567   :  { %4022 = vmatpush1.msra.mxu1 %v7951_v59  ;;  %4085 = vmatprep.mubr.f32.mxu1 %v7365_v0 }
0x1568   :  { %6626 = vmatprep.subr.bf16.mxu1 %v7572_v52 }
0x156e   :  { %5978 = vmatmul.mubr.msk.f32.vlgmr.msra.gmra.mrb[22].mxu1 %vm183_vm0, %v5976_v18 }
0x156f   :  { %6628 = vmatpush1.bf16.msra.mxu1 %v7574_v56  ;;  %4185 = vmatprep.mubr.f32.mxu1 %v7365_v0 }
0x1570   :  { %6630 = vmatprep.subr.bf16.mxu1 %v7576_v57 }
0x1573   :  { %6632 = vmatpush1.bf16.msra.mxu1 %v7580_v62 }
0x1574   :  { %6634 = vmatprep.subr.bf16.mxu1 %v7583_v63 }
0x1577   :  { %6636 = vmatpush1.bf16.msra.mxu1 %v7586_v6 }
0x1578   :  { %6638 = vmatprep.subr.bf16.mxu1 %v7589_v7 }
0x157b   :  { %6640 = vmatpush1.bf16.msra.mxu1 %v7598_v15 }
0x157c   :  { %6642 = vmatprep.subr.bf16.mxu1 %v7601_v17 }
0x15a3   :  { %v3771_v59 = vpop.permute.xlu0 %3770 }
0x15a4   :  { %5972 = vmatmul.mubr.msk.f32.vlgmr.msra.gmra.mrb[22].mxu0 %vm108_vm1, %v3771_v59 }
0x15a5   :  { %6596 = vmatpush1.bf16.msra.mxu0 %v7616_v26  ;;  %3914 = vmatprep.mubr.f32.mxu0 %v7365_v0 }
0x15a6   :  { %6598 = vmatprep.subr.bf16.mxu0 %v7619_v28 }
0x15a9   :  { %6600 = vmatpush1.bf16.msra.mxu0 %v7635_v36 }
0x15aa   :  { %6602 = vmatprep.subr.bf16.mxu0 %v7639_v37 }
0x15ad   :  { %6604 = vmatpush1.bf16.msra.mxu0 %v7654_v45 }
0x15ae   :  { %6606 = vmatprep.subr.bf16.mxu0 %v7657_v46 }
0x15b1   :  { %6608 = vmatpush1.bf16.msra.mxu0 %v7666_v50 }
0x15b2   :  { %6658 = vmatprep.subr.bf16.mxu0 %v7457_v4 }
0x15b4   :  { %5973 = vmatmul.mubr.msk.f32.vlgmr.msra.gmra.mrb[22].mxu0 %vm108_vm1, %v3847_v41 }
0x15b5   :  { %6660 = vmatpush1.bf16.msra.mxu0 %v7468_v8  ;;  %4358 = vmatprep.mubr.f32.mxu0 %v7365_v0 }
0x15b6   :  { %6662 = vmatprep.subr.bf16.mxu0 %v7470_v9 }
0x15b9   :  { %6664 = vmatpush1.bf16.msra.mxu0 %v7486_v14 }
0x15ba   :  { %6666 = vmatprep.subr.bf16.mxu0 %v7492_v16 }
0x15bd   :  { %6668 = vmatpush1.bf16.msra.mxu0 %v7519_v23 }
0x15be   :  { %6670 = vmatprep.subr.bf16.mxu0 %v7523_v24 }
0x15c1   :  { %6672 = vmatpush1.bf16.msra.mxu0 %v7533_v27 }
0x15c2   :  { %4368 = vmatprep.subr.mxu0 %v8256_v40 }
0x1641   :  { %v4087_v44 = vpop.f32.mrb[22].mxu1 }
0x1642   :  { %v4092_v48 = vadd.f32 %v4087_v44, %v7556_v34  ;;  %v4089_v51 = vpop.f32.mrb[23].mxu1 }
0x1643   :  { %v4093_v19 = vadd.f32 %v4089_v51, %v7562_v42 }
0x1644   :  { %v5979_v53 = vmul.f32 -1.442695, %v4092_v48 }
0x1645   :  { %v5980_v25 = vmul.f32 -1.442695, %v4093_v19 }
0x1646   :  { %7196 = vpow2.f32 %v5979_v53 }
0x1647   :  { %7198 = vtanh.f32 %v4093_v19 }
0x1650   :  { %v7197_v22 = vpop.eup %7196 }
0x1651   :  { %v4097_v35 = vadd.f32 1.0, %v7197_v22  ;;  %v7199_v54 = vpop.eup %7198 }
0x1653   :  { %7200 = vrcp.f32 %v4097_v35  ;;  %v8279_v35 = vld [vmem:[%s8564_s1] sm:$0xff] }
0x165d   :  { %v7201_v55 = vpop.eup %7200 }
0x165e   :  { %v4108_v38 = vmul.f32 %v7201_v55, %v7199_v54  ;;  %v4107_v30 = vmul.f32 %v7201_v55, %v8208_v21 }
0x1660   :  { %4110 = vrot.lane.b32.xlu1 %v4108_v38, %s7366_s3 }
0x1687   :  { %v3916_v1 = vpop.f32.mrb[22].mxu0 }
0x1688   :  { %v3921_v43 = vadd.f32 %v3916_v1, %v7709_v3  ;;  %v3918_v39 = vpop.f32.mrb[23].mxu0 }
0x1689   :  { %v3922_v49 = vadd.f32 %v3918_v39, %v7714_v20 }
0x168a   :  { %v5974_v5 = vmul.f32 -1.442695, %v3921_v43 }
0x168b   :  { %v5975_v41 = vmul.f32 -1.442695, %v3922_v49 }
0x168c   :  { %7202 = vpow2.f32 %v5974_v5 }
0x168d   :  { %7204 = vtanh.f32 %v3922_v49 }
0x1696   :  { %v7203_v10 = vpop.eup %7202 }
0x1697   :  { %v3926_v11 = vadd.f32 1.0, %v7203_v10  ;;  %v7205_v13 = vpop.eup %7204 }
0x1699   :  { %7206 = vrcp.f32 %v3926_v11 }
0x169a   :  { %7208 = vpow2.f32 %v5980_v25 }
0x16a3   :  { %v7207_v29 = vpop.eup %7206 }
0x16a4   :  { %v3937_v61 = vmul.f32 %v7207_v29, %v7205_v13  ;;  %v7209_v32 = vpop.eup %7208  ;;  %v3936_v44 = vmul.f32 %v7207_v29, %v8213_v47  ;;  %v5985_v47 = vld [vmem:[%s8563_s0 + $0x60] sm:$0xff] }
0x16a5   :  { %v4104_v2 = vadd.f32 1.0, %v7209_v32 }
0x16a6   :  { %3939 = vrot.lane.b32.xlu0 %v3937_v61, %s7366_s3 }
0x16a7   :  { %7210 = vrcp.f32 %v4104_v2 }
0x16b1   :  { %v7211_v58 = vpop.eup %7210 }
0x16d2   :  { %v4111_v33 = vpop.permute.xlu1 %4110 }
0x16d3   :  { %v8266_v60 = vadd.f32 %v4111_v33, %v4107_v30 }
0x16d5   :  { %7212 = vtanh.f32 %v8266_v60 }
0x16d6   :  { %7214 = vpow2.f32 %v5975_v41 }
0x16df   :  { %v7213_v31 = vpop.eup %7212 }
0x16e0   :  { %v4115_v12 = vmul.f32 %v7213_v31, %v7211_v58  ;;  %v7215_v18 = vpop.eup %7214 }
0x16e1   :  { %v3933_v59 = vadd.f32 1.0, %v7215_v18 }
0x16e2   :  { %4193 = vrot.lane.b32.xlu1 %v4115_v12, %s7366_s3 }
0x16e3   :  { %7216 = vrcp.f32 %v3933_v59 }
0x16ed   :  { %v7217_v21 = vpop.eup %7216 }
0x1718   :  { %v3940_v48 = vpop.permute.xlu0 %3939 }
0x1719   :  { %v8271_v51 = vadd.f32 %v3940_v48, %v3936_v44 }
0x171b   :  { %7218 = vtanh.f32 %v8271_v51 }
0x1725   :  { %v7219_v53 = vpop.eup %7218 }
0x1726   :  { %v3944_v19 = vmul.f32 %v7219_v53, %v7217_v21 }
0x1728   :  { %4117 = vrot.lane.b32.xlu0 %v3944_v19, %s7366_s3 }
0x1754   :  { %v4194_v22 = vpop.permute.xlu1 %4193 }
0x1755   :  { %5986 = vmatmul.mubr.msk.f32.vlgmr.msra.gmra.mrb[24].mxu0 %vm108_vm1, %v4194_v22 }
0x1756   :  { %4369 = vmatpush1.msra.mxu0 %v8279_v35  ;;  %4432 = vmatprep.mubr.f32.mxu0 %v7365_v0 }
0x1757   :  { %6674 = vmatprep.subr.bf16.mxu0 %v7572_v52 }
0x175d   :  { %5987 = vmatmul.mubr.msk.f32.vlgmr.msra.gmra.mrb[24].mxu0 %vm183_vm0, %v5985_v47 }
0x175e   :  { %6676 = vmatpush1.bf16.msra.mxu0 %v7574_v56  ;;  %4532 = vmatprep.mubr.f32.mxu0 %v7365_v0 }
0x175f   :  { %6678 = vmatprep.subr.bf16.mxu0 %v7576_v57 }
0x1762   :  { %6680 = vmatpush1.bf16.msra.mxu0 %v7580_v62 }
0x1763   :  { %6682 = vmatprep.subr.bf16.mxu0 %v7583_v63 }
0x1766   :  { %6684 = vmatpush1.bf16.msra.mxu0 %v7586_v6 }
0x1767   :  { %6686 = vmatprep.subr.bf16.mxu0 %v7589_v7 }
0x176a   :  { %6688 = vmatpush1.bf16.msra.mxu0 %v7598_v15 }
0x176b   :  { %6690 = vmatprep.subr.bf16.mxu0 %v7601_v17 }
0x179a   :  { %v4118_v54 = vpop.permute.xlu0 %4117 }
0x179b   :  { %5981 = vmatmul.mubr.msk.f32.vlgmr.msra.gmra.mrb[24].mxu1 %vm108_vm1, %v4118_v54 }
0x179c   :  { %6644 = vmatpush1.bf16.msra.mxu1 %v7616_v26  ;;  %4261 = vmatprep.mubr.f32.mxu1 %v7365_v0 }
0x179d   :  { %6646 = vmatprep.subr.bf16.mxu1 %v7619_v28 }
0x17a0   :  { %6648 = vmatpush1.bf16.msra.mxu1 %v7635_v36 }
0x17a1   :  { %6650 = vmatprep.subr.bf16.mxu1 %v7639_v37 }
0x17a4   :  { %6652 = vmatpush1.bf16.msra.mxu1 %v7654_v45 }
0x17a5   :  { %6654 = vmatprep.subr.bf16.mxu1 %v7657_v46 }
0x17a8   :  { %6656 = vmatpush1.bf16.msra.mxu1 %v7666_v50 }
0x17a9   :  { %6706 = vmatprep.subr.bf16.mxu1 %v7457_v4 }
0x17ab   :  { %5982 = vmatmul.mubr.msk.f32.vlgmr.msra.gmra.mrb[24].mxu1 %vm108_vm1, %v4194_v22 }
0x17ac   :  { %6708 = vmatpush1.bf16.msra.mxu1 %v7468_v8  ;;  %4705 = vmatprep.mubr.f32.mxu1 %v7365_v0 }
0x17ad   :  { %6710 = vmatprep.subr.bf16.mxu1 %v7470_v9 }
0x17b0   :  { %6712 = vmatpush1.bf16.msra.mxu1 %v7486_v14 }
0x17b1   :  { %6714 = vmatprep.subr.bf16.mxu1 %v7492_v16 }
0x17b4   :  { %6716 = vmatpush1.bf16.msra.mxu1 %v7519_v23 }
0x17b5   :  { %6718 = vmatprep.subr.bf16.mxu1 %v7523_v24 }
0x17b8   :  { %6720 = vmatpush1.bf16.msra.mxu1 %v7533_v27 }
0x17b9   :  { %4715 = vmatprep.subr.mxu1 %v8256_v40 }
0x1830   :  { %v4434_v55 = vpop.f32.mrb[24].mxu0 }
0x1831   :  { %v4439_v38 = vadd.f32 %v4434_v55, %v7556_v34  ;;  %v4436_v1 = vpop.f32.mrb[25].mxu0 }
0x1832   :  { %v4440_v39 = vadd.f32 %v4436_v1, %v7562_v42 }
0x1833   :  { %v5988_v43 = vmul.f32 -1.442695, %v4439_v38 }
0x1834   :  { %v5989_v41 = vmul.f32 -1.442695, %v4440_v39 }
0x1835   :  { %7220 = vpow2.f32 %v5988_v43 }
0x1836   :  { %7222 = vtanh.f32 %v4440_v39 }
0x183f   :  { %v7221_v5 = vpop.eup %7220 }
0x1840   :  { %v4444_v49 = vadd.f32 1.0, %v7221_v5  ;;  %v7223_v10 = vpop.eup %7222 }
0x1842   :  { %7224 = vrcp.f32 %v4444_v49 }
0x184c   :  { %v7225_v11 = vpop.eup %7224 }
0x184d   :  { %v4455_v13 = vmul.f32 %v7225_v11, %v7223_v10  ;;  %v4454_v44 = vmul.f32 %v7225_v11, %v8266_v60 }
0x184f   :  { %4457 = vrot.lane.b32.xlu1 %v4455_v13, %s7366_s3 }
0x187e   :  { %v4263_v29 = vpop.f32.mrb[24].mxu1 }
0x187f   :  { %v4268_v61 = vadd.f32 %v4263_v29, %v7709_v3  ;;  %v4265_v25 = vpop.f32.mrb[25].mxu1 }
0x1880   :  { %v4269_v2 = vadd.f32 %v4265_v25, %v7714_v20 }
0x1881   :  { %v5983_v32 = vmul.f32 -1.442695, %v4268_v61 }
0x1882   :  { %v5984_v47 = vmul.f32 -1.442695, %v4269_v2 }
0x1883   :  { %7226 = vpow2.f32 %v5983_v32 }
0x1884   :  { %7228 = vtanh.f32 %v4269_v2 }
0x188d   :  { %v7227_v30 = vpop.eup %7226 }
0x188e   :  { %v4273_v33 = vadd.f32 1.0, %v7227_v30  ;;  %v7229_v58 = vpop.eup %7228 }
0x1890   :  { %7230 = vrcp.f32 %v4273_v33 }
0x1891   :  { %7232 = vpow2.f32 %v5989_v41 }
0x189a   :  { %v7231_v31 = vpop.eup %7230 }
0x189b   :  { %v4284_v12 = vmul.f32 %v7231_v31, %v7229_v58  ;;  %v7233_v18 = vpop.eup %7232  ;;  %v4283_v38 = vmul.f32 %v7231_v31, %v8271_v51  ;;  %v5994_v51 = vld [vmem:[%s8563_s0 + $0x68] sm:$0xff] }
0x189c   :  { %v4451_v59 = vadd.f32 1.0, %v7233_v18 }
0x189d   :  { %4286 = vrot.lane.b32.xlu0 %v4284_v12, %s7366_s3 }
0x189e   :  { %7234 = vrcp.f32 %v4451_v59 }
0x18a8   :  { %v7235_v53 = vpop.eup %7234 }
0x18c1   :  { %v4458_v48 = vpop.permute.xlu1 %4457 }
0x18c2   :  { %v8324_v21 = vadd.f32 %v4458_v48, %v4454_v44 }
0x18c4   :  { %7236 = vtanh.f32 %v8324_v21 }
0x18c5   :  { %7238 = vpow2.f32 %v5984_v47 }
0x18ce   :  { %v7237_v19 = vpop.eup %7236 }
0x18cf   :  { %v4462_v22 = vmul.f32 %v7237_v19, %v7235_v53  ;;  %v7239_v54 = vpop.eup %7238 }
0x18d0   :  { %v4280_v55 = vadd.f32 1.0, %v7239_v54 }
0x18d1   :  { %4540 = vrot.lane.b32.xlu1 %v4462_v22, %s7366_s3 }
0x18d2   :  { %7240 = vrcp.f32 %v4280_v55 }
0x18dc   :  { %v7241_v60 = vpop.eup %7240 }
0x190f   :  { %v4287_v1 = vpop.permute.xlu0 %4286 }
0x1910   :  { %v8329_v43 = vadd.f32 %v4287_v1, %v4283_v38 }
0x1912   :  { %7242 = vtanh.f32 %v8329_v43 }
0x191c   :  { %v7243_v39 = vpop.eup %7242 }
0x191d   :  { %v4291_v5 = vmul.f32 %v7243_v39, %v7241_v60 }
0x191f   :  { %4464 = vrot.lane.b32.xlu0 %v4291_v5, %s7366_s3 }
0x1943   :  { %v4541_v49 = vpop.permute.xlu1 %4540 }
0x1944   :  { %5995 = vmatmul.mubr.msk.f32.vlgmr.msra.gmra.mrb[26].mxu1 %vm108_vm1, %v4541_v49 }
0x1945   :  { %4716 = vmatpush1.msra.mxu1 %v8279_v35  ;;  %4779 = vmatprep.mubr.f32.mxu1 %v7365_v0 }
0x1946   :  { %6722 = vmatprep.subr.bf16.mxu1 %v7572_v52 }
0x194c   :  { %5996 = vmatmul.mubr.msk.f32.vlgmr.msra.gmra.mrb[26].mxu1 %vm183_vm0, %v5994_v51 }
0x194d   :  { %6724 = vmatpush1.bf16.msra.mxu1 %v7574_v56  ;;  %4879 = vmatprep.mubr.f32.mxu1 %v7365_v0 }
0x194e   :  { %6726 = vmatprep.subr.bf16.mxu1 %v7576_v57 }
0x1951   :  { %6728 = vmatpush1.bf16.msra.mxu1 %v7580_v62 }
0x1952   :  { %6730 = vmatprep.subr.bf16.mxu1 %v7583_v63 }
0x1955   :  { %6732 = vmatpush1.bf16.msra.mxu1 %v7586_v6 }
0x1956   :  { %6734 = vmatprep.subr.bf16.mxu1 %v7589_v7 }
0x1959   :  { %6736 = vmatpush1.bf16.msra.mxu1 %v7598_v15 }
0x195a   :  { %6738 = vmatprep.subr.bf16.mxu1 %v7601_v17 }
0x1991   :  { %v4465_v10 = vpop.permute.xlu0 %4464 }
0x1992   :  { %5990 = vmatmul.mubr.msk.f32.vlgmr.msra.gmra.mrb[26].mxu0 %vm108_vm1, %v4465_v10 }
0x1993   :  { %6692 = vmatpush1.bf16.msra.mxu0 %v7616_v26  ;;  %4608 = vmatprep.mubr.f32.mxu0 %v7365_v0 }
0x1994   :  { %6694 = vmatprep.subr.bf16.mxu0 %v7619_v28 }
0x1997   :  { %6696 = vmatpush1.bf16.msra.mxu0 %v7635_v36 }
0x1998   :  { %6698 = vmatprep.subr.bf16.mxu0 %v7639_v37 }
0x199b   :  { %6700 = vmatpush1.bf16.msra.mxu0 %v7654_v45 }
0x199c   :  { %6702 = vmatprep.subr.bf16.mxu0 %v7657_v46 }
0x199f   :  { %6704 = vmatpush1.bf16.msra.mxu0 %v7666_v50 }
0x19a0   :  { %6754 = vmatprep.subr.bf16.mxu0 %v7457_v4 }
0x19a2   :  { %5991 = vmatmul.mubr.msk.f32.vlgmr.msra.gmra.mrb[26].mxu0 %vm108_vm1, %v4541_v49 }
0x19a3   :  { %6756 = vmatpush1.bf16.msra.mxu0 %v7468_v8  ;;  %5052 = vmatprep.mubr.f32.mxu0 %v7365_v0 }
0x19a4   :  { %6758 = vmatprep.subr.bf16.mxu0 %v7470_v9 }
0x19a7   :  { %6760 = vmatpush1.bf16.msra.mxu0 %v7486_v14 }
0x19a8   :  { %6762 = vmatprep.subr.bf16.mxu0 %v7492_v16 }
0x19ab   :  { %6764 = vmatpush1.bf16.msra.mxu0 %v7519_v23 }
0x19ac   :  { %6766 = vmatprep.subr.bf16.mxu0 %v7523_v24 }
0x19af   :  { %6768 = vmatpush1.bf16.msra.mxu0 %v7533_v27 }
0x19b0   :  { %5062 = vmatprep.subr.mxu0 %v8256_v40 }
0x1a1f   :  { %v4781_v11 = vpop.f32.mrb[26].mxu1 }
0x1a20   :  { %v4786_v13 = vadd.f32 %v4781_v11, %v7556_v34  ;;  %v4783_v29 = vpop.f32.mrb[27].mxu1 }
0x1a21   :  { %v4787_v25 = vadd.f32 %v4783_v29, %v7562_v42 }
0x1a22   :  { %v5997_v61 = vmul.f32 -1.442695, %v4786_v13 }
0x1a23   :  { %v5998_v47 = vmul.f32 -1.442695, %v4787_v25 }
0x1a24   :  { %7244 = vpow2.f32 %v5997_v61 }
0x1a25   :  { %7246 = vtanh.f32 %v4787_v25 }
0x1a2e   :  { %v7245_v32 = vpop.eup %7244 }
0x1a2f   :  { %v4791_v2 = vadd.f32 1.0, %v7245_v32  ;;  %v7247_v30 = vpop.eup %7246 }
0x1a31   :  { %7248 = vrcp.f32 %v4791_v2 }
0x1a3b   :  { %v7249_v33 = vpop.eup %7248 }
0x1a3c   :  { %v4802_v58 = vmul.f32 %v7249_v33, %v7247_v30  ;;  %v4801_v38 = vmul.f32 %v7249_v33, %v8324_v21 }
0x1a3e   :  { %4804 = vrot.lane.b32.xlu1 %v4802_v58, %s7366_s3 }
0x1a75   :  { %v4610_v31 = vpop.f32.mrb[26].mxu0 }
0x1a76   :  { %v4615_v12 = vadd.f32 %v4610_v31, %v7709_v3  ;;  %v4612_v41 = vpop.f32.mrb[27].mxu0 }
0x1a77   :  { %v4616_v59 = vadd.f32 %v4612_v41, %v7714_v20 }
0x1a78   :  { %v5992_v18 = vmul.f32 -1.442695, %v4615_v12 }
0x1a79   :  { %v5993_v51 = vmul.f32 -1.442695, %v4616_v59 }
0x1a7a   :  { %7250 = vpow2.f32 %v5992_v18 }
0x1a7b   :  { %7252 = vtanh.f32 %v4616_v59 }
0x1a84   :  { %v7251_v44 = vpop.eup %7250 }
0x1a85   :  { %v4620_v48 = vadd.f32 1.0, %v7251_v44  ;;  %v7253_v53 = vpop.eup %7252 }
0x1a87   :  { %7254 = vrcp.f32 %v4620_v48 }
0x1a88   :  { %7256 = vpow2.f32 %v5998_v47 }
0x1a91   :  { %v7255_v19 = vpop.eup %7254 }
0x1a92   :  { %v4631_v22 = vmul.f32 %v7255_v19, %v7253_v53  ;;  %v7257_v54 = vpop.eup %7256  ;;  %v4630_v13 = vmul.f32 %v7255_v19, %v8329_v43  ;;  %v6003_v43 = vld [vmem:[%s8563_s0 + $0x70] sm:$0xff] }
0x1a93   :  { %v4798_v55 = vadd.f32 1.0, %v7257_v54 }
0x1a94   :  { %4633 = vrot.lane.b32.xlu0 %v4631_v22, %s7366_s3 }
0x1a95   :  { %7258 = vrcp.f32 %v4798_v55 }
0x1a9f   :  { %v7259_v39 = vpop.eup %7258 }
0x1ab0   :  { %v4805_v1 = vpop.permute.xlu1 %4804 }
0x1ab1   :  { %v8377_v60 = vadd.f32 %v4805_v1, %v4801_v38 }
0x1ab3   :  { %7260 = vtanh.f32 %v8377_v60 }
0x1ab4   :  { %7262 = vpow2.f32 %v5993_v51 }
0x1abd   :  { %v7261_v5 = vpop.eup %7260 }
0x1abe   :  { %v4809_v49 = vmul.f32 %v7261_v5, %v7259_v39  ;;  %v7263_v10 = vpop.eup %7262 }
0x1abf   :  { %v4627_v11 = vadd.f32 1.0, %v7263_v10 }
0x1ac0   :  { %4887 = vrot.lane.b32.xlu1 %v4809_v49, %s7366_s3 }
0x1ac1   :  { %7264 = vrcp.f32 %v4627_v11 }
0x1acb   :  { %v7265_v21 = vpop.eup %7264 }
0x1b06   :  { %v4634_v29 = vpop.permute.xlu0 %4633 }
0x1b07   :  { %v8382_v61 = vadd.f32 %v4634_v29, %v4630_v13 }
0x1b09   :  { %7266 = vtanh.f32 %v8382_v61 }
0x1b13   :  { %v7267_v25 = vpop.eup %7266 }
0x1b14   :  { %v4638_v32 = vmul.f32 %v7267_v25, %v7265_v21 }
0x1b16   :  { %4811 = vrot.lane.b32.xlu0 %v4638_v32, %s7366_s3 }
0x1b32   :  { %v4888_v2 = vpop.permute.xlu1 %4887 }
0x1b33   :  { %6004 = vmatmul.mubr.msk.f32.vlgmr.msra.gmra.mrb[28].mxu0 %vm108_vm1, %v4888_v2 }
0x1b34   :  { %5063 = vmatpush1.msra.mxu0 %v8279_v35  ;;  %5126 = vmatprep.mubr.f32.mxu0 %v7365_v0 }
0x1b35   :  { %6770 = vmatprep.subr.bf16.mxu0 %v7572_v52 }
0x1b3b   :  { %6005 = vmatmul.mubr.msk.f32.vlgmr.msra.gmra.mrb[28].mxu0 %vm183_vm0, %v6003_v43 }
0x1b3c   :  { %6772 = vmatpush1.bf16.msra.mxu0 %v7574_v56  ;;  %5226 = vmatprep.mubr.f32.mxu0 %v7365_v0 }
0x1b3d   :  { %6774 = vmatprep.subr.bf16.mxu0 %v7576_v57 }
0x1b40   :  { %6776 = vmatpush1.bf16.msra.mxu0 %v7580_v62 }
0x1b41   :  { %6778 = vmatprep.subr.bf16.mxu0 %v7583_v63 }
0x1b44   :  { %6780 = vmatpush1.bf16.msra.mxu0 %v7586_v6 }
0x1b45   :  { %6782 = vmatprep.subr.bf16.mxu0 %v7589_v7 }
0x1b48   :  { %6784 = vmatpush1.bf16.msra.mxu0 %v7598_v15 }
0x1b49   :  { %6786 = vmatprep.subr.bf16.mxu0 %v7601_v17 }
0x1b88   :  { %v4812_v30 = vpop.permute.xlu0 %4811 }
0x1b89   :  { %5999 = vmatmul.mubr.msk.f32.vlgmr.msra.gmra.mrb[28].mxu1 %vm108_vm1, %v4812_v30 }
0x1b8a   :  { %6740 = vmatpush1.bf16.msra.mxu1 %v7616_v26  ;;  %4955 = vmatprep.mubr.f32.mxu1 %v7365_v0 }
0x1b8b   :  { %6742 = vmatprep.subr.bf16.mxu1 %v7619_v28 }
0x1b8e   :  { %6744 = vmatpush1.bf16.msra.mxu1 %v7635_v36 }
0x1b8f   :  { %6746 = vmatprep.subr.bf16.mxu1 %v7639_v37 }
0x1b92   :  { %6748 = vmatpush1.bf16.msra.mxu1 %v7654_v45 }
0x1b93   :  { %6750 = vmatprep.subr.bf16.mxu1 %v7657_v46 }
0x1b96   :  { %6752 = vmatpush1.bf16.msra.mxu1 %v7666_v50 }
0x1b97   :  { %6802 = vmatprep.subr.bf16.mxu1 %v7457_v4 }
0x1b99   :  { %6000 = vmatmul.mubr.msk.f32.vlgmr.msra.gmra.mrb[28].mxu1 %vm108_vm1, %v4888_v2 }
0x1b9a   :  { %6804 = vmatpush1.bf16.msra.mxu1 %v7468_v8  ;;  %5399 = vmatprep.mubr.f32.mxu1 %v7365_v0 }
0x1b9b   :  { %6806 = vmatprep.subr.bf16.mxu1 %v7470_v9 }
0x1b9e   :  { %6808 = vmatpush1.bf16.msra.mxu1 %v7486_v14 }
0x1b9f   :  { %6810 = vmatprep.subr.bf16.mxu1 %v7492_v16 }
0x1ba2   :  { %6812 = vmatpush1.bf16.msra.mxu1 %v7519_v23 }
0x1ba3   :  { %6814 = vmatprep.subr.bf16.mxu1 %v7523_v24 }
0x1ba6   :  { %6816 = vmatpush1.bf16.msra.mxu1 %v7533_v27 }
0x1ba7   :  { %5409 = vmatprep.subr.mxu1 %v8256_v40 }
0x1c0e   :  { %v5128_v4 = vpop.f32.mrb[28].mxu0 }
0x1c0f   :  { %v5133_v33 = vadd.f32 %v5128_v4, %v7556_v34  ;;  %v5130_v8 = vpop.f32.mrb[29].mxu0 }
0x1c10   :  { %v5134_v9 = vadd.f32 %v5130_v8, %v7562_v42 }
0x1c11   :  { %v6006_v58 = vmul.f32 -1.442695, %v5133_v33 }
0x1c12   :  { %v6007_v22 = vmul.f32 -1.442695, %v5134_v9 }
0x1c13   :  { %7268 = vpow2.f32 %v6006_v58 }
0x1c14   :  { %7270 = vtanh.f32 %v5134_v9 }
0x1c1d   :  { %v7269_v31 = vpop.eup %7268 }
0x1c1e   :  { %v5138_v14 = vadd.f32 1.0, %v7269_v31  ;;  %v7271_v16 = vpop.eup %7270 }
0x1c20   :  { %7272 = vrcp.f32 %v5138_v14 }
0x1c2a   :  { %v7273_v23 = vpop.eup %7272 }
0x1c2b   :  { %v5149_v12 = vmul.f32 %v7273_v23, %v7271_v16  ;;  %v5148_v55 = vmul.f32 %v7273_v23, %v8377_v60 }
0x1c2d   :  { %5151 = vrot.lane.b32.xlu1 %v5149_v12, %s7366_s3 }
0x1c6c   :  { %v4957_v24 = vpop.f32.mrb[28].mxu1 }
0x1c6d   :  { %v4962_v27 = vadd.f32 %v4957_v24, %v7709_v3  ;;  %v4959_v40 = vpop.f32.mrb[29].mxu1 }
0x1c6e   :  { %v4963_v18 = vadd.f32 %v4959_v40, %v7714_v20 }
0x1c6f   :  { %v6001_v41 = vmul.f32 -1.442695, %v4962_v27 }
0x1c70   :  { %v6002_v51 = vmul.f32 -1.442695, %v4963_v18 }
0x1c71   :  { %7274 = vpow2.f32 %v6001_v41 }
0x1c72   :  { %7276 = vtanh.f32 %v4963_v18 }
0x1c7b   :  { %v7275_v59 = vpop.eup %7274 }
0x1c7c   :  { %v4967_v44 = vadd.f32 1.0, %v7275_v59  ;;  %v7277_v48 = vpop.eup %7276 }
0x1c7e   :  { %7278 = vrcp.f32 %v4967_v44 }
0x1c7f   :  { %7280 = vpow2.f32 %v6007_v22 }
0x1c88   :  { %v7279_v53 = vpop.eup %7278 }
0x1c89   :  { %v4978_v19 = vmul.f32 %v7279_v53, %v7277_v48  ;;  %v7281_v47 = vpop.eup %7280  ;;  %v4977_v13 = vmul.f32 %v7279_v53, %v8382_v61  ;;  %v6012_v61 = vld [vmem:[%s8563_s0 + $0x78] sm:$0xff] }
0x1c8a   :  { %v5145_v54 = vadd.f32 1.0, %v7281_v47 }
0x1c8b   :  { %4980 = vrot.lane.b32.xlu0 %v4978_v19, %s7366_s3 }
0x1c8c   :  { %7282 = vrcp.f32 %v5145_v54 }
0x1c96   :  { %v7283_v39 = vpop.eup %7282 }
0x1c9f   :  { %v5152_v38 = vpop.permute.xlu1 %5151 }
0x1ca0   :  { %v8430_v1 = vadd.f32 %v5152_v38, %v5148_v55 }
0x1ca2   :  { %7284 = vtanh.f32 %v8430_v1 }
0x1ca3   :  { %7286 = vpow2.f32 %v6002_v51 }
0x1cac   :  { %v7285_v5 = vpop.eup %7284 }
0x1cad   :  { %v5156_v49 = vmul.f32 %v7285_v5, %v7283_v39  ;;  %v7287_v10 = vpop.eup %7286 }
0x1cae   :  { %v4974_v11 = vadd.f32 1.0, %v7287_v10 }
0x1caf   :  { %5234 = vrot.lane.b32.xlu1 %v5156_v49, %s7366_s3 }
0x1cb0   :  { %7288 = vrcp.f32 %v4974_v11  ;;  %v7367_v11 = vmov 0.0|0.0  }
0x1cba   :  { %v7289_v60 = vpop.eup %7288 }
0x1cfd   :  { %v4981_v29 = vpop.permute.xlu0 %4980 }
0x1cfe   :  { %v8435_v21 = vadd.f32 %v4981_v29, %v4977_v13  ;;  %v5683_v29 = vld [vmem:[%s8570_s7 + $0x18] sm:$0xff] }
0x1d00   :  { %7290 = vtanh.f32 %v8435_v21 }
0x1d0a   :  { %v7291_v25 = vpop.eup %7290 }
0x1d0b   :  { %v4985_v32 = vmul.f32 %v7291_v25, %v7289_v60  ;;  %v5684_v60 = vld [vmem:[%s8570_s7 + $0x20] sm:$0xff]  ;;  %v5685_v25 = vld [vmem:[%s8570_s7 + $0x28] sm:$0xff] }
0x1d0d   :  { %5158 = vrot.lane.b32.xlu0 %v4985_v32, %s7366_s3  ;;  %v6856_v32 = vpack.c.bf16 %v5685_v25, %v5684_v60 }
0x1d21   :  { %v5235_v2 = vpop.permute.xlu1 %5234 }
0x1d22   :  { %6013 = vmatmul.mubr.msk.f32.vlgmr.msra.gmra.mrb[30].mxu1 %vm108_vm1, %v5235_v2 }
0x1d23   :  { %5410 = vmatpush1.msra.mxu1 %v8279_v35  ;;  %5473 = vmatprep.mubr.f32.mxu1 %v7365_v0 }
0x1d24   :  { %6818 = vmatprep.subr.bf16.mxu1 %v7572_v52 }
0x1d2a   :  { %6014 = vmatmul.mubr.msk.f32.vlgmr.msra.gmra.mrb[30].mxu1 %vm183_vm0, %v6012_v61  ;;  %v5687_v61 = vld [vmem:[%s8570_s7 + $0x38] sm:$0xff] }
0x1d2b   :  { %6820 = vmatpush1.bf16.msra.mxu1 %v7574_v56  ;;  %5573 = vmatprep.mubr.f32.mxu1 %v7365_v0 }
0x1d2c   :  { %6822 = vmatprep.subr.bf16.mxu1 %v7576_v57 }
0x1d2f   :  { %6824 = vmatpush1.bf16.msra.mxu1 %v7580_v62 }
0x1d30   :  { %6826 = vmatprep.subr.bf16.mxu1 %v7583_v63 }
0x1d33   :  { %6828 = vmatpush1.bf16.msra.mxu1 %v7586_v6 }
0x1d34   :  { %6830 = vmatprep.subr.bf16.mxu1 %v7589_v7 }
0x1d37   :  { %6832 = vmatpush1.bf16.msra.mxu1 %v7598_v15 }
0x1d38   :  { %6834 = vmatprep.subr.bf16.mxu1 %v7601_v17 }
0x1d7f   :  { %v5159_v52 = vpop.permute.xlu0 %5158 }
0x1d80   :  { %6008 = vmatmul.mubr.msk.f32.vlgmr.msra.gmra.mrb[30].mxu0 %vm108_vm1, %v5159_v52 }
0x1d81   :  { %6788 = vmatpush1.bf16.msra.mxu0 %v7616_v26  ;;  %5302 = vmatprep.mubr.f32.mxu0 %v7365_v0 }
0x1d82   :  { %6790 = vmatprep.subr.bf16.mxu0 %v7619_v28 }
0x1d85   :  { %6792 = vmatpush1.bf16.msra.mxu0 %v7635_v36 }
0x1d86   :  { %6794 = vmatprep.subr.bf16.mxu0 %v7639_v37 }
0x1d89   :  { %6796 = vmatpush1.bf16.msra.mxu0 %v7654_v45 }
0x1d8a   :  { %6798 = vmatprep.subr.bf16.mxu0 %v7657_v46 }
0x1d8d   :  { %6800 = vmatpush1.bf16.msra.mxu0 %v7666_v50 }
0x1d8e   :  { %6849 = vmatprep.subr.bf16.mxu0 %v7367_v11 }
0x1d90   :  { %6009 = vmatmul.mubr.msk.f32.vlgmr.msra.gmra.mrb[30].mxu0 %vm108_vm1, %v5235_v2  ;;  %v5686_v2 = vld [vmem:[%s8570_s7 + $0x30] sm:$0xff] }
0x1d91   :  { %6059 = vmatprep.mubr.msk.f32.mxu0 %vm7368_vm2, %v7365_v0  ;;  %v6859_v52 = vpack.c.bf16 %v5687_v61, %v5686_v2 }
0x1dfd   :  { %v5475_v56 = vpop.f32.mrb[30].mxu1 }
0x1dfe   :  { %v5480_v57 = vadd.f32 %v5475_v56, %v7556_v34  ;;  %v5477_v62 = vpop.f32.mrb[31].mxu1 }
0x1dff   :  { %v5481_v6 = vadd.f32 %v5477_v62, %v7562_v42 }
0x1e00   :  { %v6015_v63 = vmul.f32 -1.442695, %v5480_v57 }
0x1e01   :  { %v6016_v42 = vmul.f32 -1.442695, %v5481_v6 }
0x1e02   :  { %7292 = vpow2.f32 %v6015_v63 }
0x1e03   :  { %7294 = vtanh.f32 %v5481_v6 }
0x1e0c   :  { %v7293_v7 = vpop.eup %7292 }
0x1e0d   :  { %v5485_v15 = vadd.f32 1.0, %v7293_v7  ;;  %v7295_v17 = vpop.eup %7294 }
0x1e0f   :  { %7296 = vrcp.f32 %v5485_v15 }
0x1e19   :  { %v7297_v35 = vpop.eup %7296 }
0x1e1a   :  { %v5496_v43 = vmul.f32 %v7297_v35, %v7295_v17  ;;  %v5495_v24 = vmul.f32 %v7297_v35, %v8430_v1 }
0x1e1c   :  { %5498 = vrot.lane.b32.xlu1 %v5496_v43, %s7366_s3  ;;  %v5770_v43 = vld [vmem:[%s8572_s9] sm:$0xff] }
0x1e63   :  { %v5304_v30 = vpop.f32.mrb[30].mxu0 }
0x1e64   :  { %v5309_v4 = vadd.f32 %v5304_v30, %v7709_v3  ;;  %v5306_v33 = vpop.f32.mrb[31].mxu0  ;;  %v5771_v30 = vld [vmem:[%s8572_s9 + $0x8] sm:$0xff] }
0x1e65   :  { %v5310_v34 = vadd.f32 %v5306_v33, %v7714_v20  ;;  %v5772_v33 = vld [vmem:[%s8572_s9 + $0x10] sm:$0xff] }
0x1e66   :  { %v6010_v8 = vmul.f32 -1.442695, %v5309_v4  ;;  %v6862_v4 = vpack.c.bf16 %v5771_v30, %v5770_v43 }
0x1e67   :  { %v6011_v44 = vmul.f32 -1.442695, %v5310_v34 }
0x1e68   :  { %7298 = vpow2.f32 %v6010_v8  ;;  %v5773_v8 = vld [vmem:[%s8572_s9 + $0x18] sm:$0xff] }
0x1e69   :  { %7300 = vtanh.f32 %v5310_v34 }
0x1e72   :  { %v7299_v58 = vpop.eup %7298 }
0x1e73   :  { %v5314_v9 = vadd.f32 1.0, %v7299_v58  ;;  %v7301_v31 = vpop.eup %7300  ;;  %v6865_v58 = vpack.c.bf16 %v5773_v8, %v5772_v33 }
0x1e75   :  { %7302 = vrcp.f32 %v5314_v9  ;;  %v5774_v9 = vld [vmem:[%s8572_s9 + $0x20] sm:$0xff] }
0x1e76   :  { %7304 = vpow2.f32 %v6016_v42  ;;  %v5775_v42 = vld [vmem:[%s8572_s9 + $0x28] sm:$0xff] }
0x1e7f   :  { %v7303_v14 = vpop.eup %7302 }
0x1e80   :  { %v5325_v16 = vmul.f32 %v7303_v14, %v7301_v31  ;;  %v7305_v23 = vpop.eup %7304  ;;  %v5324_v19 = vmul.f32 %v7303_v14, %v8435_v21  ;;  %v6868_v31 = vpack.c.bf16 %v5775_v42, %v5774_v9  ;;  %v5776_v14 = vld [vmem:[%s8572_s9 + $0x30] sm:$0xff] }
0x1e81   :  { %v5492_v12 = vadd.f32 1.0, %v7305_v23 }
0x1e82   :  { %5327 = vrot.lane.b32.xlu0 %v5325_v16, %s7366_s3 }
0x1e83   :  { %7306 = vrcp.f32 %v5492_v12 }
0x1e8d   :  { %v7307_v41 = vpop.eup %7306 }
0x1e8e   :  { %v5499_v27 = vpop.permute.xlu1 %5498 }
0x1e8f   :  { %v5501_v40 = vadd.f32 %v5499_v27, %v5495_v24  ;;  %v6023_v24 = vld [vmem:[%s8573_s10] ss:$0 sm:$0xff] }
0x1e91   :  { %7308 = vtanh.f32 %v5501_v40 }
0x1e92   :  { %7310 = vpow2.f32 %v6011_v44  ;;  %v6021_v44 = vld [vmem:[%s8571_s8] ss:$0 sm:$0xff] }
0x1e9b   :  { %v7309_v18 = vpop.eup %7308 }
0x1e9c   :  { %v5503_v59 = vmul.f32 %v7309_v18, %v7307_v41  ;;  %v7311_v48 = vpop.eup %7310 }
0x1e9d   :  { %v5321_v53 = vadd.f32 1.0, %v7311_v48  ;;  %v5858_v48 = vld [vmem:[%s8574_s11] sm:$0xff] }
0x1e9e   :  { %5581 = vrot.lane.b32.xlu1 %v5503_v59, %s7366_s3 }
0x1e9f   :  { %7312 = vrcp.f32 %v5321_v53 }
0x1ea9   :  { %v7313_v54 = vpop.eup %7312 }
0x1ef4   :  { %v5328_v22 = vpop.permute.xlu0 %5327 }
0x1ef5   :  { %v5330_v47 = vadd.f32 %v5328_v22, %v5324_v19 }
0x1ef7   :  { %7314 = vtanh.f32 %v5330_v47 }
0x1f01   :  { %v7315_v55 = vpop.eup %7314 }
0x1f02   :  { %v5332_v38 = vmul.f32 %v7315_v55, %v7313_v54 }
0x1f04   :  { %5505 = vrot.lane.b32.xlu0 %v5332_v38, %s7366_s3 }
0x1f10   :  { %v5582_v39 = vpop.permute.xlu1 %5581 }
0x1f76   :  { %v5506_v1 = vpop.permute.xlu0 %5505 }
0x1f77   :  { %6017 = vmatmul.mubr.msk.f32.vlgmr.msra.gmra.mrb[32].mxu1 %vm108_vm1, %v5506_v1 }
0x1f78   :  { %6836 = vmatpush1.bf16.msra.mxu1 %v7616_v26  ;;  %5649 = vmatprep.mubr.f32.mxu1 %v7365_v0 }
0x1f79   :  { %6838 = vmatprep.subr.bf16.mxu1 %v7619_v28 }
0x1f7c   :  { %6840 = vmatpush1.bf16.msra.mxu1 %v7635_v36 }
0x1f7d   :  { %6842 = vmatprep.subr.bf16.mxu1 %v7639_v37 }
0x1f80   :  { %6844 = vmatpush1.bf16.msra.mxu1 %v7654_v45 }
0x1f81   :  { %6846 = vmatprep.subr.bf16.mxu1 %v7657_v46 }
0x1f84   :  { %6848 = vmatpush1.bf16.msra.mxu1 %v7666_v50  ;;  %v5680_v50 = vld [vmem:[%s8570_s7] sm:$0xff] }
0x1f87   :  { %6018 = vmatmul.mubr.msk.f32.vlgmr.msra.gmra.mrb[32].mxu1 %vm108_vm1, %v5582_v39 }
0x205a   :  { %v5651_v5 = vpop.f32.mrb[32].mxu1 }
0x205b   :  { %v5656_v26 = vadd.f32 %v5651_v5, %v7709_v3  ;;  %v5653_v49 = vpop.f32.mrb[33].mxu1  ;;  %v5681_v3 = vld [vmem:[%s8570_s7 + $0x8] sm:$0xff] }
0x205c   :  { %v5657_v28 = vadd.f32 %v5653_v49, %v7714_v20  ;;  %v5682_v20 = vld [vmem:[%s8570_s7 + $0x10] sm:$0xff]  ;;  %v6850_v13 = vpack.c.bf16 %v5681_v3, %v5680_v50 }
0x205d   :  { %v6019_v51 = vmul.f32 -1.442695, %v5656_v26  ;;  %v6853_v21 = vpack.c.bf16 %v5683_v29, %v5682_v20 }
0x205e   :  { %6851 = vmatpush3.bf16.msra.mxu0 %v6850_v13  ;;  %v6020_v56 = vmul.f32 -1.442695, %v5657_v28 }
0x205f   :  { %7316 = vpow2.f32 %v6019_v51  ;;  %6852 = vmatprep.subr.bf16.mxu0 %v7367_v11 }
0x2060   :  { %7318 = vtanh.f32 %v5657_v28 }
0x2062   :  { %6854 = vmatpush3.bf16.msra.mxu0 %v6853_v21 }
0x2063   :  { %6855 = vmatprep.subr.bf16.mxu0 %v7367_v11 }
0x2066   :  { %6857 = vmatpush3.bf16.msra.mxu0 %v6856_v32 }
0x2067   :  { %6858 = vmatprep.subr.bf16.mxu0 %v7367_v11 }
0x2069   :  { %v7317_v36 = vpop.eup %7316 }
0x206a   :  { %v5661_v10 = vadd.f32 1.0, %v7317_v36  ;;  %v7319_v37 = vpop.eup %7318  ;;  %6860 = vmatpush3.bf16.msra.mxu0 %v6859_v52 }
0x206b   :  { %6861 = vmatprep.subr.bf16.mxu0 %v7367_v11 }
0x206c   :  { %7320 = vrcp.f32 %v5661_v10 }
0x206d   :  { %7322 = vpow2.f32 %v6020_v56 }
0x2076   :  { %v7321_v45 = vpop.eup %7320 }
0x2077   :  { %v5672_v46 = vmul.f32 %v7321_v45, %v7319_v37  ;;  %v7323_v57 = vpop.eup %7322  ;;  %v5671_v63 = vmul.f32 %v7321_v45, %v5330_v47 }
0x2078   :  { %v5668_v62 = vadd.f32 1.0, %v7323_v57 }
0x2079   :  { %5674 = vrot.lane.b32.xlu0 %v5672_v46, %s7366_s3 }
0x207a   :  { %7324 = vrcp.f32 %v5668_v62 }
0x2084   :  { %v7325_v15 = vpop.eup %7324 }
0x20eb   :  { %v5675_v6 = vpop.permute.xlu0 %5674 }
0x20ec   :  { %v5677_v7 = vadd.f32 %v5675_v6, %v5671_v63 }
0x20ee   :  { %7326 = vtanh.f32 %v5677_v7 }
0x20f8   :  { %v7327_v17 = vpop.eup %7326 }
0x20f9   :  { %v5679_v35 = vmul.f32 %v7327_v17, %v7325_v15 }
0x20fb   :  { %5696 = vrot.lane.b32.xlu1 %v5679_v35, %s7366_s3 }
0x216d   :  { %v5697_v34 = vpop.permute.xlu1 %5696 }
0x216e   :  { %6060 = vmatmul.mubr.msk.f32.vlgmr.msra.gmra.mrb[32].mxu0 %vm108_vm1, %v5697_v34 }
0x216f   :  { %6863 = vmatpush3.bf16.msra.mxu0 %v6862_v4  ;;  %6078 = vmatprep.mubr.msk.f32.mxu0 %vm7368_vm2, %v7365_v0  ;;  %v5777_v0 = vld [vmem:[%s8572_s9 + $0x38] sm:$0xff] }
0x2170   :  { %6864 = vmatprep.subr.bf16.mxu0 %v7367_v11  ;;  %v6871_v16 = vpack.c.bf16 %v5777_v0, %v5776_v14 }
0x2173   :  { %6866 = vmatpush3.bf16.msra.mxu0 %v6865_v58 }
0x2174   :  { %6867 = vmatprep.subr.bf16.mxu0 %v7367_v11 }
0x2177   :  { %6869 = vmatpush3.bf16.msra.mxu0 %v6868_v31 }
0x2178   :  { %6870 = vmatprep.subr.bf16.mxu0 %v7367_v11 }
0x217b   :  { %6872 = vmatpush3.bf16.msra.mxu0 %v6871_v16 }
0x217e   :  { %6079 = vmatmul.mubr.msk.f32.vlgmr.msra.gmra.mrb[34].mxu0 %vm108_vm1, %v5697_v34 }
0x2241   :  { %v5766_v23 = vpop.f32.mrb[32].mxu0 }
0x2242   :  { %v6061_v12 = vpop.f32.mrb[33].mxu0  ;;  %v5767_v19 = vadd.f32 %v6021_v44, %v5766_v23 }
0x2251   :  { %v5851_v27 = vpop.f32.mrb[34].mxu0 }
0x2252   :  { %v5852_v40 = vadd.f32 %v6023_v24, %v5851_v27  ;;  %v6080_v41 = vpop.f32.mrb[35].mxu0 }
0x2254   :  { %v5855_v18 = vmul.f32 0.5, %v5852_v40 }
0x2256   :  { %v5856_v59 = vmul.f32 1.442695, %v5855_v18 }
0x2258   :  { %7328 = vpow2.f32 %v5856_v59 }
0x2262   :  { %v7329_v53 = vpop.eup %7328 }
0x2263   :  { %v5859_v22 = vmul.f32 %v7329_v53, %v5858_v48 }
0x2265   :  { %v5860_v47 = vadd.f32 %v5859_v22, %v5767_v19 }
0x2267   :  { %v5862_v54 = vsel %vm5861_vm3, %v5860_v47, -inf }
0x2268   :  { %5863 = vmax.xlane.f32.xlu0 %v5862_v54 }
0x22f5   :  { %v5864_v55 = vpop.xlane.xlu0 %5863 }
0x22f6   :  { %v5865_v38 = vsub.f32 %v5860_v47, %v5864_v55 }
0x22f8   :  { %v5866_v1 = vmul.f32 1.442695, %v5865_v38 }
0x22fa   :  { %7330 = vpow2.f32 %v5866_v1 }
0x2304   :  { %v7331_v39 = vpop.eup %7330 }
0x2305   :  { %v5868_v5 = vsel %vm5861_vm3, %v7331_v39, 0.0 }
0x2306   :  { %5869 = vadd.xlane.f32.xlu1 %v5868_v5 }
0x2393   :  { %v5870_v26 = vpop.xlane.xlu1 %5869 }
0x2394   :  { %7332 = vrcp.f32 %v5870_v26 }
0x239e   :  { %v7333_v49 = vpop.eup %7332 }
0x239f   :  { %v5872_v51 = vmul.f32 %v7333_v49, %v7331_v39 }
0x23a1   :  { %5873 = vst.msk [vmem:[%s8575_s12] sm:$0xff] %vm5861_vm3, %v5872_v51  ;;  %5874 = vst.msk [vmem:[%s8575_s12 + $0x8] sm:$0xff] %vm5861_vm3, %v5872_v51 }
0x23a2   :  { %5879 = vsyncpa [#allocation3], 1 }

</bundles_post_ra>
